<compile_context>
chip_gen: v7x
topology: tpu7x:2x2x1
jax: 0.10.0
libtpu: 0.0.40
codegen_flags: <defaults>
</compile_context>

<pallas_src>
import functools
import math

import jax
import jax.numpy as jnp
from jax.experimental import pallas as pl
from jax.experimental.pallas import tpu as pltpu


# ----------------------- Conv2d(3x3, stride=1, pad=1) + bias + ReLU -----------------------

def _conv3x3_relu_kernel(xp_ref, w_ref, b_ref, o_ref, *, th):
    # xp_ref: (1, H+2, W+2, Cin)   spatially padded input for this batch element
    # w_ref : (3, 3, Cin, Cout)    per-tap weight matrices (torch OIHW -> (ky,kx,Cin,Cout))
    # b_ref : (1, Cout)
    # o_ref : (1, th, W, Cout)     row-tile `r` of the output
    r = pl.program_id(1)
    W = o_ref.shape[2]
    Cin = xp_ref.shape[3]
    Cout = o_ref.shape[3]
    row0 = pl.multiple_of(r * th, th)

    acc = jnp.zeros((th * W, Cout), jnp.float32)
    # Per-tap MXU matmuls (9x).  With th=8 the accumulator is <=128 KiB f32, so it stays
    # mostly in vregs.  An im2col 3-matmul variant would cut MXU passes but needs an
    # in-kernel lane-dim concat; the convs are microsecond-scale next to the Linear.
    for ky in range(3):
        for kx in range(3):
            patch = xp_ref[0, pl.ds(row0 + ky, th), pl.ds(kx, W), :]   # (th, W, Cin)
            acc = acc + jnp.dot(patch.reshape(th * W, Cin), w_ref[ky, kx],
                                preferred_element_type=jnp.float32)
    y = jnp.maximum(acc + b_ref[...], 0.0)
    o_ref[0] = y.reshape(th, W, Cout)


def conv3x3_relu(x, w_oihw, b):
    """x: (B,H,W,Cin) NHWC, w_oihw: (Cout,Cin,3,3), b: (Cout,) -> (B,H,W,Cout)."""
    B, H, W, Cin = x.shape
    Cout = w_oihw.shape[0]
    th = min(8, H)                          # small row tile -> bounded acc live range
    if H % th:
        th = math.gcd(H, th)

    cpad = (-Cin) % 8                       # zero-pad channels to a friendly contraction size
    xp = jnp.pad(x, ((0, 0), (1, 1), (1, 1), (0, cpad)))
    if cpad:
        w_oihw = jnp.pad(w_oihw, ((0, 0), (0, cpad), (0, 0), (0, 0)))
    Cin_p = Cin + cpad
    w_taps = jnp.transpose(w_oihw, (2, 3, 1, 0))     # (3,3,Cin,Cout)
    b2 = b.reshape(1, Cout)

    kernel = functools.partial(_conv3x3_relu_kernel, th=th)
    return pl.pallas_call(
        kernel,
        out_shape=jax.ShapeDtypeStruct((B, H, W, Cout), jnp.float32),
        grid=(B, H // th),
        in_specs=[
            pl.BlockSpec((1, H + 2, W + 2, Cin_p), lambda bb, r: (bb, 0, 0, 0)),
            pl.BlockSpec((3, 3, Cin_p, Cout), lambda bb, r: (0, 0, 0, 0)),
            pl.BlockSpec((1, Cout), lambda bb, r: (0, 0)),
        ],
        out_specs=pl.BlockSpec((1, th, W, Cout), lambda bb, r: (bb, r, 0, 0)),
        compiler_params=pltpu.CompilerParams(
            dimension_semantics=("parallel", "parallel")),
    )(xp, w_taps, b2)


# ------------------------------- MaxPool2d(kernel=2, stride=2) ----------------------------

def _maxpool2x2_kernel(x_ref, o_ref):
    # x_ref: (1, Hh, 2, Wh, 2*C)  (free metadata regroup of (1, H, W, C))
    # o_ref: (1, Hh, Wh, C)
    C = o_ref.shape[3]
    x = x_ref[0]
    m = jnp.maximum(x[:, 0, :, :], x[:, 1, :, :])          # max over the 2 rows of the window
    o_ref[0] = jnp.maximum(m[:, :, :C], m[:, :, C:])       # max over the 2 columns of the window


def maxpool2x2(x):
    B, H, W, C = x.shape
    Hh, Wh = H // 2, W // 2
    xg = x.reshape(B, Hh, 2, Wh, 2 * C)                    # contiguous regroup (glue, free)
    return pl.pallas_call(
        _maxpool2x2_kernel,
        out_shape=jax.ShapeDtypeStruct((B, Hh, Wh, C), x.dtype),
        grid=(B,),
        in_specs=[pl.BlockSpec((1, Hh, 2, Wh, 2 * C), lambda bb: (bb, 0, 0, 0, 0))],
        out_specs=pl.BlockSpec((1, Hh, Wh, C), lambda bb: (bb, 0, 0, 0)),
        compiler_params=pltpu.CompilerParams(dimension_semantics=("parallel",)),
    )(xg)


# ------------------------------------ Linear(K -> N) + ReLU -------------------------------

def _linear_relu_kernel(x_ref, w_ref, b_ref, o_ref, acc_ref):
    # x_ref: (B, tk)   activation slice (bf16 when the weight is bf16)
    # w_ref: (tk, tn)  streamed weight tile (contiguous HBM rows)
    # b_ref: (1, tn)   f32 bias
    # o_ref: (B, tn)   f32 output        acc_ref: (B, tn) f32 scratch accumulator
    k = pl.program_id(1)

    @pl.when(k == 0)
    def _init():
        acc_ref[...] = jnp.zeros_like(acc_ref)

    acc_ref[...] += jnp.dot(x_ref[...], w_ref[...], preferred_element_type=jnp.float32)

    @pl.when(k == pl.num_programs(1) - 1)
    def _fin():
        o_ref[...] = jnp.maximum(acc_ref[...] + b_ref[...], 0.0)


def _vmem_capacity_bytes():
    try:
        return int(pltpu.get_tpu_info().vmem_capacity_bytes)
    except Exception:
        return 64 * 1024 * 1024          # conservative (v7x-sized) fallback


def _largest_tile(dim, cap, align):
    """Largest divisor of `dim` that is <= cap and a multiple of `align` (or dim itself)."""
    cap = min(cap, dim)
    if cap >= dim:
        return dim
    for d in range(cap, 0, -1):
        if dim % d == 0 and d % align == 0:
            return d
    return dim


def linear_relu(x, w_io, b):
    """x: (B,K), w_io: (K,N) (== torch weight transposed, typically bf16), b: (N,) f32.

    Returns relu(x @ w_io + b) in f32.  The weight stream dominates runtime, so the
    weight is streamed in its storage dtype (bf16) with f32 MXU accumulation, tiles span
    full / half rows of the (K, N) row-major weight for contiguous DMA, and the window
    is sized from the chip's VMEM capacity (v5e/v6e 128 MiB vs v7x 64 MiB).
    """
    B, K = x.shape
    N = w_io.shape[1]
    w_bytes = jnp.dtype(w_io.dtype).itemsize
    if x.dtype != w_io.dtype:
        x = x.astype(w_io.dtype)            # tiny (B,K) cast; MXU-native bf16 inputs
    b2 = b.reshape(1, N).astype(jnp.float32)

    # N tiling: keep a >=2-wide "parallel" grid axis on large problems so v7x's second
    # TensorCore participates; rows stay long contiguous HBM strips either way.
    if N >= 4096 and (N // 2) % 128 == 0:
        tn = N // 2
    else:
        tn = N

    vmem = _vmem_capacity_bytes()
    n_buf = 3                               # sizing assumes triple buffering (worst case)
    budget = min(vmem // 2, 80 * 1024 * 1024)        # weight-buffer VMEM budget
    tk_cap = max(1, budget // (n_buf * tn * w_bytes))
    tk = _largest_tile(K, tk_cap, 8)

    window = n_buf * tk * tn * w_bytes
    vmem_limit = max(32 * 1024 * 1024,
                     min(int(vmem * 0.9), window + 24 * 1024 * 1024))

    w_idx = lambda j, k: (k, j)
    w_spec = pl.BlockSpec((tk, tn), w_idx)
    if (K // tk) >= 4:                      # triple-buffer only when the K stream is long
        try:
            w_spec = pl.BlockSpec((tk, tn), w_idx, pipeline_mode=pl.Buffered(n_buf))
        except Exception:
            w_spec = pl.BlockSpec((tk, tn), w_idx)

    return pl.pallas_call(
        _linear_relu_kernel,
        out_shape=jax.ShapeDtypeStruct((B, N), jnp.float32),
        grid=(N // tn, K // tk),
        in_specs=[
            pl.BlockSpec((B, tk), lambda j, k: (0, k)),     # small activation slice
            w_spec,                                         # streamed weight tile
            pl.BlockSpec((1, tn), lambda j, k: (0, j)),
        ],
        out_specs=pl.BlockSpec((B, tn), lambda j, k: (0, j)),
        scratch_shapes=[pltpu.VMEM((B, tn), jnp.float32)],
        compiler_params=pltpu.CompilerParams(
            dimension_semantics=("parallel", "arbitrary"),
            vmem_limit_bytes=vmem_limit),
    )(x, w_io, b2)


# ------------------------- ConvTranspose2d(kernel=2, stride=2) + act ----------------------
# stride==kernel==2 => no overlap: out[2i+ky, 2j+kx, co] = sum_ci x[i,j,ci]*w[ci,co,ky,kx]+b[co]
# The kernel computes all 4 taps as one matmul with packed output channels (ky,kx,co);
# the spatial interleave into (2H, 2W) is layout glue outside the kernel.

def _convt2x2_kernel(x_ref, w_ref, b_ref, o_ref, *, act):
    H, W, Cin = x_ref.shape[1], x_ref.shape[2], x_ref.shape[3]
    Cout4 = o_ref.shape[3]
    x = x_ref[0].reshape(H * W, Cin)
    y = jnp.dot(x, w_ref[...], preferred_element_type=jnp.float32) + b_ref[...]
    if act == "relu":
        y = jnp.maximum(y, 0.0)
    else:  # sigmoid (exact; approximate reciprocal could leave the [0,1] range)
        y = 1.0 / (1.0 + jnp.exp(-y))
    o_ref[0] = y.reshape(H, W, Cout4)


def convt2x2(x, w_iohw, b, *, act):
    """x: (B,H,W,Cin), w_iohw: (Cin,Cout,2,2) torch layout, b: (Cout,) -> (B,2H,2W,Cout)."""
    B, H, W, Cin = x.shape
    Cout = w_iohw.shape[1]
    w_pk = jnp.transpose(w_iohw, (0, 2, 3, 1)).reshape(Cin, 4 * Cout)   # (Cin,(ky,kx,co))
    b_pk = jnp.tile(b, 4).reshape(1, 4 * Cout)
    yp = pl.pallas_call(
        functools.partial(_convt2x2_kernel, act=act),
        out_shape=jax.ShapeDtypeStruct((B, H, W, 4 * Cout), jnp.float32),
        grid=(B,),
        in_specs=[
            pl.BlockSpec((1, H, W, Cin), lambda bb: (bb, 0, 0, 0)),
            pl.BlockSpec((Cin, 4 * Cout), lambda bb: (0, 0)),
            pl.BlockSpec((1, 4 * Cout), lambda bb: (0, 0)),
        ],
        out_specs=pl.BlockSpec((1, H, W, 4 * Cout), lambda bb: (bb, 0, 0, 0)),
        compiler_params=pltpu.CompilerParams(dimension_semantics=("parallel",)),
    )(x, w_pk, b_pk)
    y = yp.reshape(B, H, W, 2, 2, Cout)
    y = jnp.transpose(y, (0, 1, 3, 2, 4, 5)).reshape(B, 2 * H, 2 * W, Cout)
    return y


# --------------------------------------- Forward ------------------------------------------

def autoencoder_forward(x_nchw, params):
    B = x_nchw.shape[0]
    x = jnp.transpose(x_nchw, (0, 2, 3, 1))                       # NCHW -> NHWC

    # Encoder: (Conv3x3 + ReLU, MaxPool 2x2) x 3
    h = conv3x3_relu(x, params["enc_w1"], params["enc_b1"])       # (B, S,   S,   32)
    h = maxpool2x2(h)                                             # (B, S/2, S/2, 32)
    h = conv3x3_relu(h, params["enc_w2"], params["enc_b2"])       # (B, S/2, S/2, 64)
    h = maxpool2x2(h)                                             # (B, S/4, S/4, 64)
    h = conv3x3_relu(h, params["enc_w3"], params["enc_b3"])       # (B, S/4, S/4, 128)
    h = maxpool2x2(h)                                             # (B, S/8, S/8, 128)

    hw = h.shape[1]
    # Flatten in torch NCHW order: index = c*hw*hw + y*hw + x
    enc = jnp.transpose(h, (0, 3, 1, 2)).reshape(B, 128 * hw * hw)

    # Decoder
    d = linear_relu(enc, params["dec_w"], params["dec_b"])        # (B, 128*hw*hw)
    d = d.reshape(B, 128, hw, hw)                                 # Unflatten (NCHW)
    d = jnp.transpose(d, (0, 2, 3, 1))                            # -> NHWC
    d = convt2x2(d, params["dt_w1"], params["dt_b1"], act="relu")     # (B, S/4, S/4, 64)
    d = convt2x2(d, params["dt_w2"], params["dt_b2"], act="relu")     # (B, S/2, S/2, 32)
    d = convt2x2(d, params["dt_w3"], params["dt_b3"], act="sigmoid")  # (B, S,   S,   3)

    return jnp.transpose(d, (0, 3, 1, 2))                         # back to NCHW


# --------------------------------- Deterministic params -----------------------------------

def init_params(key, spatial=128):
    """spatial=128 reproduces the torch module exactly (Linear 32768x32768).
    The architecture self-configures from the input resolution the same way the torch
    module does from its 128x128 dummy input: D = 128 * (spatial/8)**2."""
    assert spatial % 8 == 0
    hw = spatial // 8
    D = 128 * hw * hw
    ks = jax.random.split(key, 14)

    def u(k, shape, fan_in):
        bound = float(fan_in) ** -0.5
        return jax.random.uniform(k, shape, jnp.float32, -bound, bound)

    p = {}
    # Conv weights in torch OIHW layout, biases (Cout,)
    p["enc_w1"] = u(ks[0], (32, 3, 3, 3), 3 * 9)
    p["enc_b1"] = u(ks[1], (32,), 3 * 9)
    p["enc_w2"] = u(ks[2], (64, 32, 3, 3), 32 * 9)
    p["enc_b2"] = u(ks[3], (64,), 32 * 9)
    p["enc_w3"] = u(ks[4], (128, 64, 3, 3), 64 * 9)
    p["enc_b3"] = u(ks[5], (128,), 64 * 9)

    # Linear(D -> D); stored as (in, out) == torch_weight.T, cast once to bf16 so the
    # dominant HBM weight stream is halved (accumulation stays f32 inside the kernel).
    p["dec_w"] = u(ks[6], (D, D), D).astype(jnp.bfloat16)
    p["dec_b"] = u(ks[7], (D,), D)

    # ConvTranspose weights in torch (Cin, Cout, kH, kW) layout
    p["dt_w1"] = u(ks[8], (128, 64, 2, 2), 128 * 4)
    p["dt_b1"] = u(ks[9], (64,), 128 * 4)
    p["dt_w2"] = u(ks[10], (64, 32, 2, 2), 64 * 4)
    p["dt_b2"] = u(ks[11], (32,), 64 * 4)
    p["dt_w3"] = u(ks[12], (32, 3, 2, 2), 32 * 4)
    p["dt_b3"] = u(ks[13], (3,), 32 * 4)
    return p


if __name__ == "__main__":
    # Small demo resolution so the sandbox run is fast and memory-light; the kernels are
    # resolution-agnostic and spatial=128 reproduces the torch module's hard-coded
    # configuration (Linear 32768x32768) exactly.
    SPATIAL = 16

    key = jax.random.PRNGKey(0)
    pkey, xkey = jax.random.split(key)
    params = init_params(pkey, spatial=SPATIAL)
    x = jax.random.uniform(xkey, (2, 3, SPATIAL, SPATIAL), jnp.float32)   # NCHW input

    fwd = jax.jit(autoencoder_forward)
    y = jax.block_until_ready(fwd(x, params))

    assert y.shape == (2, 3, SPATIAL, SPATIAL), y.shape
    assert y.dtype == jnp.float32
    assert bool(jnp.all(jnp.isfinite(y)))
    assert bool(jnp.all((y >= 0.0) & (y <= 1.0)))   # sigmoid output range
    print("KERNEL_OK")
</pallas_src>

<mosaic_0001>
module attributes {stable_mosaic.version = 11 : i64} {
  func.func @_maxpool2x2_kernel(%arg0: i32, %arg1: memref<1x8x2x8x64xf32, #tpu.memory_space<vmem>>, %arg2: memref<1x8x8x32xf32, #tpu.memory_space<vmem>>) attributes {dimension_semantics = [#tpu.dimension_semantics<parallel>], iteration_bounds = array<i64: 2>, scalar_prefetch = 0 : i64, scratch_operands = 0 : i64, tpu.core_type = #tpu.core_type<tc>, window_params = [{transform_indices = @transform_0, window_bounds = array<i64: 1, 8, 2, 8, 64>}, {transform_indices = @transform_1, window_bounds = array<i64: 1, 8, 8, 32>}]} {
    %c0 = arith.constant 0 : index
    %c0_0 = arith.constant 0 : index
    %c0_1 = arith.constant 0 : index
    %c0_2 = arith.constant 0 : index
    %c0_3 = arith.constant 0 : index
    %0 = vector.load %arg1[%c0, %c0_0, %c0_1, %c0_2, %c0_3] : memref<1x8x2x8x64xf32, #tpu.memory_space<vmem>>, vector<1x8x2x8x64xf32>
    %1 = vector.shape_cast %0 : vector<1x8x2x8x64xf32> to vector<8x2x8x64xf32>
    %2 = vector.extract_strided_slice %1 {offsets = [0, 0, 0, 0], sizes = [8, 1, 8, 64], strides = [1, 1, 1, 1]} : vector<8x2x8x64xf32> to vector<8x1x8x64xf32>
    %3 = vector.shape_cast %2 : vector<8x1x8x64xf32> to vector<8x8x64xf32>
    %4 = vector.extract_strided_slice %1 {offsets = [0, 1, 0, 0], sizes = [8, 1, 8, 64], strides = [1, 1, 1, 1]} : vector<8x2x8x64xf32> to vector<8x1x8x64xf32>
    %5 = vector.shape_cast %4 : vector<8x1x8x64xf32> to vector<8x8x64xf32>
    %6 = arith.maximumf %3, %5 : vector<8x8x64xf32>
    %7 = vector.extract_strided_slice %6 {offsets = [0, 0, 0], sizes = [8, 8, 32], strides = [1, 1, 1]} : vector<8x8x64xf32> to vector<8x8x32xf32>
    %8 = vector.extract_strided_slice %6 {offsets = [0, 0, 32], sizes = [8, 8, 32], strides = [1, 1, 1]} : vector<8x8x64xf32> to vector<8x8x32xf32>
    %9 = arith.maximumf %7, %8 : vector<8x8x32xf32>
    %c0_4 = arith.constant 0 : index
    %c0_5 = arith.constant 0 : index
    %c0_6 = arith.constant 0 : index
    %c0_7 = arith.constant 0 : index
    %10 = vector.load %arg2[%c0_4, %c0_5, %c0_6, %c0_7] : memref<1x8x8x32xf32, #tpu.memory_space<vmem>>, vector<1x8x8x32xf32>
    %11 = vector.shape_cast %10 : vector<1x8x8x32xf32> to vector<8x8x32xf32>
    %12 = vector.shape_cast %9 : vector<8x8x32xf32> to vector<1x8x8x32xf32>
    tpu.vector_store %arg2[%c0_4, %c0_5, %c0_6, %c0_7], %12 {strides = array<i32>} : memref<1x8x8x32xf32, #tpu.memory_space<vmem>>, vector<1x8x8x32xf32>,
    return
  }
  func.func @transform_0(%arg0: i32) -> (i32, i32, i32, i32, i32) {
    %c0_i32 = arith.constant 0 : i32
    %c0_i32_0 = arith.constant 0 : i32
    %c0_i32_1 = arith.constant 0 : i32
    %c0_i32_2 = arith.constant 0 : i32
    %c0_i32_3 = arith.constant 0 : i32
    return %arg0, %c0_i32, %c0_i32_0, %c0_i32_1, %c0_i32_2 : i32, i32, i32, i32, i32
  }
  func.func @transform_1(%arg0: i32) -> (i32, i32, i32, i32) {
    %c0_i32 = arith.constant 0 : i32
    %c0_i32_0 = arith.constant 0 : i32
    %c0_i32_1 = arith.constant 0 : i32
    %c0_i32_2 = arith.constant 0 : i32
    return %arg0, %c0_i32, %c0_i32_0, %c0_i32_1 : i32, i32, i32, i32
  }
}

module attributes {stable_mosaic.version = 11 : i64} {
  func.func @_conv3x3_relu_kernel(%arg0: i32, %arg1: i32, %arg2: memref<1x18x18x8xf32, #tpu.memory_space<vmem>>, %arg3: memref<3x3x8x32xf32, #tpu.memory_space<vmem>>, %arg4: memref<1x32xf32, #tpu.memory_space<vmem>>, %arg5: memref<1x8x16x32xf32, #tpu.memory_space<vmem>>) attributes {dimension_semantics = [#tpu.dimension_semantics<parallel>, #tpu.dimension_semantics<parallel>], iteration_bounds = array<i64: 2, 2>, scalar_prefetch = 0 : i64, scratch_operands = 0 : i64, tpu.core_type = #tpu.core_type<tc>, window_params = [{transform_indices = @transform_0, window_bounds = array<i64: 1, 18, 18, 8>}, {pipeline_mode = #tpu.pipeline_mode<synchronous>, transform_indices = @transform_1, window_bounds = array<i64: 3, 3, 8, 32>}, {pipeline_mode = #tpu.pipeline_mode<synchronous>, transform_indices = @transform_2, window_bounds = array<i64: 1, 32>}, {transform_indices = @transform_3, window_bounds = array<i64: 1, 8, 16, 32>}]} {
    %c8_i32 = arith.constant 8 : i32
    %0 = arith.muli %arg1, %c8_i32 : i32
    %1 = tpu.assume_multiple %0, 8 : i32
    %cst = arith.constant 0.000000e+00 : f32
    %2 = vector.broadcast %cst : f32 to vector<128x32xf32>
    %c0_i32 = arith.constant 0 : i32
    %3 = arith.addi %1, %c0_i32 : i32
    %c0 = arith.constant 0 : index
    %4 = arith.index_cast %3 : i32 to index
    %c0_0 = arith.constant 0 : index
    %c0_1 = arith.constant 0 : index
    %5 = vector.load %arg2[%c0, %4, %c0_0, %c0_1] : memref<1x18x18x8xf32, #tpu.memory_space<vmem>>, vector<1x8x16x8xf32>
    %6 = vector.shape_cast %5 : vector<1x8x16x8xf32> to vector<8x16x8xf32>
    %7 = vector.shape_cast %6 : vector<8x16x8xf32> to vector<128x8xf32>
    %c0_2 = arith.constant 0 : index
    %c0_3 = arith.constant 0 : index
    %c0_4 = arith.constant 0 : index
    %c0_5 = arith.constant 0 : index
    %8 = vector.load %arg3[%c0_2, %c0_3, %c0_4, %c0_5] : memref<3x3x8x32xf32, #tpu.memory_space<vmem>>, vector<1x1x8x32xf32>
    %9 = vector.shape_cast %8 : vector<1x1x8x32xf32> to vector<8x32xf32>
    %cst_6 = arith.constant dense<0.000000e+00> : vector<128x32xf32>
    %10 = tpu.matmul %7, %9, %cst_6 {dimension_numbers = #tpu.dot_dimension_numbers<[1], [0], [0], [1], [0, 0, 1, 1], [], []>} : vector<128x8xf32>, vector<8x32xf32>, vector<128x32xf32> -> vector<128x32xf32>
    %11 = arith.addf %2, %10 : vector<128x32xf32>
    %c0_i32_7 = arith.constant 0 : i32
    %12 = arith.addi %1, %c0_i32_7 : i32
    %c0_8 = arith.constant 0 : index
    %13 = arith.index_cast %12 : i32 to index
    %c1 = arith.constant 1 : index
    %c0_9 = arith.constant 0 : index
    %14 = vector.load %arg2[%c0_8, %13, %c1, %c0_9] : memref<1x18x18x8xf32, #tpu.memory_space<vmem>>, vector<1x8x16x8xf32>
    %15 = vector.shape_cast %14 : vector<1x8x16x8xf32> to vector<8x16x8xf32>
    %16 = vector.shape_cast %15 : vector<8x16x8xf32> to vector<128x8xf32>
    %c0_10 = arith.constant 0 : index
    %c1_11 = arith.constant 1 : index
    %c0_12 = arith.constant 0 : index
    %c0_13 = arith.constant 0 : index
    %17 = vector.load %arg3[%c0_10, %c1_11, %c0_12, %c0_13] : memref<3x3x8x32xf32, #tpu.memory_space<vmem>>, vector<1x1x8x32xf32>
    %18 = vector.shape_cast %17 : vector<1x1x8x32xf32> to vector<8x32xf32>
    %cst_14 = arith.constant dense<0.000000e+00> : vector<128x32xf32>
    %19 = tpu.matmul %16, %18, %cst_14 {dimension_numbers = #tpu.dot_dimension_numbers<[1], [0], [0], [1], [0, 0, 1, 1], [], []>} : vector<128x8xf32>, vector<8x32xf32>, vector<128x32xf32> -> vector<128x32xf32>
    %20 = arith.addf %11, %19 : vector<128x32xf32>
    %c0_i32_15 = arith.constant 0 : i32
    %21 = arith.addi %1, %c0_i32_15 : i32
    %c0_16 = arith.constant 0 : index
    %22 = arith.index_cast %21 : i32 to index
    %c2 = arith.constant 2 : index
    %c0_17 = arith.constant 0 : index
    %23 = vector.load %arg2[%c0_16, %22, %c2, %c0_17] : memref<1x18x18x8xf32, #tpu.memory_space<vmem>>, vector<1x8x16x8xf32>
    %24 = vector.shape_cast %23 : vector<1x8x16x8xf32> to vector<8x16x8xf32>
    %25 = vector.shape_cast %24 : vector<8x16x8xf32> to vector<128x8xf32>
    %c0_18 = arith.constant 0 : index
    %c2_19 = arith.constant 2 : index
    %c0_20 = arith.constant 0 : index
    %c0_21 = arith.constant 0 : index
    %26 = vector.load %arg3[%c0_18, %c2_19, %c0_20, %c0_21] : memref<3x3x8x32xf32, #tpu.memory_space<vmem>>, vector<1x1x8x32xf32>
    %27 = vector.shape_cast %26 : vector<1x1x8x32xf32> to vector<8x32xf32>
    %cst_22 = arith.constant dense<0.000000e+00> : vector<128x32xf32>
    %28 = tpu.matmul %25, %27, %cst_22 {dimension_numbers = #tpu.dot_dimension_numbers<[1], [0], [0], [1], [0, 0, 1, 1], [], []>} : vector<128x8xf32>, vector<8x32xf32>, vector<128x32xf32> -> vector<128x32xf32>
    %29 = arith.addf %20, %28 : vector<128x32xf32>
    %c1_i32 = arith.constant 1 : i32
    %30 = arith.addi %1, %c1_i32 : i32
    %c0_23 = arith.constant 0 : index
    %31 = arith.index_cast %30 : i32 to index
    %c0_24 = arith.constant 0 : index
    %c0_25 = arith.constant 0 : index
    %32 = vector.load %arg2[%c0_23, %31, %c0_24, %c0_25] : memref<1x18x18x8xf32, #tpu.memory_space<vmem>>, vector<1x8x16x8xf32>
    %33 = vector.shape_cast %32 : vector<1x8x16x8xf32> to vector<8x16x8xf32>
    %34 = vector.shape_cast %33 : vector<8x16x8xf32> to vector<128x8xf32>
    %c1_26 = arith.constant 1 : index
    %c0_27 = arith.constant 0 : index
    %c0_28 = arith.constant 0 : index
    %c0_29 = arith.constant 0 : index
    %35 = vector.load %arg3[%c1_26, %c0_27, %c0_28, %c0_29] : memref<3x3x8x32xf32, #tpu.memory_space<vmem>>, vector<1x1x8x32xf32>
    %36 = vector.shape_cast %35 : vector<1x1x8x32xf32> to vector<8x32xf32>
    %cst_30 = arith.constant dense<0.000000e+00> : vector<128x32xf32>
    %37 = tpu.matmul %34, %36, %cst_30 {dimension_numbers = #tpu.dot_dimension_numbers<[1], [0], [0], [1], [0, 0, 1, 1], [], []>} : vector<128x8xf32>, vector<8x32xf32>, vector<128x32xf32> -> vector<128x32xf32>
    %38 = arith.addf %29, %37 : vector<128x32xf32>
    %c1_i32_31 = arith.constant 1 : i32
    %39 = arith.addi %1, %c1_i32_31 : i32
    %c0_32 = arith.constant 0 : index
    %40 = arith.index_cast %39 : i32 to index
    %c1_33 = arith.constant 1 : index
    %c0_34 = arith.constant 0 : index
    %41 = vector.load %arg2[%c0_32, %40, %c1_33, %c0_34] : memref<1x18x18x8xf32, #tpu.memory_space<vmem>>, vector<1x8x16x8xf32>
    %42 = vector.shape_cast %41 : vector<1x8x16x8xf32> to vector<8x16x8xf32>
    %43 = vector.shape_cast %42 : vector<8x16x8xf32> to vector<128x8xf32>
    %c1_35 = arith.constant 1 : index
    %c1_36 = arith.constant 1 : index
    %c0_37 = arith.constant 0 : index
    %c0_38 = arith.constant 0 : index
    %44 = vector.load %arg3[%c1_35, %c1_36, %c0_37, %c0_38] : memref<3x3x8x32xf32, #tpu.memory_space<vmem>>, vector<1x1x8x32xf32>
    %45 = vector.shape_cast %44 : vector<1x1x8x32xf32> to vector<8x32xf32>
    %cst_39 = arith.constant dense<0.000000e+00> : vector<128x32xf32>
    %46 = tpu.matmul %43, %45, %cst_39 {dimension_numbers = #tpu.dot_dimension_numbers<[1], [0], [0], [1], [0, 0, 1, 1], [], []>} : vector<128x8xf32>, vector<8x32xf32>, vector<128x32xf32> -> vector<128x32xf32>
    %47 = arith.addf %38, %46 : vector<128x32xf32>
    %c1_i32_40 = arith.constant 1 : i32
    %48 = arith.addi %1, %c1_i32_40 : i32
    %c0_41 = arith.constant 0 : index
    %49 = arith.index_cast %48 : i32 to index
    %c2_42 = arith.constant 2 : index
    %c0_43 = arith.constant 0 : index
    %50 = vector.load %arg2[%c0_41, %49, %c2_42, %c0_43] : memref<1x18x18x8xf32, #tpu.memory_space<vmem>>, vector<1x8x16x8xf32>
    %51 = vector.shape_cast %50 : vector<1x8x16x8xf32> to vector<8x16x8xf32>
    %52 = vector.shape_cast %51 : vector<8x16x8xf32> to vector<128x8xf32>
    %c1_44 = arith.constant 1 : index
    %c2_45 = arith.constant 2 : index
    %c0_46 = arith.constant 0 : index
    %c0_47 = arith.constant 0 : index
    %53 = vector.load %arg3[%c1_44, %c2_45, %c0_46, %c0_47] : memref<3x3x8x32xf32, #tpu.memory_space<vmem>>, vector<1x1x8x32xf32>
    %54 = vector.shape_cast %53 : vector<1x1x8x32xf32> to vector<8x32xf32>
    %cst_48 = arith.constant dense<0.000000e+00> : vector<128x32xf32>
    %55 = tpu.matmul %52, %54, %cst_48 {dimension_numbers = #tpu.dot_dimension_numbers<[1], [0], [0], [1], [0, 0, 1, 1], [], []>} : vector<128x8xf32>, vector<8x32xf32>, vector<128x32xf32> -> vector<128x32xf32>
    %56 = arith.addf %47, %55 : vector<128x32xf32>
    %c2_i32 = arith.constant 2 : i32
    %57 = arith.addi %1, %c2_i32 : i32
    %c0_49 = arith.constant 0 : index
    %58 = arith.index_cast %57 : i32 to index
    %c0_50 = arith.constant 0 : index
    %c0_51 = arith.constant 0 : index
    %59 = vector.load %arg2[%c0_49, %58, %c0_50, %c0_51] : memref<1x18x18x8xf32, #tpu.memory_space<vmem>>, vector<1x8x16x8xf32>
    %60 = vector.shape_cast %59 : vector<1x8x16x8xf32> to vector<8x16x8xf32>
    %61 = vector.shape_cast %60 : vector<8x16x8xf32> to vector<128x8xf32>
    %c2_52 = arith.constant 2 : index
    %c0_53 = arith.constant 0 : index
    %c0_54 = arith.constant 0 : index
    %c0_55 = arith.constant 0 : index
    %62 = vector.load %arg3[%c2_52, %c0_53, %c0_54, %c0_55] : memref<3x3x8x32xf32, #tpu.memory_space<vmem>>, vector<1x1x8x32xf32>
    %63 = vector.shape_cast %62 : vector<1x1x8x32xf32> to vector<8x32xf32>
    %cst_56 = arith.constant dense<0.000000e+00> : vector<128x32xf32>
    %64 = tpu.matmul %61, %63, %cst_56 {dimension_numbers = #tpu.dot_dimension_numbers<[1], [0], [0], [1], [0, 0, 1, 1], [], []>} : vector<128x8xf32>, vector<8x32xf32>, vector<128x32xf32> -> vector<128x32xf32>
    %65 = arith.addf %56, %64 : vector<128x32xf32>
    %c2_i32_57 = arith.constant 2 : i32
    %66 = arith.addi %1, %c2_i32_57 : i32
    %c0_58 = arith.constant 0 : index
    %67 = arith.index_cast %66 : i32 to index
    %c1_59 = arith.constant 1 : index
    %c0_60 = arith.constant 0 : index
    %68 = vector.load %arg2[%c0_58, %67, %c1_59, %c0_60] : memref<1x18x18x8xf32, #tpu.memory_space<vmem>>, vector<1x8x16x8xf32>
    %69 = vector.shape_cast %68 : vector<1x8x16x8xf32> to vector<8x16x8xf32>
    %70 = vector.shape_cast %69 : vector<8x16x8xf32> to vector<128x8xf32>
    %c2_61 = arith.constant 2 : index
    %c1_62 = arith.constant 1 : index
    %c0_63 = arith.constant 0 : index
    %c0_64 = arith.constant 0 : index
    %71 = vector.load %arg3[%c2_61, %c1_62, %c0_63, %c0_64] : memref<3x3x8x32xf32, #tpu.memory_space<vmem>>, vector<1x1x8x32xf32>
    %72 = vector.shape_cast %71 : vector<1x1x8x32xf32> to vector<8x32xf32>
    %cst_65 = arith.constant dense<0.000000e+00> : vector<128x32xf32>
    %73 = tpu.matmul %70, %72, %cst_65 {dimension_numbers = #tpu.dot_dimension_numbers<[1], [0], [0], [1], [0, 0, 1, 1], [], []>} : vector<128x8xf32>, vector<8x32xf32>, vector<128x32xf32> -> vector<128x32xf32>
    %74 = arith.addf %65, %73 : vector<128x32xf32>
    %c2_i32_66 = arith.constant 2 : i32
    %75 = arith.addi %1, %c2_i32_66 : i32
    %c0_67 = arith.constant 0 : index
    %76 = arith.index_cast %75 : i32 to index
    %c2_68 = arith.constant 2 : index
    %c0_69 = arith.constant 0 : index
    %77 = vector.load %arg2[%c0_67, %76, %c2_68, %c0_69] : memref<1x18x18x8xf32, #tpu.memory_space<vmem>>, vector<1x8x16x8xf32>
    %78 = vector.shape_cast %77 : vector<1x8x16x8xf32> to vector<8x16x8xf32>
    %79 = vector.shape_cast %78 : vector<8x16x8xf32> to vector<128x8xf32>
    %c2_70 = arith.constant 2 : index
    %c2_71 = arith.constant 2 : index
    %c0_72 = arith.constant 0 : index
    %c0_73 = arith.constant 0 : index
    %80 = vector.load %arg3[%c2_70, %c2_71, %c0_72, %c0_73] : memref<3x3x8x32xf32, #tpu.memory_space<vmem>>, vector<1x1x8x32xf32>
    %81 = vector.shape_cast %80 : vector<1x1x8x32xf32> to vector<8x32xf32>
    %cst_74 = arith.constant dense<0.000000e+00> : vector<128x32xf32>
    %82 = tpu.matmul %79, %81, %cst_74 {dimension_numbers = #tpu.dot_dimension_numbers<[1], [0], [0], [1], [0, 0, 1, 1], [], []>} : vector<128x8xf32>, vector<8x32xf32>, vector<128x32xf32> -> vector<128x32xf32>
    %83 = arith.addf %74, %82 : vector<128x32xf32>
    %c0_75 = arith.constant 0 : index
    %c0_76 = arith.constant 0 : index
    %84 = vector.load %arg4[%c0_75, %c0_76] : memref<1x32xf32, #tpu.memory_space<vmem>>, vector<1x32xf32>
    %85 = vector.broadcast %84 : vector<1x32xf32> to vector<128x32xf32>
    %86 = arith.addf %83, %85 : vector<128x32xf32>
    %cst_77 = arith.constant 0.000000e+00 : f32
    %87 = vector.broadcast %cst_77 : f32 to vector<128x32xf32>
    %88 = arith.maximumf %86, %87 : vector<128x32xf32>
    %89 = vector.shape_cast %88 : vector<128x32xf32> to vector<8x16x32xf32>
    %c0_78 = arith.constant 0 : index
    %c0_79 = arith.constant 0 : index
    %c0_80 = arith.constant 0 : index
    %c0_81 = arith.constant 0 : index
    %90 = vector.load %arg5[%c0_78, %c0_79, %c0_80, %c0_81] : memref<1x8x16x32xf32, #tpu.memory_space<vmem>>, vector<1x8x16x32xf32>
    %91 = vector.shape_cast %90 : vector<1x8x16x32xf32> to vector<8x16x32xf32>
    %92 = vector.shape_cast %89 : vector<8x16x32xf32> to vector<1x8x16x32xf32>
    tpu.vector_store %arg5[%c0_78, %c0_79, %c0_80, %c0_81], %92 {strides = array<i32>} : memref<1x8x16x32xf32, #tpu.memory_space<vmem>>, vector<1x8x16x32xf32>,
    return
  }
  func.func @transform_0(%arg0: i32, %arg1: i32) -> (i32, i32, i32, i32) {
    %c0_i32 = arith.constant 0 : i32
    %c0_i32_0 = arith.constant 0 : i32
    %c0_i32_1 = arith.constant 0 : i32
    %c0_i32_2 = arith.constant 0 : i32
    return %arg0, %c0_i32, %c0_i32_0, %c0_i32_1 : i32, i32, i32, i32
  }
  func.func @transform_1(%arg0: i32, %arg1: i32) -> (i32, i32, i32, i32) {
    %c0_i32 = arith.constant 0 : i32
    %c0_i32_0 = arith.constant 0 : i32
    %c0_i32_1 = arith.constant 0 : i32
    %c0_i32_2 = arith.constant 0 : i32
    %c0_i32_3 = arith.constant 0 : i32
    return %c0_i32, %c0_i32_0, %c0_i32_1, %c0_i32_2 : i32, i32, i32, i32
  }
  func.func @transform_2(%arg0: i32, %arg1: i32) -> (i32, i32) {
    %c0_i32 = arith.constant 0 : i32
    %c0_i32_0 = arith.constant 0 : i32
    %c0_i32_1 = arith.constant 0 : i32
    return %c0_i32, %c0_i32_0 : i32, i32
  }
  func.func @transform_3(%arg0: i32, %arg1: i32) -> (i32, i32, i32, i32) {
    %c0_i32 = arith.constant 0 : i32
    %c0_i32_0 = arith.constant 0 : i32
    %c0_i32_1 = arith.constant 0 : i32
    return %arg0, %arg1, %c0_i32, %c0_i32_0 : i32, i32, i32, i32
  }
}

module attributes {stable_mosaic.version = 11 : i64} {
  func.func @_conv3x3_relu_kernel(%arg0: i32, %arg1: i32, %arg2: memref<1x10x10x32xf32, #tpu.memory_space<vmem>>, %arg3: memref<3x3x32x64xf32, #tpu.memory_space<vmem>>, %arg4: memref<1x64xf32, #tpu.memory_space<vmem>>, %arg5: memref<1x8x8x64xf32, #tpu.memory_space<vmem>>) attributes {dimension_semantics = [#tpu.dimension_semantics<parallel>, #tpu.dimension_semantics<parallel>], iteration_bounds = array<i64: 2, 1>, scalar_prefetch = 0 : i64, scratch_operands = 0 : i64, tpu.core_type = #tpu.core_type<tc>, window_params = [{transform_indices = @transform_0, window_bounds = array<i64: 1, 10, 10, 32>}, {pipeline_mode = #tpu.pipeline_mode<synchronous>, transform_indices = @transform_1, window_bounds = array<i64: 3, 3, 32, 64>}, {pipeline_mode = #tpu.pipeline_mode<synchronous>, transform_indices = @transform_2, window_bounds = array<i64: 1, 64>}, {transform_indices = @transform_3, window_bounds = array<i64: 1, 8, 8, 64>}]} {
    %c8_i32 = arith.constant 8 : i32
    %0 = arith.muli %arg1, %c8_i32 : i32
    %1 = tpu.assume_multiple %0, 8 : i32
    %cst = arith.constant 0.000000e+00 : f32
    %2 = vector.broadcast %cst : f32 to vector<64x64xf32>
    %c0_i32 = arith.constant 0 : i32
    %3 = arith.addi %1, %c0_i32 : i32
    %c0 = arith.constant 0 : index
    %4 = arith.index_cast %3 : i32 to index
    %c0_0 = arith.constant 0 : index
    %c0_1 = arith.constant 0 : index
    %5 = vector.load %arg2[%c0, %4, %c0_0, %c0_1] : memref<1x10x10x32xf32, #tpu.memory_space<vmem>>, vector<1x8x8x32xf32>
    %6 = vector.shape_cast %5 : vector<1x8x8x32xf32> to vector<8x8x32xf32>
    %7 = vector.shape_cast %6 : vector<8x8x32xf32> to vector<64x32xf32>
    %c0_2 = arith.constant 0 : index
    %c0_3 = arith.constant 0 : index
    %c0_4 = arith.constant 0 : index
    %c0_5 = arith.constant 0 : index
    %8 = vector.load %arg3[%c0_2, %c0_3, %c0_4, %c0_5] : memref<3x3x32x64xf32, #tpu.memory_space<vmem>>, vector<1x1x32x64xf32>
    %9 = vector.shape_cast %8 : vector<1x1x32x64xf32> to vector<32x64xf32>
    %cst_6 = arith.constant dense<0.000000e+00> : vector<64x64xf32>
    %10 = tpu.matmul %7, %9, %cst_6 {dimension_numbers = #tpu.dot_dimension_numbers<[1], [0], [0], [1], [0, 0, 1, 1], [], []>} : vector<64x32xf32>, vector<32x64xf32>, vector<64x64xf32> -> vector<64x64xf32>
    %11 = arith.addf %2, %10 : vector<64x64xf32>
    %c0_i32_7 = arith.constant 0 : i32
    %12 = arith.addi %1, %c0_i32_7 : i32
    %c0_8 = arith.constant 0 : index
    %13 = arith.index_cast %12 : i32 to index
    %c1 = arith.constant 1 : index
    %c0_9 = arith.constant 0 : index
    %14 = vector.load %arg2[%c0_8, %13, %c1, %c0_9] : memref<1x10x10x32xf32, #tpu.memory_space<vmem>>, vector<1x8x8x32xf32>
    %15 = vector.shape_cast %14 : vector<1x8x8x32xf32> to vector<8x8x32xf32>
    %16 = vector.shape_cast %15 : vector<8x8x32xf32> to vector<64x32xf32>
    %c0_10 = arith.constant 0 : index
    %c1_11 = arith.constant 1 : index
    %c0_12 = arith.constant 0 : index
    %c0_13 = arith.constant 0 : index
    %17 = vector.load %arg3[%c0_10, %c1_11, %c0_12, %c0_13] : memref<3x3x32x64xf32, #tpu.memory_space<vmem>>, vector<1x1x32x64xf32>
    %18 = vector.shape_cast %17 : vector<1x1x32x64xf32> to vector<32x64xf32>
    %cst_14 = arith.constant dense<0.000000e+00> : vector<64x64xf32>
    %19 = tpu.matmul %16, %18, %cst_14 {dimension_numbers = #tpu.dot_dimension_numbers<[1], [0], [0], [1], [0, 0, 1, 1], [], []>} : vector<64x32xf32>, vector<32x64xf32>, vector<64x64xf32> -> vector<64x64xf32>
    %20 = arith.addf %11, %19 : vector<64x64xf32>
    %c0_i32_15 = arith.constant 0 : i32
    %21 = arith.addi %1, %c0_i32_15 : i32
    %c0_16 = arith.constant 0 : index
    %22 = arith.index_cast %21 : i32 to index
    %c2 = arith.constant 2 : index
    %c0_17 = arith.constant 0 : index
    %23 = vector.load %arg2[%c0_16, %22, %c2, %c0_17] : memref<1x10x10x32xf32, #tpu.memory_space<vmem>>, vector<1x8x8x32xf32>
    %24 = vector.shape_cast %23 : vector<1x8x8x32xf32> to vector<8x8x32xf32>
    %25 = vector.shape_cast %24 : vector<8x8x32xf32> to vector<64x32xf32>
    %c0_18 = arith.constant 0 : index
    %c2_19 = arith.constant 2 : index
    %c0_20 = arith.constant 0 : index
    %c0_21 = arith.constant 0 : index
    %26 = vector.load %arg3[%c0_18, %c2_19, %c0_20, %c0_21] : memref<3x3x32x64xf32, #tpu.memory_space<vmem>>, vector<1x1x32x64xf32>
    %27 = vector.shape_cast %26 : vector<1x1x32x64xf32> to vector<32x64xf32>
    %cst_22 = arith.constant dense<0.000000e+00> : vector<64x64xf32>
    %28 = tpu.matmul %25, %27, %cst_22 {dimension_numbers = #tpu.dot_dimension_numbers<[1], [0], [0], [1], [0, 0, 1, 1], [], []>} : vector<64x32xf32>, vector<32x64xf32>, vector<64x64xf32> -> vector<64x64xf32>
    %29 = arith.addf %20, %28 : vector<64x64xf32>
    %c1_i32 = arith.constant 1 : i32
    %30 = arith.addi %1, %c1_i32 : i32
    %c0_23 = arith.constant 0 : index
    %31 = arith.index_cast %30 : i32 to index
    %c0_24 = arith.constant 0 : index
    %c0_25 = arith.constant 0 : index
    %32 = vector.load %arg2[%c0_23, %31, %c0_24, %c0_25] : memref<1x10x10x32xf32, #tpu.memory_space<vmem>>, vector<1x8x8x32xf32>
    %33 = vector.shape_cast %32 : vector<1x8x8x32xf32> to vector<8x8x32xf32>
    %34 = vector.shape_cast %33 : vector<8x8x32xf32> to vector<64x32xf32>
    %c1_26 = arith.constant 1 : index
    %c0_27 = arith.constant 0 : index
    %c0_28 = arith.constant 0 : index
    %c0_29 = arith.constant 0 : index
    %35 = vector.load %arg3[%c1_26, %c0_27, %c0_28, %c0_29] : memref<3x3x32x64xf32, #tpu.memory_space<vmem>>, vector<1x1x32x64xf32>
    %36 = vector.shape_cast %35 : vector<1x1x32x64xf32> to vector<32x64xf32>
    %cst_30 = arith.constant dense<0.000000e+00> : vector<64x64xf32>
    %37 = tpu.matmul %34, %36, %cst_30 {dimension_numbers = #tpu.dot_dimension_numbers<[1], [0], [0], [1], [0, 0, 1, 1], [], []>} : vector<64x32xf32>, vector<32x64xf32>, vector<64x64xf32> -> vector<64x64xf32>
    %38 = arith.addf %29, %37 : vector<64x64xf32>
    %c1_i32_31 = arith.constant 1 : i32
    %39 = arith.addi %1, %c1_i32_31 : i32
    %c0_32 = arith.constant 0 : index
    %40 = arith.index_cast %39 : i32 to index
    %c1_33 = arith.constant 1 : index
    %c0_34 = arith.constant 0 : index
    %41 = vector.load %arg2[%c0_32, %40, %c1_33, %c0_34] : memref<1x10x10x32xf32, #tpu.memory_space<vmem>>, vector<1x8x8x32xf32>
    %42 = vector.shape_cast %41 : vector<1x8x8x32xf32> to vector<8x8x32xf32>
    %43 = vector.shape_cast %42 : vector<8x8x32xf32> to vector<64x32xf32>
    %c1_35 = arith.constant 1 : index
    %c1_36 = arith.constant 1 : index
    %c0_37 = arith.constant 0 : index
    %c0_38 = arith.constant 0 : index
    %44 = vector.load %arg3[%c1_35, %c1_36, %c0_37, %c0_38] : memref<3x3x32x64xf32, #tpu.memory_space<vmem>>, vector<1x1x32x64xf32>
    %45 = vector.shape_cast %44 : vector<1x1x32x64xf32> to vector<32x64xf32>
    %cst_39 = arith.constant dense<0.000000e+00> : vector<64x64xf32>
    %46 = tpu.matmul %43, %45, %cst_39 {dimension_numbers = #tpu.dot_dimension_numbers<[1], [0], [0], [1], [0, 0, 1, 1], [], []>} : vector<64x32xf32>, vector<32x64xf32>, vector<64x64xf32> -> vector<64x64xf32>
    %47 = arith.addf %38, %46 : vector<64x64xf32>
    %c1_i32_40 = arith.constant 1 : i32
    %48 = arith.addi %1, %c1_i32_40 : i32
    %c0_41 = arith.constant 0 : index
    %49 = arith.index_cast %48 : i32 to index
    %c2_42 = arith.constant 2 : index
    %c0_43 = arith.constant 0 : index
    %50 = vector.load %arg2[%c0_41, %49, %c2_42, %c0_43] : memref<1x10x10x32xf32, #tpu.memory_space<vmem>>, vector<1x8x8x32xf32>
    %51 = vector.shape_cast %50 : vector<1x8x8x32xf32> to vector<8x8x32xf32>
    %52 = vector.shape_cast %51 : vector<8x8x32xf32> to vector<64x32xf32>
    %c1_44 = arith.constant 1 : index
    %c2_45 = arith.constant 2 : index
    %c0_46 = arith.constant 0 : index
    %c0_47 = arith.constant 0 : index
    %53 = vector.load %arg3[%c1_44, %c2_45, %c0_46, %c0_47] : memref<3x3x32x64xf32, #tpu.memory_space<vmem>>, vector<1x1x32x64xf32>
    %54 = vector.shape_cast %53 : vector<1x1x32x64xf32> to vector<32x64xf32>
    %cst_48 = arith.constant dense<0.000000e+00> : vector<64x64xf32>
    %55 = tpu.matmul %52, %54, %cst_48 {dimension_numbers = #tpu.dot_dimension_numbers<[1], [0], [0], [1], [0, 0, 1, 1], [], []>} : vector<64x32xf32>, vector<32x64xf32>, vector<64x64xf32> -> vector<64x64xf32>
    %56 = arith.addf %47, %55 : vector<64x64xf32>
    %c2_i32 = arith.constant 2 : i32
    %57 = arith.addi %1, %c2_i32 : i32
    %c0_49 = arith.constant 0 : index
    %58 = arith.index_cast %57 : i32 to index
    %c0_50 = arith.constant 0 : index
    %c0_51 = arith.constant 0 : index
    %59 = vector.load %arg2[%c0_49, %58, %c0_50, %c0_51] : memref<1x10x10x32xf32, #tpu.memory_space<vmem>>, vector<1x8x8x32xf32>
    %60 = vector.shape_cast %59 : vector<1x8x8x32xf32> to vector<8x8x32xf32>
    %61 = vector.shape_cast %60 : vector<8x8x32xf32> to vector<64x32xf32>
    %c2_52 = arith.constant 2 : index
    %c0_53 = arith.constant 0 : index
    %c0_54 = arith.constant 0 : index
    %c0_55 = arith.constant 0 : index
    %62 = vector.load %arg3[%c2_52, %c0_53, %c0_54, %c0_55] : memref<3x3x32x64xf32, #tpu.memory_space<vmem>>, vector<1x1x32x64xf32>
    %63 = vector.shape_cast %62 : vector<1x1x32x64xf32> to vector<32x64xf32>
    %cst_56 = arith.constant dense<0.000000e+00> : vector<64x64xf32>
    %64 = tpu.matmul %61, %63, %cst_56 {dimension_numbers = #tpu.dot_dimension_numbers<[1], [0], [0], [1], [0, 0, 1, 1], [], []>} : vector<64x32xf32>, vector<32x64xf32>, vector<64x64xf32> -> vector<64x64xf32>
    %65 = arith.addf %56, %64 : vector<64x64xf32>
    %c2_i32_57 = arith.constant 2 : i32
    %66 = arith.addi %1, %c2_i32_57 : i32
    %c0_58 = arith.constant 0 : index
    %67 = arith.index_cast %66 : i32 to index
    %c1_59 = arith.constant 1 : index
    %c0_60 = arith.constant 0 : index
    %68 = vector.load %arg2[%c0_58, %67, %c1_59, %c0_60] : memref<1x10x10x32xf32, #tpu.memory_space<vmem>>, vector<1x8x8x32xf32>
    %69 = vector.shape_cast %68 : vector<1x8x8x32xf32> to vector<8x8x32xf32>
    %70 = vector.shape_cast %69 : vector<8x8x32xf32> to vector<64x32xf32>
    %c2_61 = arith.constant 2 : index
    %c1_62 = arith.constant 1 : index
    %c0_63 = arith.constant 0 : index
    %c0_64 = arith.constant 0 : index
    %71 = vector.load %arg3[%c2_61, %c1_62, %c0_63, %c0_64] : memref<3x3x32x64xf32, #tpu.memory_space<vmem>>, vector<1x1x32x64xf32>
    %72 = vector.shape_cast %71 : vector<1x1x32x64xf32> to vector<32x64xf32>
    %cst_65 = arith.constant dense<0.000000e+00> : vector<64x64xf32>
    %73 = tpu.matmul %70, %72, %cst_65 {dimension_numbers = #tpu.dot_dimension_numbers<[1], [0], [0], [1], [0, 0, 1, 1], [], []>} : vector<64x32xf32>, vector<32x64xf32>, vector<64x64xf32> -> vector<64x64xf32>
    %74 = arith.addf %65, %73 : vector<64x64xf32>
    %c2_i32_66 = arith.constant 2 : i32
    %75 = arith.addi %1, %c2_i32_66 : i32
    %c0_67 = arith.constant 0 : index
    %76 = arith.index_cast %75 : i32 to index
    %c2_68 = arith.constant 2 : index
    %c0_69 = arith.constant 0 : index
    %77 = vector.load %arg2[%c0_67, %76, %c2_68, %c0_69] : memref<1x10x10x32xf32, #tpu.memory_space<vmem>>, vector<1x8x8x32xf32>
    %78 = vector.shape_cast %77 : vector<1x8x8x32xf32> to vector<8x8x32xf32>
    %79 = vector.shape_cast %78 : vector<8x8x32xf32> to vector<64x32xf32>
    %c2_70 = arith.constant 2 : index
    %c2_71 = arith.constant 2 : index
    %c0_72 = arith.constant 0 : index
    %c0_73 = arith.constant 0 : index
    %80 = vector.load %arg3[%c2_70, %c2_71, %c0_72, %c0_73] : memref<3x3x32x64xf32, #tpu.memory_space<vmem>>, vector<1x1x32x64xf32>
    %81 = vector.shape_cast %80 : vector<1x1x32x64xf32> to vector<32x64xf32>
    %cst_74 = arith.constant dense<0.000000e+00> : vector<64x64xf32>
    %82 = tpu.matmul %79, %81, %cst_74 {dimension_numbers = #tpu.dot_dimension_numbers<[1], [0], [0], [1], [0, 0, 1, 1], [], []>} : vector<64x32xf32>, vector<32x64xf32>, vector<64x64xf32> -> vector<64x64xf32>
    %83 = arith.addf %74, %82 : vector<64x64xf32>
    %c0_75 = arith.constant 0 : index
    %c0_76 = arith.constant 0 : index
    %84 = vector.load %arg4[%c0_75, %c0_76] : memref<1x64xf32, #tpu.memory_space<vmem>>, vector<1x64xf32>
    %85 = vector.broadcast %84 : vector<1x64xf32> to vector<64x64xf32>
    %86 = arith.addf %83, %85 : vector<64x64xf32>
    %cst_77 = arith.constant 0.000000e+00 : f32
    %87 = vector.broadcast %cst_77 : f32 to vector<64x64xf32>
    %88 = arith.maximumf %86, %87 : vector<64x64xf32>
    %89 = vector.shape_cast %88 : vector<64x64xf32> to vector<8x8x64xf32>
    %c0_78 = arith.constant 0 : index
    %c0_79 = arith.constant 0 : index
    %c0_80 = arith.constant 0 : index
    %c0_81 = arith.constant 0 : index
    %90 = vector.load %arg5[%c0_78, %c0_79, %c0_80, %c0_81] : memref<1x8x8x64xf32, #tpu.memory_space<vmem>>, vector<1x8x8x64xf32>
    %91 = vector.shape_cast %90 : vector<1x8x8x64xf32> to vector<8x8x64xf32>
    %92 = vector.shape_cast %89 : vector<8x8x64xf32> to vector<1x8x8x64xf32>
    tpu.vector_store %arg5[%c0_78, %c0_79, %c0_80, %c0_81], %92 {strides = array<i32>} : memref<1x8x8x64xf32, #tpu.memory_space<vmem>>, vector<1x8x8x64xf32>,
    return
  }
  func.func @transform_0(%arg0: i32, %arg1: i32) -> (i32, i32, i32, i32) {
    %c0_i32 = arith.constant 0 : i32
    %c0_i32_0 = arith.constant 0 : i32
    %c0_i32_1 = arith.constant 0 : i32
    %c0_i32_2 = arith.constant 0 : i32
    return %arg0, %c0_i32, %c0_i32_0, %c0_i32_1 : i32, i32, i32, i32
  }
  func.func @transform_1(%arg0: i32, %arg1: i32) -> (i32, i32, i32, i32) {
    %c0_i32 = arith.constant 0 : i32
    %c0_i32_0 = arith.constant 0 : i32
    %c0_i32_1 = arith.constant 0 : i32
    %c0_i32_2 = arith.constant 0 : i32
    %c0_i32_3 = arith.constant 0 : i32
    return %c0_i32, %c0_i32_0, %c0_i32_1, %c0_i32_2 : i32, i32, i32, i32
  }
  func.func @transform_2(%arg0: i32, %arg1: i32) -> (i32, i32) {
    %c0_i32 = arith.constant 0 : i32
    %c0_i32_0 = arith.constant 0 : i32
    %c0_i32_1 = arith.constant 0 : i32
    return %c0_i32, %c0_i32_0 : i32, i32
  }
  func.func @transform_3(%arg0: i32, %arg1: i32) -> (i32, i32, i32, i32) {
    %c0_i32 = arith.constant 0 : i32
    %c0_i32_0 = arith.constant 0 : i32
    %c0_i32_1 = arith.constant 0 : i32
    return %arg0, %arg1, %c0_i32, %c0_i32_0 : i32, i32, i32, i32
  }
}

module attributes {stable_mosaic.version = 11 : i64} {
  func.func @_maxpool2x2_kernel(%arg0: i32, %arg1: memref<1x4x2x4x128xf32, #tpu.memory_space<vmem>>, %arg2: memref<1x4x4x64xf32, #tpu.memory_space<vmem>>) attributes {dimension_semantics = [#tpu.dimension_semantics<parallel>], iteration_bounds = array<i64: 2>, scalar_prefetch = 0 : i64, scratch_operands = 0 : i64, tpu.core_type = #tpu.core_type<tc>, window_params = [{transform_indices = @transform_0, window_bounds = array<i64: 1, 4, 2, 4, 128>}, {transform_indices = @transform_1, window_bounds = array<i64: 1, 4, 4, 64>}]} {
    %c0 = arith.constant 0 : index
    %c0_0 = arith.constant 0 : index
    %c0_1 = arith.constant 0 : index
    %c0_2 = arith.constant 0 : index
    %c0_3 = arith.constant 0 : index
    %0 = vector.load %arg1[%c0, %c0_0, %c0_1, %c0_2, %c0_3] : memref<1x4x2x4x128xf32, #tpu.memory_space<vmem>>, vector<1x4x2x4x128xf32>
    %1 = vector.shape_cast %0 : vector<1x4x2x4x128xf32> to vector<4x2x4x128xf32>
    %2 = vector.extract_strided_slice %1 {offsets = [0, 0, 0, 0], sizes = [4, 1, 4, 128], strides = [1, 1, 1, 1]} : vector<4x2x4x128xf32> to vector<4x1x4x128xf32>
    %3 = vector.shape_cast %2 : vector<4x1x4x128xf32> to vector<4x4x128xf32>
    %4 = vector.extract_strided_slice %1 {offsets = [0, 1, 0, 0], sizes = [4, 1, 4, 128], strides = [1, 1, 1, 1]} : vector<4x2x4x128xf32> to vector<4x1x4x128xf32>
    %5 = vector.shape_cast %4 : vector<4x1x4x128xf32> to vector<4x4x128xf32>
    %6 = arith.maximumf %3, %5 : vector<4x4x128xf32>
    %7 = vector.extract_strided_slice %6 {offsets = [0, 0, 0], sizes = [4, 4, 64], strides = [1, 1, 1]} : vector<4x4x128xf32> to vector<4x4x64xf32>
    %8 = vector.extract_strided_slice %6 {offsets = [0, 0, 64], sizes = [4, 4, 64], strides = [1, 1, 1]} : vector<4x4x128xf32> to vector<4x4x64xf32>
    %9 = arith.maximumf %7, %8 : vector<4x4x64xf32>
    %c0_4 = arith.constant 0 : index
    %c0_5 = arith.constant 0 : index
    %c0_6 = arith.constant 0 : index
    %c0_7 = arith.constant 0 : index
    %10 = vector.load %arg2[%c0_4, %c0_5, %c0_6, %c0_7] : memref<1x4x4x64xf32, #tpu.memory_space<vmem>>, vector<1x4x4x64xf32>
    %11 = vector.shape_cast %10 : vector<1x4x4x64xf32> to vector<4x4x64xf32>
    %12 = vector.shape_cast %9 : vector<4x4x64xf32> to vector<1x4x4x64xf32>
    tpu.vector_store %arg2[%c0_4, %c0_5, %c0_6, %c0_7], %12 {strides = array<i32>} : memref<1x4x4x64xf32, #tpu.memory_space<vmem>>, vector<1x4x4x64xf32>,
    return
  }
  func.func @transform_0(%arg0: i32) -> (i32, i32, i32, i32, i32) {
    %c0_i32 = arith.constant 0 : i32
    %c0_i32_0 = arith.constant 0 : i32
    %c0_i32_1 = arith.constant 0 : i32
    %c0_i32_2 = arith.constant 0 : i32
    %c0_i32_3 = arith.constant 0 : i32
    return %arg0, %c0_i32, %c0_i32_0, %c0_i32_1, %c0_i32_2 : i32, i32, i32, i32, i32
  }
  func.func @transform_1(%arg0: i32) -> (i32, i32, i32, i32) {
    %c0_i32 = arith.constant 0 : i32
    %c0_i32_0 = arith.constant 0 : i32
    %c0_i32_1 = arith.constant 0 : i32
    %c0_i32_2 = arith.constant 0 : i32
    return %arg0, %c0_i32, %c0_i32_0, %c0_i32_1 : i32, i32, i32, i32
  }
}

module attributes {stable_mosaic.version = 11 : i64} {
  func.func @_conv3x3_relu_kernel(%arg0: i32, %arg1: i32, %arg2: memref<1x6x6x64xf32, #tpu.memory_space<vmem>>, %arg3: memref<3x3x64x128xf32, #tpu.memory_space<vmem>>, %arg4: memref<1x128xf32, #tpu.memory_space<vmem>>, %arg5: memref<1x4x4x128xf32, #tpu.memory_space<vmem>>) attributes {dimension_semantics = [#tpu.dimension_semantics<parallel>, #tpu.dimension_semantics<parallel>], iteration_bounds = array<i64: 2, 1>, scalar_prefetch = 0 : i64, scratch_operands = 0 : i64, tpu.core_type = #tpu.core_type<tc>, window_params = [{transform_indices = @transform_0, window_bounds = array<i64: 1, 6, 6, 64>}, {pipeline_mode = #tpu.pipeline_mode<synchronous>, transform_indices = @transform_1, window_bounds = array<i64: 3, 3, 64, 128>}, {pipeline_mode = #tpu.pipeline_mode<synchronous>, transform_indices = @transform_2, window_bounds = array<i64: 1, 128>}, {transform_indices = @transform_3, window_bounds = array<i64: 1, 4, 4, 128>}]} {
    %c4_i32 = arith.constant 4 : i32
    %0 = arith.muli %arg1, %c4_i32 : i32
    %1 = tpu.assume_multiple %0, 4 : i32
    %cst = arith.constant 0.000000e+00 : f32
    %2 = vector.broadcast %cst : f32 to vector<16x128xf32>
    %c0_i32 = arith.constant 0 : i32
    %3 = arith.addi %1, %c0_i32 : i32
    %c0 = arith.constant 0 : index
    %4 = arith.index_cast %3 : i32 to index
    %c0_0 = arith.constant 0 : index
    %c0_1 = arith.constant 0 : index
    %5 = vector.load %arg2[%c0, %4, %c0_0, %c0_1] : memref<1x6x6x64xf32, #tpu.memory_space<vmem>>, vector<1x4x4x64xf32>
    %6 = vector.shape_cast %5 : vector<1x4x4x64xf32> to vector<4x4x64xf32>
    %7 = vector.shape_cast %6 : vector<4x4x64xf32> to vector<16x64xf32>
    %c0_2 = arith.constant 0 : index
    %c0_3 = arith.constant 0 : index
    %c0_4 = arith.constant 0 : index
    %c0_5 = arith.constant 0 : index
    %8 = vector.load %arg3[%c0_2, %c0_3, %c0_4, %c0_5] : memref<3x3x64x128xf32, #tpu.memory_space<vmem>>, vector<1x1x64x128xf32>
    %9 = vector.shape_cast %8 : vector<1x1x64x128xf32> to vector<64x128xf32>
    %cst_6 = arith.constant dense<0.000000e+00> : vector<16x128xf32>
    %10 = tpu.matmul %7, %9, %cst_6 {dimension_numbers = #tpu.dot_dimension_numbers<[1], [0], [0], [1], [0, 0, 1, 1], [], []>} : vector<16x64xf32>, vector<64x128xf32>, vector<16x128xf32> -> vector<16x128xf32>
    %11 = arith.addf %2, %10 : vector<16x128xf32>
    %c0_i32_7 = arith.constant 0 : i32
    %12 = arith.addi %1, %c0_i32_7 : i32
    %c0_8 = arith.constant 0 : index
    %13 = arith.index_cast %12 : i32 to index
    %c1 = arith.constant 1 : index
    %c0_9 = arith.constant 0 : index
    %14 = vector.load %arg2[%c0_8, %13, %c1, %c0_9] : memref<1x6x6x64xf32, #tpu.memory_space<vmem>>, vector<1x4x4x64xf32>
    %15 = vector.shape_cast %14 : vector<1x4x4x64xf32> to vector<4x4x64xf32>
    %16 = vector.shape_cast %15 : vector<4x4x64xf32> to vector<16x64xf32>
    %c0_10 = arith.constant 0 : index
    %c1_11 = arith.constant 1 : index
    %c0_12 = arith.constant 0 : index
    %c0_13 = arith.constant 0 : index
    %17 = vector.load %arg3[%c0_10, %c1_11, %c0_12, %c0_13] : memref<3x3x64x128xf32, #tpu.memory_space<vmem>>, vector<1x1x64x128xf32>
    %18 = vector.shape_cast %17 : vector<1x1x64x128xf32> to vector<64x128xf32>
    %cst_14 = arith.constant dense<0.000000e+00> : vector<16x128xf32>
    %19 = tpu.matmul %16, %18, %cst_14 {dimension_numbers = #tpu.dot_dimension_numbers<[1], [0], [0], [1], [0, 0, 1, 1], [], []>} : vector<16x64xf32>, vector<64x128xf32>, vector<16x128xf32> -> vector<16x128xf32>
    %20 = arith.addf %11, %19 : vector<16x128xf32>
    %c0_i32_15 = arith.constant 0 : i32
    %21 = arith.addi %1, %c0_i32_15 : i32
    %c0_16 = arith.constant 0 : index
    %22 = arith.index_cast %21 : i32 to index
    %c2 = arith.constant 2 : index
    %c0_17 = arith.constant 0 : index
    %23 = vector.load %arg2[%c0_16, %22, %c2, %c0_17] : memref<1x6x6x64xf32, #tpu.memory_space<vmem>>, vector<1x4x4x64xf32>
    %24 = vector.shape_cast %23 : vector<1x4x4x64xf32> to vector<4x4x64xf32>
    %25 = vector.shape_cast %24 : vector<4x4x64xf32> to vector<16x64xf32>
    %c0_18 = arith.constant 0 : index
    %c2_19 = arith.constant 2 : index
    %c0_20 = arith.constant 0 : index
    %c0_21 = arith.constant 0 : index
    %26 = vector.load %arg3[%c0_18, %c2_19, %c0_20, %c0_21] : memref<3x3x64x128xf32, #tpu.memory_space<vmem>>, vector<1x1x64x128xf32>
    %27 = vector.shape_cast %26 : vector<1x1x64x128xf32> to vector<64x128xf32>
    %cst_22 = arith.constant dense<0.000000e+00> : vector<16x128xf32>
    %28 = tpu.matmul %25, %27, %cst_22 {dimension_numbers = #tpu.dot_dimension_numbers<[1], [0], [0], [1], [0, 0, 1, 1], [], []>} : vector<16x64xf32>, vector<64x128xf32>, vector<16x128xf32> -> vector<16x128xf32>
    %29 = arith.addf %20, %28 : vector<16x128xf32>
    %c1_i32 = arith.constant 1 : i32
    %30 = arith.addi %1, %c1_i32 : i32
    %c0_23 = arith.constant 0 : index
    %31 = arith.index_cast %30 : i32 to index
    %c0_24 = arith.constant 0 : index
    %c0_25 = arith.constant 0 : index
    %32 = vector.load %arg2[%c0_23, %31, %c0_24, %c0_25] : memref<1x6x6x64xf32, #tpu.memory_space<vmem>>, vector<1x4x4x64xf32>
    %33 = vector.shape_cast %32 : vector<1x4x4x64xf32> to vector<4x4x64xf32>
    %34 = vector.shape_cast %33 : vector<4x4x64xf32> to vector<16x64xf32>
    %c1_26 = arith.constant 1 : index
    %c0_27 = arith.constant 0 : index
    %c0_28 = arith.constant 0 : index
    %c0_29 = arith.constant 0 : index
    %35 = vector.load %arg3[%c1_26, %c0_27, %c0_28, %c0_29] : memref<3x3x64x128xf32, #tpu.memory_space<vmem>>, vector<1x1x64x128xf32>
    %36 = vector.shape_cast %35 : vector<1x1x64x128xf32> to vector<64x128xf32>
    %cst_30 = arith.constant dense<0.000000e+00> : vector<16x128xf32>
    %37 = tpu.matmul %34, %36, %cst_30 {dimension_numbers = #tpu.dot_dimension_numbers<[1], [0], [0], [1], [0, 0, 1, 1], [], []>} : vector<16x64xf32>, vector<64x128xf32>, vector<16x128xf32> -> vector<16x128xf32>
    %38 = arith.addf %29, %37 : vector<16x128xf32>
    %c1_i32_31 = arith.constant 1 : i32
    %39 = arith.addi %1, %c1_i32_31 : i32
    %c0_32 = arith.constant 0 : index
    %40 = arith.index_cast %39 : i32 to index
    %c1_33 = arith.constant 1 : index
    %c0_34 = arith.constant 0 : index
    %41 = vector.load %arg2[%c0_32, %40, %c1_33, %c0_34] : memref<1x6x6x64xf32, #tpu.memory_space<vmem>>, vector<1x4x4x64xf32>
    %42 = vector.shape_cast %41 : vector<1x4x4x64xf32> to vector<4x4x64xf32>
    %43 = vector.shape_cast %42 : vector<4x4x64xf32> to vector<16x64xf32>
    %c1_35 = arith.constant 1 : index
    %c1_36 = arith.constant 1 : index
    %c0_37 = arith.constant 0 : index
    %c0_38 = arith.constant 0 : index
    %44 = vector.load %arg3[%c1_35, %c1_36, %c0_37, %c0_38] : memref<3x3x64x128xf32, #tpu.memory_space<vmem>>, vector<1x1x64x128xf32>
    %45 = vector.shape_cast %44 : vector<1x1x64x128xf32> to vector<64x128xf32>
    %cst_39 = arith.constant dense<0.000000e+00> : vector<16x128xf32>
    %46 = tpu.matmul %43, %45, %cst_39 {dimension_numbers = #tpu.dot_dimension_numbers<[1], [0], [0], [1], [0, 0, 1, 1], [], []>} : vector<16x64xf32>, vector<64x128xf32>, vector<16x128xf32> -> vector<16x128xf32>
    %47 = arith.addf %38, %46 : vector<16x128xf32>
    %c1_i32_40 = arith.constant 1 : i32
    %48 = arith.addi %1, %c1_i32_40 : i32
    %c0_41 = arith.constant 0 : index
    %49 = arith.index_cast %48 : i32 to index
    %c2_42 = arith.constant 2 : index
    %c0_43 = arith.constant 0 : index
    %50 = vector.load %arg2[%c0_41, %49, %c2_42, %c0_43] : memref<1x6x6x64xf32, #tpu.memory_space<vmem>>, vector<1x4x4x64xf32>
    %51 = vector.shape_cast %50 : vector<1x4x4x64xf32> to vector<4x4x64xf32>
    %52 = vector.shape_cast %51 : vector<4x4x64xf32> to vector<16x64xf32>
    %c1_44 = arith.constant 1 : index
    %c2_45 = arith.constant 2 : index
    %c0_46 = arith.constant 0 : index
    %c0_47 = arith.constant 0 : index
    %53 = vector.load %arg3[%c1_44, %c2_45, %c0_46, %c0_47] : memref<3x3x64x128xf32, #tpu.memory_space<vmem>>, vector<1x1x64x128xf32>
    %54 = vector.shape_cast %53 : vector<1x1x64x128xf32> to vector<64x128xf32>
    %cst_48 = arith.constant dense<0.000000e+00> : vector<16x128xf32>
    %55 = tpu.matmul %52, %54, %cst_48 {dimension_numbers = #tpu.dot_dimension_numbers<[1], [0], [0], [1], [0, 0, 1, 1], [], []>} : vector<16x64xf32>, vector<64x128xf32>, vector<16x128xf32> -> vector<16x128xf32>
    %56 = arith.addf %47, %55 : vector<16x128xf32>
    %c2_i32 = arith.constant 2 : i32
    %57 = arith.addi %1, %c2_i32 : i32
    %c0_49 = arith.constant 0 : index
    %58 = arith.index_cast %57 : i32 to index
    %c0_50 = arith.constant 0 : index
    %c0_51 = arith.constant 0 : index
    %59 = vector.load %arg2[%c0_49, %58, %c0_50, %c0_51] : memref<1x6x6x64xf32, #tpu.memory_space<vmem>>, vector<1x4x4x64xf32>
    %60 = vector.shape_cast %59 : vector<1x4x4x64xf32> to vector<4x4x64xf32>
    %61 = vector.shape_cast %60 : vector<4x4x64xf32> to vector<16x64xf32>
    %c2_52 = arith.constant 2 : index
    %c0_53 = arith.constant 0 : index
    %c0_54 = arith.constant 0 : index
    %c0_55 = arith.constant 0 : index
    %62 = vector.load %arg3[%c2_52, %c0_53, %c0_54, %c0_55] : memref<3x3x64x128xf32, #tpu.memory_space<vmem>>, vector<1x1x64x128xf32>
    %63 = vector.shape_cast %62 : vector<1x1x64x128xf32> to vector<64x128xf32>
    %cst_56 = arith.constant dense<0.000000e+00> : vector<16x128xf32>
    %64 = tpu.matmul %61, %63, %cst_56 {dimension_numbers = #tpu.dot_dimension_numbers<[1], [0], [0], [1], [0, 0, 1, 1], [], []>} : vector<16x64xf32>, vector<64x128xf32>, vector<16x128xf32> -> vector<16x128xf32>
    %65 = arith.addf %56, %64 : vector<16x128xf32>
    %c2_i32_57 = arith.constant 2 : i32
    %66 = arith.addi %1, %c2_i32_57 : i32
    %c0_58 = arith.constant 0 : index
    %67 = arith.index_cast %66 : i32 to index
    %c1_59 = arith.constant 1 : index
    %c0_60 = arith.constant 0 : index
    %68 = vector.load %arg2[%c0_58, %67, %c1_59, %c0_60] : memref<1x6x6x64xf32, #tpu.memory_space<vmem>>, vector<1x4x4x64xf32>
    %69 = vector.shape_cast %68 : vector<1x4x4x64xf32> to vector<4x4x64xf32>
    %70 = vector.shape_cast %69 : vector<4x4x64xf32> to vector<16x64xf32>
    %c2_61 = arith.constant 2 : index
    %c1_62 = arith.constant 1 : index
    %c0_63 = arith.constant 0 : index
    %c0_64 = arith.constant 0 : index
    %71 = vector.load %arg3[%c2_61, %c1_62, %c0_63, %c0_64] : memref<3x3x64x128xf32, #tpu.memory_space<vmem>>, vector<1x1x64x128xf32>
    %72 = vector.shape_cast %71 : vector<1x1x64x128xf32> to vector<64x128xf32>
    %cst_65 = arith.constant dense<0.000000e+00> : vector<16x128xf32>
    %73 = tpu.matmul %70, %72, %cst_65 {dimension_numbers = #tpu.dot_dimension_numbers<[1], [0], [0], [1], [0, 0, 1, 1], [], []>} : vector<16x64xf32>, vector<64x128xf32>, vector<16x128xf32> -> vector<16x128xf32>
    %74 = arith.addf %65, %73 : vector<16x128xf32>
    %c2_i32_66 = arith.constant 2 : i32
    %75 = arith.addi %1, %c2_i32_66 : i32
    %c0_67 = arith.constant 0 : index
    %76 = arith.index_cast %75 : i32 to index
    %c2_68 = arith.constant 2 : index
    %c0_69 = arith.constant 0 : index
    %77 = vector.load %arg2[%c0_67, %76, %c2_68, %c0_69] : memref<1x6x6x64xf32, #tpu.memory_space<vmem>>, vector<1x4x4x64xf32>
    %78 = vector.shape_cast %77 : vector<1x4x4x64xf32> to vector<4x4x64xf32>
    %79 = vector.shape_cast %78 : vector<4x4x64xf32> to vector<16x64xf32>
    %c2_70 = arith.constant 2 : index
    %c2_71 = arith.constant 2 : index
    %c0_72 = arith.constant 0 : index
    %c0_73 = arith.constant 0 : index
    %80 = vector.load %arg3[%c2_70, %c2_71, %c0_72, %c0_73] : memref<3x3x64x128xf32, #tpu.memory_space<vmem>>, vector<1x1x64x128xf32>
    %81 = vector.shape_cast %80 : vector<1x1x64x128xf32> to vector<64x128xf32>
    %cst_74 = arith.constant dense<0.000000e+00> : vector<16x128xf32>
    %82 = tpu.matmul %79, %81, %cst_74 {dimension_numbers = #tpu.dot_dimension_numbers<[1], [0], [0], [1], [0, 0, 1, 1], [], []>} : vector<16x64xf32>, vector<64x128xf32>, vector<16x128xf32> -> vector<16x128xf32>
    %83 = arith.addf %74, %82 : vector<16x128xf32>
    %c0_75 = arith.constant 0 : index
    %c0_76 = arith.constant 0 : index
    %84 = vector.load %arg4[%c0_75, %c0_76] : memref<1x128xf32, #tpu.memory_space<vmem>>, vector<1x128xf32>
    %85 = vector.broadcast %84 : vector<1x128xf32> to vector<16x128xf32>
    %86 = arith.addf %83, %85 : vector<16x128xf32>
    %cst_77 = arith.constant 0.000000e+00 : f32
    %87 = vector.broadcast %cst_77 : f32 to vector<16x128xf32>
    %88 = arith.maximumf %86, %87 : vector<16x128xf32>
    %89 = vector.shape_cast %88 : vector<16x128xf32> to vector<4x4x128xf32>
    %c0_78 = arith.constant 0 : index
    %c0_79 = arith.constant 0 : index
    %c0_80 = arith.constant 0 : index
    %c0_81 = arith.constant 0 : index
    %90 = vector.load %arg5[%c0_78, %c0_79, %c0_80, %c0_81] : memref<1x4x4x128xf32, #tpu.memory_space<vmem>>, vector<1x4x4x128xf32>
    %91 = vector.shape_cast %90 : vector<1x4x4x128xf32> to vector<4x4x128xf32>
    %92 = vector.shape_cast %89 : vector<4x4x128xf32> to vector<1x4x4x128xf32>
    tpu.vector_store %arg5[%c0_78, %c0_79, %c0_80, %c0_81], %92 {strides = array<i32>} : memref<1x4x4x128xf32, #tpu.memory_space<vmem>>, vector<1x4x4x128xf32>,
    return
  }
  func.func @transform_0(%arg0: i32, %arg1: i32) -> (i32, i32, i32, i32) {
    %c0_i32 = arith.constant 0 : i32
    %c0_i32_0 = arith.constant 0 : i32
    %c0_i32_1 = arith.constant 0 : i32
    %c0_i32_2 = arith.constant 0 : i32
    return %arg0, %c0_i32, %c0_i32_0, %c0_i32_1 : i32, i32, i32, i32
  }
  func.func @transform_1(%arg0: i32, %arg1: i32) -> (i32, i32, i32, i32) {
    %c0_i32 = arith.constant 0 : i32
    %c0_i32_0 = arith.constant 0 : i32
    %c0_i32_1 = arith.constant 0 : i32
    %c0_i32_2 = arith.constant 0 : i32
    %c0_i32_3 = arith.constant 0 : i32
    return %c0_i32, %c0_i32_0, %c0_i32_1, %c0_i32_2 : i32, i32, i32, i32
  }
  func.func @transform_2(%arg0: i32, %arg1: i32) -> (i32, i32) {
    %c0_i32 = arith.constant 0 : i32
    %c0_i32_0 = arith.constant 0 : i32
    %c0_i32_1 = arith.constant 0 : i32
    return %c0_i32, %c0_i32_0 : i32, i32
  }
  func.func @transform_3(%arg0: i32, %arg1: i32) -> (i32, i32, i32, i32) {
    %c0_i32 = arith.constant 0 : i32
    %c0_i32_0 = arith.constant 0 : i32
    %c0_i32_1 = arith.constant 0 : i32
    return %arg0, %arg1, %c0_i32, %c0_i32_0 : i32, i32, i32, i32
  }
}

module attributes {stable_mosaic.version = 11 : i64} {
  func.func @_maxpool2x2_kernel(%arg0: i32, %arg1: memref<1x2x2x2x256xf32, #tpu.memory_space<vmem>>, %arg2: memref<1x2x2x128xf32, #tpu.memory_space<vmem>>) attributes {dimension_semantics = [#tpu.dimension_semantics<parallel>], iteration_bounds = array<i64: 2>, scalar_prefetch = 0 : i64, scratch_operands = 0 : i64, tpu.core_type = #tpu.core_type<tc>, window_params = [{transform_indices = @transform_0, window_bounds = array<i64: 1, 2, 2, 2, 256>}, {transform_indices = @transform_1, window_bounds = array<i64: 1, 2, 2, 128>}]} {
    %c0 = arith.constant 0 : index
    %c0_0 = arith.constant 0 : index
    %c0_1 = arith.constant 0 : index
    %c0_2 = arith.constant 0 : index
    %c0_3 = arith.constant 0 : index
    %0 = vector.load %arg1[%c0, %c0_0, %c0_1, %c0_2, %c0_3] : memref<1x2x2x2x256xf32, #tpu.memory_space<vmem>>, vector<1x2x2x2x256xf32>
    %1 = vector.shape_cast %0 : vector<1x2x2x2x256xf32> to vector<2x2x2x256xf32>
    %2 = vector.extract_strided_slice %1 {offsets = [0, 0, 0, 0], sizes = [2, 1, 2, 256], strides = [1, 1, 1, 1]} : vector<2x2x2x256xf32> to vector<2x1x2x256xf32>
    %3 = vector.shape_cast %2 : vector<2x1x2x256xf32> to vector<2x2x256xf32>
    %4 = vector.extract_strided_slice %1 {offsets = [0, 1, 0, 0], sizes = [2, 1, 2, 256], strides = [1, 1, 1, 1]} : vector<2x2x2x256xf32> to vector<2x1x2x256xf32>
    %5 = vector.shape_cast %4 : vector<2x1x2x256xf32> to vector<2x2x256xf32>
    %6 = arith.maximumf %3, %5 : vector<2x2x256xf32>
    %7 = vector.extract_strided_slice %6 {offsets = [0, 0, 0], sizes = [2, 2, 128], strides = [1, 1, 1]} : vector<2x2x256xf32> to vector<2x2x128xf32>
    %8 = vector.extract_strided_slice %6 {offsets = [0, 0, 128], sizes = [2, 2, 128], strides = [1, 1, 1]} : vector<2x2x256xf32> to vector<2x2x128xf32>
    %9 = arith.maximumf %7, %8 : vector<2x2x128xf32>
    %c0_4 = arith.constant 0 : index
    %c0_5 = arith.constant 0 : index
    %c0_6 = arith.constant 0 : index
    %c0_7 = arith.constant 0 : index
    %10 = vector.load %arg2[%c0_4, %c0_5, %c0_6, %c0_7] : memref<1x2x2x128xf32, #tpu.memory_space<vmem>>, vector<1x2x2x128xf32>
    %11 = vector.shape_cast %10 : vector<1x2x2x128xf32> to vector<2x2x128xf32>
    %12 = vector.shape_cast %9 : vector<2x2x128xf32> to vector<1x2x2x128xf32>
    tpu.vector_store %arg2[%c0_4, %c0_5, %c0_6, %c0_7], %12 {strides = array<i32>} : memref<1x2x2x128xf32, #tpu.memory_space<vmem>>, vector<1x2x2x128xf32>,
    return
  }
  func.func @transform_0(%arg0: i32) -> (i32, i32, i32, i32, i32) {
    %c0_i32 = arith.constant 0 : i32
    %c0_i32_0 = arith.constant 0 : i32
    %c0_i32_1 = arith.constant 0 : i32
    %c0_i32_2 = arith.constant 0 : i32
    %c0_i32_3 = arith.constant 0 : i32
    return %arg0, %c0_i32, %c0_i32_0, %c0_i32_1, %c0_i32_2 : i32, i32, i32, i32, i32
  }
  func.func @transform_1(%arg0: i32) -> (i32, i32, i32, i32) {
    %c0_i32 = arith.constant 0 : i32
    %c0_i32_0 = arith.constant 0 : i32
    %c0_i32_1 = arith.constant 0 : i32
    %c0_i32_2 = arith.constant 0 : i32
    return %arg0, %c0_i32, %c0_i32_0, %c0_i32_1 : i32, i32, i32, i32
  }
}

module attributes {stable_mosaic.version = 11 : i64} {
  func.func @_linear_relu_kernel(%arg0: i32, %arg1: i32, %arg2: memref<2x512xbf16, #tpu.memory_space<vmem>>, %arg3: memref<512x512xbf16, #tpu.memory_space<vmem>>, %arg4: memref<1x512xf32, #tpu.memory_space<vmem>>, %arg5: memref<2x512xf32, #tpu.memory_space<vmem>>, %arg6: memref<2x512xf32, #tpu.memory_space<vmem>>) attributes {dimension_semantics = [#tpu.dimension_semantics<parallel>, #tpu.dimension_semantics<arbitrary>], iteration_bounds = array<i64: 1, 1>, scalar_prefetch = 0 : i64, scratch_operands = 1 : i64, tpu.core_type = #tpu.core_type<tc>, window_params = [{transform_indices = @transform_0, window_bounds = array<i64: 2, 512>}, {transform_indices = @transform_1, window_bounds = array<i64: 512, 512>}, {transform_indices = @transform_2, window_bounds = array<i64: 1, 512>}, {transform_indices = @transform_3, window_bounds = array<i64: 2, 512>}]} {
    %c0_i32 = arith.constant 0 : i32
    %0 = arith.cmpi eq, %arg1, %c0_i32 : i32
    %1 = arith.extui %0 : i1 to i32
    %c0_i32_0 = arith.constant 0 : i32
    %2 = arith.cmpi ne, %1, %c0_i32_0 : i32
    scf.if %2 {
      %cst_10 = arith.constant 0.000000e+00 : f32
      %12 = vector.broadcast %cst_10 : f32 to vector<2x512xf32>
      %c0_11 = arith.constant 0 : index
      %c0_12 = arith.constant 0 : index
      %13 = vector.load %arg6[%c0_11, %c0_12] : memref<2x512xf32, #tpu.memory_space<vmem>>, vector<2x512xf32>
      tpu.vector_store %arg6[%c0_11, %c0_12], %12 {strides = array<i32>} : memref<2x512xf32, #tpu.memory_space<vmem>>, vector<2x512xf32>,
    } else {
    }
    %c0 = arith.constant 0 : index
    %c0_1 = arith.constant 0 : index
    %3 = vector.load %arg6[%c0, %c0_1] : memref<2x512xf32, #tpu.memory_space<vmem>>, vector<2x512xf32>
    %c0_2 = arith.constant 0 : index
    %c0_3 = arith.constant 0 : index
    %4 = vector.load %arg2[%c0_2, %c0_3] : memref<2x512xbf16, #tpu.memory_space<vmem>>, vector<2x512xbf16>
    %c0_4 = arith.constant 0 : index
    %c0_5 = arith.constant 0 : index
    %5 = vector.load %arg3[%c0_4, %c0_5] : memref<512x512xbf16, #tpu.memory_space<vmem>>, vector<512x512xbf16>
    %cst = arith.constant dense<0.000000e+00> : vector<2x512xf32>
    %6 = tpu.matmul %4, %5, %cst {dimension_numbers = #tpu.dot_dimension_numbers<[1], [0], [0], [1], [0, 0, 1, 1], [], []>} : vector<2x512xbf16>, vector<512x512xbf16>, vector<2x512xf32> -> vector<2x512xf32>
    %7 = arith.addf %3, %6 : vector<2x512xf32>
    %c0_6 = arith.constant 0 : index
    %c0_7 = arith.constant 0 : index
    %8 = vector.load %arg6[%c0_6, %c0_7] : memref<2x512xf32, #tpu.memory_space<vmem>>, vector<2x512xf32>
    tpu.vector_store %arg6[%c0_6, %c0_7], %7 {strides = array<i32>} : memref<2x512xf32, #tpu.memory_space<vmem>>, vector<2x512xf32>,
    %c0_i32_8 = arith.constant 0 : i32
    %9 = arith.cmpi eq, %arg1, %c0_i32_8 : i32
    %10 = arith.extui %9 : i1 to i32
    %c0_i32_9 = arith.constant 0 : i32
    %11 = arith.cmpi ne, %10, %c0_i32_9 : i32
    scf.if %11 {
      %c0_10 = arith.constant 0 : index
      %c0_11 = arith.constant 0 : index
      %12 = vector.load %arg6[%c0_10, %c0_11] : memref<2x512xf32, #tpu.memory_space<vmem>>, vector<2x512xf32>
      %c0_12 = arith.constant 0 : index
      %c0_13 = arith.constant 0 : index
      %13 = vector.load %arg4[%c0_12, %c0_13] : memref<1x512xf32, #tpu.memory_space<vmem>>, vector<1x512xf32>
      %14 = vector.broadcast %13 : vector<1x512xf32> to vector<2x512xf32>
      %15 = arith.addf %12, %14 : vector<2x512xf32>
      %cst_14 = arith.constant 0.000000e+00 : f32
      %16 = vector.broadcast %cst_14 : f32 to vector<2x512xf32>
      %17 = arith.maximumf %15, %16 : vector<2x512xf32>
      %c0_15 = arith.constant 0 : index
      %c0_16 = arith.constant 0 : index
      %18 = vector.load %arg5[%c0_15, %c0_16] : memref<2x512xf32, #tpu.memory_space<vmem>>, vector<2x512xf32>
      tpu.vector_store %arg5[%c0_15, %c0_16], %17 {strides = array<i32>} : memref<2x512xf32, #tpu.memory_space<vmem>>, vector<2x512xf32>,
    } else {
    }
    return
  }
  func.func @transform_0(%arg0: i32, %arg1: i32) -> (i32, i32) {
    %c0_i32 = arith.constant 0 : i32
    %c0_i32_0 = arith.constant 0 : i32
    return %c0_i32, %arg1 : i32, i32
  }
  func.func @transform_1(%arg0: i32, %arg1: i32) -> (i32, i32) {
    %c0_i32 = arith.constant 0 : i32
    return %arg1, %arg0 : i32, i32
  }
  func.func @transform_2(%arg0: i32, %arg1: i32) -> (i32, i32) {
    %c0_i32 = arith.constant 0 : i32
    %c0_i32_0 = arith.constant 0 : i32
    return %c0_i32, %arg0 : i32, i32
  }
  func.func @transform_3(%arg0: i32, %arg1: i32) -> (i32, i32) {
    %c0_i32 = arith.constant 0 : i32
    %c0_i32_0 = arith.constant 0 : i32
    return %c0_i32, %arg0 : i32, i32
  }
}

module attributes {stable_mosaic.version = 11 : i64} {
  func.func @_convt2x2_kernel(%arg0: i32, %arg1: memref<1x2x2x128xf32, #tpu.memory_space<vmem>>, %arg2: memref<128x256xf32, #tpu.memory_space<vmem>>, %arg3: memref<1x256xf32, #tpu.memory_space<vmem>>, %arg4: memref<1x2x2x256xf32, #tpu.memory_space<vmem>>) attributes {dimension_semantics = [#tpu.dimension_semantics<parallel>], iteration_bounds = array<i64: 2>, scalar_prefetch = 0 : i64, scratch_operands = 0 : i64, tpu.core_type = #tpu.core_type<tc>, window_params = [{transform_indices = @transform_0, window_bounds = array<i64: 1, 2, 2, 128>}, {pipeline_mode = #tpu.pipeline_mode<synchronous>, transform_indices = @transform_1, window_bounds = array<i64: 128, 256>}, {pipeline_mode = #tpu.pipeline_mode<synchronous>, transform_indices = @transform_2, window_bounds = array<i64: 1, 256>}, {transform_indices = @transform_3, window_bounds = array<i64: 1, 2, 2, 256>}]} {
    %c0 = arith.constant 0 : index
    %c0_0 = arith.constant 0 : index
    %c0_1 = arith.constant 0 : index
    %c0_2 = arith.constant 0 : index
    %0 = vector.load %arg1[%c0, %c0_0, %c0_1, %c0_2] : memref<1x2x2x128xf32, #tpu.memory_space<vmem>>, vector<1x2x2x128xf32>
    %1 = vector.shape_cast %0 : vector<1x2x2x128xf32> to vector<2x2x128xf32>
    %2 = vector.shape_cast %1 : vector<2x2x128xf32> to vector<4x128xf32>
    %c0_3 = arith.constant 0 : index
    %c0_4 = arith.constant 0 : index
    %3 = vector.load %arg2[%c0_3, %c0_4] : memref<128x256xf32, #tpu.memory_space<vmem>>, vector<128x256xf32>
    %cst = arith.constant dense<0.000000e+00> : vector<4x256xf32>
    %4 = tpu.matmul %2, %3, %cst {dimension_numbers = #tpu.dot_dimension_numbers<[1], [0], [0], [1], [0, 0, 1, 1], [], []>} : vector<4x128xf32>, vector<128x256xf32>, vector<4x256xf32> -> vector<4x256xf32>
    %c0_5 = arith.constant 0 : index
    %c0_6 = arith.constant 0 : index
    %5 = vector.load %arg3[%c0_5, %c0_6] : memref<1x256xf32, #tpu.memory_space<vmem>>, vector<1x256xf32>
    %6 = vector.broadcast %5 : vector<1x256xf32> to vector<4x256xf32>
    %7 = arith.addf %4, %6 : vector<4x256xf32>
    %cst_7 = arith.constant 0.000000e+00 : f32
    %8 = vector.broadcast %cst_7 : f32 to vector<4x256xf32>
    %9 = arith.maximumf %7, %8 : vector<4x256xf32>
    %10 = vector.shape_cast %9 : vector<4x256xf32> to vector<2x2x256xf32>
    %c0_8 = arith.constant 0 : index
    %c0_9 = arith.constant 0 : index
    %c0_10 = arith.constant 0 : index
    %c0_11 = arith.constant 0 : index
    %11 = vector.load %arg4[%c0_8, %c0_9, %c0_10, %c0_11] : memref<1x2x2x256xf32, #tpu.memory_space<vmem>>, vector<1x2x2x256xf32>
    %12 = vector.shape_cast %11 : vector<1x2x2x256xf32> to vector<2x2x256xf32>
    %13 = vector.shape_cast %10 : vector<2x2x256xf32> to vector<1x2x2x256xf32>
    tpu.vector_store %arg4[%c0_8, %c0_9, %c0_10, %c0_11], %13 {strides = array<i32>} : memref<1x2x2x256xf32, #tpu.memory_space<vmem>>, vector<1x2x2x256xf32>,
    return
  }
  func.func @transform_0(%arg0: i32) -> (i32, i32, i32, i32) {
    %c0_i32 = arith.constant 0 : i32
    %c0_i32_0 = arith.constant 0 : i32
    %c0_i32_1 = arith.constant 0 : i32
    %c0_i32_2 = arith.constant 0 : i32
    return %arg0, %c0_i32, %c0_i32_0, %c0_i32_1 : i32, i32, i32, i32
  }
  func.func @transform_1(%arg0: i32) -> (i32, i32) {
    %c0_i32 = arith.constant 0 : i32
    %c0_i32_0 = arith.constant 0 : i32
    %c0_i32_1 = arith.constant 0 : i32
    return %c0_i32, %c0_i32_0 : i32, i32
  }
  func.func @transform_2(%arg0: i32) -> (i32, i32) {
    %c0_i32 = arith.constant 0 : i32
    %c0_i32_0 = arith.constant 0 : i32
    %c0_i32_1 = arith.constant 0 : i32
    return %c0_i32, %c0_i32_0 : i32, i32
  }
  func.func @transform_3(%arg0: i32) -> (i32, i32, i32, i32) {
    %c0_i32 = arith.constant 0 : i32
    %c0_i32_0 = arith.constant 0 : i32
    %c0_i32_1 = arith.constant 0 : i32
    %c0_i32_2 = arith.constant 0 : i32
    return %arg0, %c0_i32, %c0_i32_0, %c0_i32_1 : i32, i32, i32, i32
  }
}

module attributes {stable_mosaic.version = 11 : i64} {
  func.func @_convt2x2_kernel(%arg0: i32, %arg1: memref<1x4x4x64xf32, #tpu.memory_space<vmem>>, %arg2: memref<64x128xf32, #tpu.memory_space<vmem>>, %arg3: memref<1x128xf32, #tpu.memory_space<vmem>>, %arg4: memref<1x4x4x128xf32, #tpu.memory_space<vmem>>) attributes {dimension_semantics = [#tpu.dimension_semantics<parallel>], iteration_bounds = array<i64: 2>, scalar_prefetch = 0 : i64, scratch_operands = 0 : i64, tpu.core_type = #tpu.core_type<tc>, window_params = [{transform_indices = @transform_0, window_bounds = array<i64: 1, 4, 4, 64>}, {pipeline_mode = #tpu.pipeline_mode<synchronous>, transform_indices = @transform_1, window_bounds = array<i64: 64, 128>}, {pipeline_mode = #tpu.pipeline_mode<synchronous>, transform_indices = @transform_2, window_bounds = array<i64: 1, 128>}, {transform_indices = @transform_3, window_bounds = array<i64: 1, 4, 4, 128>}]} {
    %c0 = arith.constant 0 : index
    %c0_0 = arith.constant 0 : index
    %c0_1 = arith.constant 0 : index
    %c0_2 = arith.constant 0 : index
    %0 = vector.load %arg1[%c0, %c0_0, %c0_1, %c0_2] : memref<1x4x4x64xf32, #tpu.memory_space<vmem>>, vector<1x4x4x64xf32>
    %1 = vector.shape_cast %0 : vector<1x4x4x64xf32> to vector<4x4x64xf32>
    %2 = vector.shape_cast %1 : vector<4x4x64xf32> to vector<16x64xf32>
    %c0_3 = arith.constant 0 : index
    %c0_4 = arith.constant 0 : index
    %3 = vector.load %arg2[%c0_3, %c0_4] : memref<64x128xf32, #tpu.memory_space<vmem>>, vector<64x128xf32>
    %cst = arith.constant dense<0.000000e+00> : vector<16x128xf32>
    %4 = tpu.matmul %2, %3, %cst {dimension_numbers = #tpu.dot_dimension_numbers<[1], [0], [0], [1], [0, 0, 1, 1], [], []>} : vector<16x64xf32>, vector<64x128xf32>, vector<16x128xf32> -> vector<16x128xf32>
    %c0_5 = arith.constant 0 : index
    %c0_6 = arith.constant 0 : index
    %5 = vector.load %arg3[%c0_5, %c0_6] : memref<1x128xf32, #tpu.memory_space<vmem>>, vector<1x128xf32>
    %6 = vector.broadcast %5 : vector<1x128xf32> to vector<16x128xf32>
    %7 = arith.addf %4, %6 : vector<16x128xf32>
    %cst_7 = arith.constant 0.000000e+00 : f32
    %8 = vector.broadcast %cst_7 : f32 to vector<16x128xf32>
    %9 = arith.maximumf %7, %8 : vector<16x128xf32>
    %10 = vector.shape_cast %9 : vector<16x128xf32> to vector<4x4x128xf32>
    %c0_8 = arith.constant 0 : index
    %c0_9 = arith.constant 0 : index
    %c0_10 = arith.constant 0 : index
    %c0_11 = arith.constant 0 : index
    %11 = vector.load %arg4[%c0_8, %c0_9, %c0_10, %c0_11] : memref<1x4x4x128xf32, #tpu.memory_space<vmem>>, vector<1x4x4x128xf32>
    %12 = vector.shape_cast %11 : vector<1x4x4x128xf32> to vector<4x4x128xf32>
    %13 = vector.shape_cast %10 : vector<4x4x128xf32> to vector<1x4x4x128xf32>
    tpu.vector_store %arg4[%c0_8, %c0_9, %c0_10, %c0_11], %13 {strides = array<i32>} : memref<1x4x4x128xf32, #tpu.memory_space<vmem>>, vector<1x4x4x128xf32>,
    return
  }
  func.func @transform_0(%arg0: i32) -> (i32, i32, i32, i32) {
    %c0_i32 = arith.constant 0 : i32
    %c0_i32_0 = arith.constant 0 : i32
    %c0_i32_1 = arith.constant 0 : i32
    %c0_i32_2 = arith.constant 0 : i32
    return %arg0, %c0_i32, %c0_i32_0, %c0_i32_1 : i32, i32, i32, i32
  }
  func.func @transform_1(%arg0: i32) -> (i32, i32) {
    %c0_i32 = arith.constant 0 : i32
    %c0_i32_0 = arith.constant 0 : i32
    %c0_i32_1 = arith.constant 0 : i32
    return %c0_i32, %c0_i32_0 : i32, i32
  }
  func.func @transform_2(%arg0: i32) -> (i32, i32) {
    %c0_i32 = arith.constant 0 : i32
    %c0_i32_0 = arith.constant 0 : i32
    %c0_i32_1 = arith.constant 0 : i32
    return %c0_i32, %c0_i32_0 : i32, i32
  }
  func.func @transform_3(%arg0: i32) -> (i32, i32, i32, i32) {
    %c0_i32 = arith.constant 0 : i32
    %c0_i32_0 = arith.constant 0 : i32
    %c0_i32_1 = arith.constant 0 : i32
    %c0_i32_2 = arith.constant 0 : i32
    return %arg0, %c0_i32, %c0_i32_0, %c0_i32_1 : i32, i32, i32, i32
  }
}

module attributes {stable_mosaic.version = 11 : i64} {
  func.func @_convt2x2_kernel(%arg0: i32, %arg1: memref<1x8x8x32xf32, #tpu.memory_space<vmem>>, %arg2: memref<32x12xf32, #tpu.memory_space<vmem>>, %arg3: memref<1x12xf32, #tpu.memory_space<vmem>>, %arg4: memref<1x8x8x12xf32, #tpu.memory_space<vmem>>) attributes {dimension_semantics = [#tpu.dimension_semantics<parallel>], iteration_bounds = array<i64: 2>, scalar_prefetch = 0 : i64, scratch_operands = 0 : i64, tpu.core_type = #tpu.core_type<tc>, window_params = [{transform_indices = @transform_0, window_bounds = array<i64: 1, 8, 8, 32>}, {pipeline_mode = #tpu.pipeline_mode<synchronous>, transform_indices = @transform_1, window_bounds = array<i64: 32, 12>}, {pipeline_mode = #tpu.pipeline_mode<synchronous>, transform_indices = @transform_2, window_bounds = array<i64: 1, 12>}, {transform_indices = @transform_3, window_bounds = array<i64: 1, 8, 8, 12>}]} {
    %c0 = arith.constant 0 : index
    %c0_0 = arith.constant 0 : index
    %c0_1 = arith.constant 0 : index
    %c0_2 = arith.constant 0 : index
    %0 = vector.load %arg1[%c0, %c0_0, %c0_1, %c0_2] : memref<1x8x8x32xf32, #tpu.memory_space<vmem>>, vector<1x8x8x32xf32>
    %1 = vector.shape_cast %0 : vector<1x8x8x32xf32> to vector<8x8x32xf32>
    %2 = vector.shape_cast %1 : vector<8x8x32xf32> to vector<64x32xf32>
    %c0_3 = arith.constant 0 : index
    %c0_4 = arith.constant 0 : index
    %3 = vector.load %arg2[%c0_3, %c0_4] : memref<32x12xf32, #tpu.memory_space<vmem>>, vector<32x12xf32>
    %cst = arith.constant dense<0.000000e+00> : vector<64x12xf32>
    %4 = tpu.matmul %2, %3, %cst {dimension_numbers = #tpu.dot_dimension_numbers<[1], [0], [0], [1], [0, 0, 1, 1], [], []>} : vector<64x32xf32>, vector<32x12xf32>, vector<64x12xf32> -> vector<64x12xf32>
    %c0_5 = arith.constant 0 : index
    %c0_6 = arith.constant 0 : index
    %5 = vector.load %arg3[%c0_5, %c0_6] : memref<1x12xf32, #tpu.memory_space<vmem>>, vector<1x12xf32>
    %6 = vector.broadcast %5 : vector<1x12xf32> to vector<64x12xf32>
    %7 = arith.addf %4, %6 : vector<64x12xf32>
    %cst_7 = arith.constant 0.000000e+00 : f32
    %8 = vector.broadcast %cst_7 : f32 to vector<64x12xf32>
    %9 = arith.subf %8, %7 : vector<64x12xf32>
    %10 = math.exp %9 : vector<64x12xf32>
    %cst_8 = arith.constant 1.000000e+00 : f32
    %11 = vector.broadcast %cst_8 : f32 to vector<64x12xf32>
    %12 = arith.addf %11, %10 : vector<64x12xf32>
    %cst_9 = arith.constant 1.000000e+00 : f32
    %13 = vector.broadcast %cst_9 : f32 to vector<64x12xf32>
    %14 = arith.divf %13, %12 : vector<64x12xf32>
    %15 = vector.shape_cast %14 : vector<64x12xf32> to vector<8x8x12xf32>
    %c0_10 = arith.constant 0 : index
    %c0_11 = arith.constant 0 : index
    %c0_12 = arith.constant 0 : index
    %c0_13 = arith.constant 0 : index
    %16 = vector.load %arg4[%c0_10, %c0_11, %c0_12, %c0_13] : memref<1x8x8x12xf32, #tpu.memory_space<vmem>>, vector<1x8x8x12xf32>
    %17 = vector.shape_cast %16 : vector<1x8x8x12xf32> to vector<8x8x12xf32>
    %18 = vector.shape_cast %15 : vector<8x8x12xf32> to vector<1x8x8x12xf32>
    tpu.vector_store %arg4[%c0_10, %c0_11, %c0_12, %c0_13], %18 {strides = array<i32>} : memref<1x8x8x12xf32, #tpu.memory_space<vmem>>, vector<1x8x8x12xf32>,
    return
  }
  func.func @transform_0(%arg0: i32) -> (i32, i32, i32, i32) {
    %c0_i32 = arith.constant 0 : i32
    %c0_i32_0 = arith.constant 0 : i32
    %c0_i32_1 = arith.constant 0 : i32
    %c0_i32_2 = arith.constant 0 : i32
    return %arg0, %c0_i32, %c0_i32_0, %c0_i32_1 : i32, i32, i32, i32
  }
  func.func @transform_1(%arg0: i32) -> (i32, i32) {
    %c0_i32 = arith.constant 0 : i32
    %c0_i32_0 = arith.constant 0 : i32
    %c0_i32_1 = arith.constant 0 : i32
    return %c0_i32, %c0_i32_0 : i32, i32
  }
  func.func @transform_2(%arg0: i32) -> (i32, i32) {
    %c0_i32 = arith.constant 0 : i32
    %c0_i32_0 = arith.constant 0 : i32
    %c0_i32_1 = arith.constant 0 : i32
    return %c0_i32, %c0_i32_0 : i32, i32
  }
  func.func @transform_3(%arg0: i32) -> (i32, i32, i32, i32) {
    %c0_i32 = arith.constant 0 : i32
    %c0_i32_0 = arith.constant 0 : i32
    %c0_i32_1 = arith.constant 0 : i32
    %c0_i32_2 = arith.constant 0 : i32
    return %arg0, %c0_i32, %c0_i32_0, %c0_i32_1 : i32, i32, i32, i32
  }
}

</mosaic_0001>

<bundles_post_ra>
// kernel: autoencoder_forward.11
= control target key start
LH: loop header
LB: loop body
LE: loop exit
PB: predicated region body
PF: predicated region fallthrough
CT: control target
= control target key end

     0   :  { %s286_s6 = smov 0   ;;  %s315_s0 = inlined_call_operand.vmem [shape: f32[2,8,2,8,64], index: 0, kind: input, shape index: {}]   ;;  %s316_s1 = inlined_call_operand.vmem [shape: f32[2,8,8,32], index: 1, kind: output, shape index: {}]  }
   0x1 LB: > { %s245_s7 = sadd.s32 4294967295, %s273_s6   ;;  %p249_p0 = scmp.ge.s32.totalorder %s273_s6, 1  ;;  %s273_s6 = sphi %s286_s6, %s11_s6  }
   0x2   : > { %p87_p1 = scmp.lt.s32.totalorder %s273_s6, 3 }
   0x4   : > { %p88_p2 = pnand %p249_p0, %p87_p1 }
   0x5   : > { %p107_p3 = scmp.lt.s32.totalorder (!%p88_p2), %s245_s7, 1  ;;  %s275_s12 = smov (!%p88_p2), 96   ;;  %vm181_vm0 = vcmask (!%p88_p2), 261120  }
   0x6   : > { %91 = sbr.rel (%p88_p2) target bundleno = 150 (0x96), region = 24 }
   0xd   : > { %s318_s7 = smov (!%p107_p3, %s245_s7), 1 }
   0xe   : > { %s256_s8 = sshll.u32 %s318_s7, 7  ;;  %s257_s13 = sshll.u32 %s318_s7, 6 }
   0xf   : > { %s111_s11 = scalar_lea.vmem %s315_s0, %s256_s8  ;;  %s116_s16 = scalar_lea.vmem %s316_s1, %s257_s13 }
  0x10   : > { %v121_v0 = vld [vmem:[%s111_s11 + $0x20] sm:$0xff]  ;;  %v122_v1 = vld [vmem:[%s111_s11 + $0x28] sm:$0xff]  ;;  %v123_v5 = vld [vmem:[%s111_s11 + $0x30] sm:$0xff] }
  0x11   : > { %v117_v2 = vld [vmem:[%s111_s11] sm:$0xff]  ;;  %v135_v3 = vmax.f32 %v121_v0, %v122_v1  ;;  %v118_v4 = vld [vmem:[%s111_s11 + $0x8] sm:$0xff]  ;;  %v124_v6 = vld [vmem:[%s111_s11 + $0x38] sm:$0xff] }
  0x12   : > { %v133_v7 = vmax.f32 %v117_v2, %v118_v4  ;;  %v119_v8 = vld [vmem:[%s111_s11 + $0x10] sm:$0xff]  ;;  %v120_v9 = vld [vmem:[%s111_s11 + $0x18] sm:$0xff]  ;;  %v136_v10 = vmax.f32 %v123_v5, %v124_v6  ;;  %v125_v14 = vld [vmem:[%s111_s11 + $0x40] sm:$0xff] }
  0x13   : > { %153 = vrot.lane.b32.xlu1 %v135_v3, %s275_s12  ;;  %v134_v11 = vmax.f32 %v119_v8, %v120_v9  ;;  %v127_v12 = vld [vmem:[%s111_s11 + $0x50] sm:$0xff]  ;;  %v128_v13 = vld [vmem:[%s111_s11 + $0x58] sm:$0xff]  ;;  %v126_v15 = vld [vmem:[%s111_s11 + $0x48] sm:$0xff] }
  0x14   : > { %149 = vrot.lane.b32.xlu0 %v133_v7, %s275_s12  ;;  %v138_v16 = vmax.f32 %v127_v12, %v128_v13  ;;  %v137_v17 = vmax.f32 %v125_v14, %v126_v15  ;;  %v131_v18 = vld [vmem:[%s111_s11 + $0x70] sm:$0xff]  ;;  %v132_v19 = vld [vmem:[%s111_s11 + $0x78] sm:$0xff]  ;;  %v129_v20 = vld [vmem:[%s111_s11 + $0x60] sm:$0xff] }
  0x15   : > { %v130_v21 = vld [vmem:[%s111_s11 + $0x68] sm:$0xff]  ;;  %v140_v22 = vmax.f32 %v131_v18, %v132_v19 }
  0x16   : > { %v139_v23 = vmax.f32 %v129_v20, %v130_v21 }
  0x17   : > { %155 = vrot.lane.b32.xlu1 %v136_v10, %s275_s12 }
  0x18   : > { %151 = vrot.lane.b32.xlu0 %v134_v11, %s275_s12 }
  0x1b   : > { %159 = vrot.lane.b32.xlu1 %v138_v16, %s275_s12 }
  0x1c   : > { %157 = vrot.lane.b32.xlu0 %v137_v17, %s275_s12 }
  0x1f   : > { %163 = vrot.lane.b32.xlu1 %v140_v22, %s275_s12 }
  0x20   : > { %161 = vrot.lane.b32.xlu0 %v139_v23, %s275_s12 }
  0x85   : > { %v154_v24 = vpop.permute.xlu1 %153 }
  0x86   : > { %v175_v25 = vmax.f32 %v135_v3, %v154_v24  ;;  %v150_v26 = vpop.permute.xlu0 %149 }
  0x87   : > { %v173_v27 = vmax.f32 %v133_v7, %v150_v26 }
  0x88   : > { %184 = vst.msk [vmem:[%s116_s16 + $0x10] sm:$0xff] %vm181_vm0, %v175_v25 }
  0x89   : > { %182 = vst.msk [vmem:[%s116_s16] sm:$0xff] %vm181_vm0, %v173_v27  ;;  %v156_v28 = vpop.permute.xlu1 %155 }
  0x8a   : > { %v176_v29 = vmax.f32 %v136_v10, %v156_v28  ;;  %v152_v30 = vpop.permute.xlu0 %151 }
  0x8b   : > { %v174_v31 = vmax.f32 %v134_v11, %v152_v30 }
  0x8c   : > { %185 = vst.msk [vmem:[%s116_s16 + $0x18] sm:$0xff] %vm181_vm0, %v176_v29 }
  0x8d   : > { %183 = vst.msk [vmem:[%s116_s16 + $0x8] sm:$0xff] %vm181_vm0, %v174_v31  ;;  %v160_v32 = vpop.permute.xlu1 %159 }
  0x8e   : > { %v178_v33 = vmax.f32 %v138_v16, %v160_v32  ;;  %v158_v34 = vpop.permute.xlu0 %157 }
  0x8f   : > { %v177_v35 = vmax.f32 %v137_v17, %v158_v34 }
  0x90   : > { %187 = vst.msk [vmem:[%s116_s16 + $0x28] sm:$0xff] %vm181_vm0, %v178_v33 }
  0x91   : > { %186 = vst.msk [vmem:[%s116_s16 + $0x20] sm:$0xff] %vm181_vm0, %v177_v35  ;;  %v164_v36 = vpop.permute.xlu1 %163 }
  0x92   : > { %v180_v37 = vmax.f32 %v140_v22, %v164_v36  ;;  %v162_v38 = vpop.permute.xlu0 %161 }
  0x93   : > { %v179_v39 = vmax.f32 %v139_v23, %v162_v38 }
  0x94   : > { %189 = vst.msk [vmem:[%s116_s16 + $0x38] sm:$0xff] %vm181_vm0, %v180_v37 }
  0x95   : > { %188 = vst.msk [vmem:[%s116_s16 + $0x30] sm:$0xff] %vm181_vm0, %v179_v39 }
  0x96 PF: > { %s11_s6 = sadd.s32 1, %s273_s6  }
  0x97   : > { %p8_p4 = scmp.ge.s32.totalorder %s11_s6, 4  }
  0x99   :  { %10 = sbr.rel (!%p8_p4) target bundleno = 1 (0x1), region = 54 }

// kernel: autoencoder_forward.13
= control target key start
LH: loop header
LB: loop body
LE: loop exit
PB: predicated region body
PF: predicated region fallthrough
CT: control target
= control target key end

     0   :  { %s250_s6 = smov 0   ;;  %s267_s0 = inlined_call_operand.vmem [shape: f32[2,4,2,4,128], index: 0, kind: input, shape index: {}]   ;;  %s268_s1 = inlined_call_operand.vmem [shape: f32[2,4,4,64], index: 1, kind: output, shape index: {}]  }
   0x1 LB: > { %s209_s7 = sadd.s32 4294967295, %s237_s6   ;;  %p213_p0 = scmp.ge.s32.totalorder %s237_s6, 1  ;;  %s237_s6 = sphi %s250_s6, %s11_s6  }
   0x2   : > { %p87_p1 = scmp.lt.s32.totalorder %s237_s6, 3 }
   0x4   : > { %p88_p2 = pnand %p213_p0, %p87_p1 }
   0x5   : > { %p107_p3 = scmp.lt.s32.totalorder (!%p88_p2), %s209_s7, 1  ;;  %s239_s12 = smov (!%p88_p2), 64   ;;  %vm149_vm0 = vcmask (!%p88_p2), 519168  }
   0x6   : > { %91 = sbr.rel (%p88_p2) target bundleno = 142 (0x8e), region = 24 }
   0xd   : > { %s270_s7 = smov (!%p107_p3, %s209_s7), 1 }
   0xe   : > { %s220_s8 = sshll.u32 %s270_s7, 5  ;;  %s221_s13 = sshll.u32 %s270_s7, 4 }
   0xf   : > { %s111_s11 = scalar_lea.vmem %s267_s0, %s220_s8  ;;  %s116_s16 = scalar_lea.vmem %s268_s1, %s221_s13 }
  0x10   : > { %v121_v0 = vld [vmem:[%s111_s11 + $0x10] sm:$0xf]  ;;  %v122_v1 = vld [vmem:[%s111_s11 + $0x14] sm:$0xf]  ;;  %v117_v2 = vld [vmem:[%s111_s11] sm:$0xf] }
  0x11   : > { %v127_v3 = vmax.f32 %v121_v0, %v122_v1  ;;  %v118_v4 = vld [vmem:[%s111_s11 + $0x4] sm:$0xf]  ;;  %v123_v5 = vld [vmem:[%s111_s11 + $0x18] sm:$0xf]  ;;  %v124_v6 = vld [vmem:[%s111_s11 + $0x1c] sm:$0xf] }
  0x12   : > { %v125_v7 = vmax.f32 %v117_v2, %v118_v4  ;;  %v119_v8 = vld [vmem:[%s111_s11 + $0x8] sm:$0xf]  ;;  %v120_v9 = vld [vmem:[%s111_s11 + $0xc] sm:$0xf]  ;;  %v128_v10 = vmax.f32 %v123_v5, %v124_v6 }
  0x13   : > { %137 = vrot.lane.b32.xlu1 %v127_v3, %s239_s12  ;;  %v126_v11 = vmax.f32 %v119_v8, %v120_v9 }
  0x14   : > { %133 = vrot.lane.b32.xlu0 %v125_v7, %s239_s12 }
  0x17   : > { %139 = vrot.lane.b32.xlu1 %v128_v10, %s239_s12 }
  0x18   : > { %135 = vrot.lane.b32.xlu0 %v126_v11, %s239_s12 }
  0x85   : > { %v138_v12 = vpop.permute.xlu1 %137 }
  0x86   : > { %v147_v13 = vmax.f32 %v127_v3, %v138_v12  ;;  %v134_v14 = vpop.permute.xlu0 %133 }
  0x87   : > { %v145_v15 = vmax.f32 %v125_v7, %v134_v14 }
  0x88   : > { %152 = vst.msk [vmem:[%s116_s16 + $0x8] sm:$0xf] %vm149_vm0, %v147_v13 }
  0x89   : > { %150 = vst.msk [vmem:[%s116_s16] sm:$0xf] %vm149_vm0, %v145_v15  ;;  %v140_v16 = vpop.permute.xlu1 %139 }
  0x8a   : > { %v148_v17 = vmax.f32 %v128_v10, %v140_v16  ;;  %v136_v18 = vpop.permute.xlu0 %135 }
  0x8b   : > { %v146_v19 = vmax.f32 %v126_v11, %v136_v18 }
  0x8c   : > { %153 = vst.msk [vmem:[%s116_s16 + $0xc] sm:$0xf] %vm149_vm0, %v148_v17 }
  0x8d   : > { %151 = vst.msk [vmem:[%s116_s16 + $0x4] sm:$0xf] %vm149_vm0, %v146_v19 }
  0x8e PF: > { %s11_s6 = sadd.s32 1, %s237_s6  }
  0x8f   : > { %p8_p4 = scmp.ge.s32.totalorder %s11_s6, 4  }
  0x91   :  { %10 = sbr.rel (!%p8_p4) target bundleno = 1 (0x1), region = 54 }

// kernel: autoencoder_forward.15
= control target key start
LH: loop header
LB: loop body
LE: loop exit
PB: predicated region body
PF: predicated region fallthrough
CT: control target
= control target key end

     0   :  { %s227_s6 = smov 0   ;;  %s238_s0 = inlined_call_operand.vmem [shape: f32[2,2,2,2,256], index: 0, kind: input, shape index: {}]   ;;  %s239_s1 = inlined_call_operand.vmem [shape: f32[2,2,2,128], index: 1, kind: output, shape index: {}]  }
   0x1 LB: > { %s188_s7 = sadd.s32 4294967295, %s215_s6   ;;  %p192_p0 = scmp.ge.s32.totalorder %s215_s6, 1  ;;  %s215_s6 = sphi %s227_s6, %s11_s6  }
   0x2   : > { %p87_p1 = scmp.lt.s32.totalorder %s215_s6, 3 }
   0x4   : > { %p88_p2 = pnand %p192_p0, %p87_p1 }
   0x5   : > { %p107_p3 = scmp.lt.s32.totalorder (!%p88_p2), %s188_s7, 1 }
   0x6   : > { %91 = sbr.rel (%p88_p2) target bundleno = 25 (0x19), region = 24 }
   0xd   : > { %s241_s7 = smov (!%p107_p3, %s188_s7), 1 }
   0xe   : > { %s199_s8 = sshll.u32 %s241_s7, 4  ;;  %s200_s12 = sshll.u32 %s241_s7, 2 }
   0xf   : > { %s111_s11 = scalar_lea.vmem %s238_s0, %s199_s8  ;;  %s116_s15 = scalar_lea.vmem %s239_s1, %s200_s12 }
  0x10   : > { %v117_v0 = vld [vmem:[%s111_s11] sm:$0xf]  ;;  %v118_v1 = vld [vmem:[%s111_s11 + $0x4] sm:$0xf]  ;;  %v119_v2 = vld [vmem:[%s111_s11 + $0x8] sm:$0xf] }
  0x11   : > { %v121_v3 = vmax.f32 %v117_v0, %v118_v1  ;;  %v120_v4 = vld [vmem:[%s111_s11 + $0xc] sm:$0xf] }
  0x12   : > { %v122_v5 = vmax.f32 %v119_v2, %v120_v4 }
  0x13   : > { %v125_v6 = vrot.slane %v121_v3, 2 }
  0x14   : > { %v126_v7 = vrot.slane %v122_v5, 2 }
  0x15   : > { %v129_v8 = vmax.f32 %v121_v3, %v125_v6 }
  0x16   : > { %v130_v9 = vmax.f32 %v122_v5, %v126_v7 }
  0x17   : > { %131 = vst [vmem:[%s116_s15] sm:$0x3] %v129_v8 }
  0x18   : > { %132 = vst [vmem:[%s116_s15 + $0x2] sm:$0x3] %v130_v9 }
  0x19 PF: > { %s11_s6 = sadd.s32 1, %s215_s6  }
  0x1a   : > { %p8_p4 = scmp.ge.s32.totalorder %s11_s6, 4  }
  0x1c   :  { %10 = sbr.rel (!%p8_p4) target bundleno = 1 (0x1), region = 54 }

// kernel: autoencoder_forward.10
= control target key start
LH: loop header
LB: loop body
LE: loop exit
PB: predicated region body
PF: predicated region fallthrough
CT: control target
= control target key end

     0   :  { %s3257_s12 = smov 0   ;;  %s3259_s13 = smov 0   ;;  %s3826_s0 = inlined_call_operand.vmem [shape: f32[2,18,18,8], index: 0, kind: input, shape index: {}]   ;;  %s3827_s1 = inlined_call_operand.vmem [shape: f32[3,3,8,32], index: 1, kind: input, shape index: {}]   ;;  %s3828_s2 = inlined_call_operand.vmem [shape: f32[1,32], index: 2, kind: input, shape index: {}]   ;;  %s3829_s3 = inlined_call_operand.vmem [shape: f32[2,16,16,32], index: 3, kind: output, shape index: {}]  }
   0x1   :  { %s3261_s14 = smov 0   ;;  %s3263_s15 = smov 0  }
   0x2   :  { %s3265_s16 = smov 0  }
   0x3 LB: > { %s22_s17 = sadd.s32 1, %s3227_s14  ;;  %s25_s18 = sadd.s32 1, %s3231_s15  ;;  %s3235_s16 = sphi %s3265_s16, %s13_s16   ;;  %s3231_s15 = sphi %s3263_s15, %s3833_s15   ;;  %s3227_s14 = sphi %s3261_s14, %s3832_s14   ;;  %s3223_s13 = sphi %s3259_s13, %s3831_s13   ;;  %s3219_s12 = sphi %s3257_s12, %s3830_s12  }
   0x4   : > { %p23_p0 = scmp.ge.s32.totalorder %s22_s17, 2  ;;  %p2376_p1 = scmp.ge.s32.totalorder %s3235_s16, 1 }
   0x5   : > { %p151_p2 = scmp.lt.s32.totalorder %s3235_s16, 5 }
   0x6   : > { %s3835_s17 = smov (%p23_p0, %s22_s17), 0  ;;  %s3837_s18 = smov (!%p23_p0, %s25_s18), %s3231_s15 }
   0x7   : > { %p152_p3 = pnand %p2376_p1, %p151_p2  ;;  %p27_p4 = scmp.ge.s32.totalorder %s3837_s18, 2 }
   0x8   : > { %v2384_v0 = vld [vmem:[%s3827_s1 + $0x8] sm:$0xff] (!%p152_p3)  ;;  %v3295_v1 = vld [vmem:[%s3827_s1 + $0x20] sm:$0xff] (!%p152_p3)  ;;  %p180_p5 = scmp.lt.s32.totalorder (!%p152_p3), %s3223_s13, 1  ;;  %s2383_s27 = smul.u32 (!%p152_p3), 192, %s3219_s12  ;;  %vm234_vm0 = vcmask (!%p152_p3), 64512   ;;  %v2553_v9 = vld [vmem:[%s3827_s1 + $0x30] sm:$0xff] (!%p152_p3) }
   0x9   : > { %s3839_s18 = smov (%p27_p4, %s3837_s18), 0  ;;  %155 = sbr.rel (%p152_p3) target bundleno = 383 (0x17f), region = 32 }
   0xa   : > { %v215_v2 = vld [vmem:[%s3827_s1] sm:$0xff] (!%p152_p3)  ;;  %2792 = vmatprep.subr.mxu1 (!%p152_p3), %v2384_v0  ;;  %2896 = vmatprep.subr.mxu0 (!%p152_p3), %v3295_v1  ;;  %v2518_v3 = vld [vmem:[%s3827_s1 + $0x28] sm:$0xff] (!%p152_p3)  ;;  %v3331_v10 = vld [vmem:[%s3827_s1 + $0x10] sm:$0xff] (!%p152_p3)  ;;  %s2378_s23 = sshll.u32 (!%p152_p3), %s3219_s12, 3  ;;  %vm2255_vm1 = vcmask (!%p152_p3), 261120  }
   0xb   : > { %2793 = vmatpush3.msra.mxu1 (!%p152_p3), %v2384_v0  ;;  %2897 = vmatpush3.msra.mxu0 (!%p152_p3), %v3295_v1  ;;  %v3390_v20 = vld [vmem:[%s3827_s1 + $0x38] sm:$0xff] (!%p152_p3)  ;;  %v2619_v51 = vld [vmem:[%s3827_s1 + $0x40] sm:$0xff] (!%p152_p3)  ;;  %p188_p6 = scmp.lt.s32.totalorder (!%p152_p3), %s2378_s23, 15 }
   0xc   : > { %2818 = vmatprep.subr.mxu1 (!%p152_p3), %v215_v2  ;;  %2922 = vmatprep.subr.mxu0 (!%p152_p3), %v2518_v3  ;;  %v2452_v37 = vld [vmem:[%s3827_s1 + $0x18] sm:$0xff] (!%p152_p3) }
  0x10   : > { %s3841_s13 = smov (!%p180_p5, %s3223_s13), 1  ;;  %s3843_s23 = smov (!%p188_p6, %s2378_s23), 15 }
  0x11   : > { %s3156_s28 = smul.u32 432, %s3841_s13  ;;  %s2379_s24 = sshll.u32 %s3843_s23, 1 }
  0x12   : > { %s2380_s25 = sshll.u32 %s3841_s13, 5 }
  0x13   : > { %s184_s4 = scalar_lea.vmem %s3826_s0, %s3156_s28  ;;  %s192_s26 = sadd.s32 %s2380_s25, %s2379_s24 }
  0x14   : > { %s3312_s5 = scalar_lea.vmem %s184_s4, %s2383_s27  ;;  %s2381_s29 = sshll.u32 %s192_s26, 3 }
  0x15   : > { %v216_v4 = vld [vmem:[%s3312_s5 + $0x1] sm:$0xff]  ;;  %v2469_v5 = vld [vmem:[%s3312_s5 + $0x19] sm:$0xff]  ;;  %v217_v6 = vld [vmem:[%s3312_s5 + $0x9] sm:$0xff]  ;;  %s3762_s4 = scalar_lea.vmem %s3829_s3, %s2381_s29 }
  0x16   : > { %2794 = vmatprep.mubr.msk.f32.mxu1 %vm234_vm0, %v216_v4  ;;  %2898 = vmatprep.mubr.msk.f32.mxu0 %vm234_vm0, %v2469_v5  ;;  %v2470_v7 = vld [vmem:[%s3312_s5 + $0x21] sm:$0xff]  ;;  %v3321_v8 = vld [vmem:[%s3312_s5 + $0x31] sm:$0xff]  ;;  %v3334_v11 = vld [vmem:[%s3312_s5 + $0x39] sm:$0xff] }
  0x17   : > { %2795 = vmatmul.mubr.msk.f32.vlgmr.msra.gmra.mrb[0].mxu1 %vm234_vm0, %v217_v6  ;;  %2899 = vmatmul.mubr.msk.f32.vlgmr.msra.gmra.mrb[0].mxu0 %vm234_vm0, %v2470_v7  ;;  %v3340_v12 = vld [vmem:[%s3312_s5 + $0x49] sm:$0xff]  ;;  %v3351_v13 = vld [vmem:[%s3312_s5 + $0x51] sm:$0xff]  ;;  %v3354_v14 = vld [vmem:[%s3312_s5 + $0x61] sm:$0xff] }
  0x18   : > { %2819 = vmatpush3.msra.mxu1 %v215_v2  ;;  %2923 = vmatpush3.msra.mxu0 %v2518_v3  ;;  %v3365_v15 = vld [vmem:[%s3312_s5 + $0x69] sm:$0xff]  ;;  %v3368_v16 = vld [vmem:[%s3312_s5 + $0x1a] sm:$0xff]  ;;  %v3385_v19 = vld [vmem:[%s3312_s5 + $0x32] sm:$0xff] }
  0x19   : > { %2797 = vmatprep.mubr.msk.f32.mxu1 %vm234_vm0, %v2469_v5  ;;  %2901 = vmatprep.mubr.msk.f32.mxu0 %vm234_vm0, %v3321_v8  ;;  %v3379_v17 = vld [vmem:[%s3312_s5 + $0x22] sm:$0xff]  ;;  %v3382_v18 = vld [vmem:[%s3312_s5 + $0x79] sm:$0xff]  ;;  %v3407_v23 = vld [vmem:[%s3312_s5 + $0x91] sm:$0xff] }
  0x1a   : > { %2948 = vmatprep.subr.mxu0 %v2553_v9  ;;  %2844 = vmatprep.subr.mxu1 %v3331_v10  ;;  %v3399_v21 = vld [vmem:[%s3312_s5 + $0x81] sm:$0xff]  ;;  %v3410_v24 = vld [vmem:[%s3312_s5 + $0x4a] sm:$0xff]  ;;  %v3422_v25 = vld [vmem:[%s3312_s5 + $0x99] sm:$0xff] }
  0x1b   : > { %2798 = vmatmul.mubr.msk.f32.gmra.mrb[2].mxu1 %vm234_vm0, %v2470_v7  ;;  %2902 = vmatmul.mubr.msk.f32.gmra.mrb[2].mxu0 %vm234_vm0, %v3334_v11  ;;  %v3402_v22 = vld [vmem:[%s3312_s5 + $0x3a] sm:$0xff]  ;;  %v3425_v26 = vld [vmem:[%s3312_s5 + $0x52] sm:$0xff]  ;;  %v3428_v27 = vld [vmem:[%s3312_s5 + $0xa9] sm:$0xff] }
  0x1c   : > { %2800 = vmatprep.mubr.msk.f32.mxu1 %vm234_vm0, %v3321_v8  ;;  %2904 = vmatprep.mubr.msk.f32.mxu0 %vm234_vm0, %v3340_v12  ;;  %v3431_v28 = vld [vmem:[%s3312_s5 + $0x62] sm:$0xff]  ;;  %v3442_v29 = vld [vmem:[%s3312_s5 + $0xb1] sm:$0xff]  ;;  %v3449_v32 = vld [vmem:[%s3312_s5 + $0x7a] sm:$0xff] }
  0x1d   : > { %v3445_v30 = vld [vmem:[%s3312_s5 + $0x6a] sm:$0xff]  ;;  %v199_v31 = vld [vmem:[%s3312_s5] sm:$0xff]  ;;  %v3463_v35 = vld [vmem:[%s3312_s5 + $0x18] sm:$0xff] }
  0x1e   : > { %v200_v33 = vld [vmem:[%s3312_s5 + $0x8] sm:$0xff]  ;;  %v3466_v36 = vld [vmem:[%s3312_s5 + $0x92] sm:$0xff]  ;;  %v3478_v38 = vld [vmem:[%s3312_s5 + $0x20] sm:$0xff] }
  0x1f   : > { %2801 = vmatmul.mubr.msk.f32.gmra.mrb[4].mxu1 %vm234_vm0, %v3334_v11  ;;  %2905 = vmatmul.mubr.msk.f32.gmra.mrb[4].mxu0 %vm234_vm0, %v3351_v13  ;;  %v3460_v34 = vld [vmem:[%s3312_s5 + $0x82] sm:$0xff]  ;;  %v3481_v39 = vld [vmem:[%s3312_s5 + $0x9a] sm:$0xff]  ;;  %v3486_v40 = vld [vmem:[%s3312_s5 + $0x30] sm:$0xff] }
  0x20   : > { %2803 = vmatprep.mubr.msk.f32.mxu1 %vm234_vm0, %v3340_v12  ;;  %2907 = vmatprep.mubr.msk.f32.mxu0 %vm234_vm0, %v3354_v14  ;;  %v3489_v41 = vld [vmem:[%s3312_s5 + $0xaa] sm:$0xff]  ;;  %v3500_v42 = vld [vmem:[%s3312_s5 + $0x38] sm:$0xff]  ;;  %v3509_v45 = vld [vmem:[%s3312_s5 + $0xc2] sm:$0xff] }
  0x21   : > { %v3503_v43 = vld [vmem:[%s3312_s5 + $0xb2] sm:$0xff]  ;;  %v3506_v44 = vld [vmem:[%s3312_s5 + $0x48] sm:$0xff]  ;;  %v3526_v48 = vld [vmem:[%s3312_s5 + $0x60] sm:$0xff] }
  0x22   : > { %v3520_v46 = vld [vmem:[%s3312_s5 + $0x50] sm:$0xff]  ;;  %v3537_v49 = vld [vmem:[%s3312_s5 + $0x68] sm:$0xff]  ;;  %v3540_v50 = vld [vmem:[%s3312_s5 + $0x78] sm:$0xff] }
  0x23   : > { %2804 = vmatmul.mubr.msk.f32.gmra.mrb[6].mxu1 %vm234_vm0, %v3351_v13  ;;  %2908 = vmatmul.mubr.msk.f32.gmra.mrb[6].mxu0 %vm234_vm0, %v3365_v15  ;;  %v3523_v47 = vld [vmem:[%s3312_s5 + $0xca] sm:$0xff]  ;;  %v3553_v52 = vld [vmem:[%s3312_s5 + $0x80] sm:$0xff]  ;;  %v3569_v54 = vld [vmem:[%s3312_s5 + $0x98] sm:$0xff] }
  0x24   : > { %2806 = vmatprep.mubr.msk.f32.mxu1 %vm234_vm0, %v3354_v14  ;;  %2924 = vmatprep.mubr.msk.f32.mxu0 %vm234_vm0, %v3368_v16  ;;  %v3558_v53 = vld [vmem:[%s3312_s5 + $0x90] sm:$0xff]  ;;  %v3572_v55 = vld [vmem:[%s3312_s5 + $0xa8] sm:$0xff]  ;;  %v3602_v59 = vld [vmem:[%s3312_s5 + $0xc0] sm:$0xff] }
  0x25   : > { %v3583_v56 = vld [vmem:[%s3312_s5 + $0xb0] sm:$0xff]  ;;  %v621_v57 = vld [vmem:[%s3312_s5 + $0x2] sm:$0xff]  ;;  %v2551_v61 = vld [vmem:[%s3312_s5 + $0xd8] sm:$0xff] }
  0x26   : > { %v622_v58 = vld [vmem:[%s3312_s5 + $0xa] sm:$0xff]  ;;  %v2552_v62 = vld [vmem:[%s3312_s5 + $0xe0] sm:$0xff] }
  0x27   : > { %2807 = vmatmul.mubr.msk.f32.gmra.mrb[8].mxu1 %vm234_vm0, %v3365_v15  ;;  %2925 = vmatmul.mubr.msk.f32.vlgmr.msra.gmra.mrb[0].mxu0 %vm234_vm0, %v3379_v17  ;;  %v2550_v60 = vld [vmem:[%s3312_s5 + $0xc8] sm:$0xff]  ;;  %v2617_v3 = vld [vmem:[%s3312_s5 + $0xda] sm:$0xff] }
  0x28   : > { %2949 = vmatpush3.msra.mxu0 %v2553_v9  ;;  %2809 = vmatprep.mubr.msk.f32.mxu1 %vm234_vm0, %v3382_v18  ;;  %v2582_v63 = vld [vmem:[%s3312_s5 + $0xc1] sm:$0xff]  ;;  %v2583_v0 = vld [vmem:[%s3312_s5 + $0xc9] sm:$0xff] }
  0x29   : > { %2927 = vmatprep.mubr.msk.f32.mxu0 %vm234_vm0, %v3385_v19  ;;  %2974 = vmatprep.subr.mxu0 %v3390_v20  ;;  %v2585_v2 = vld [vmem:[%s3312_s5 + $0xe1] sm:$0xff] }
  0x2a   : > { %v2618_v4 = vld [vmem:[%s3312_s5 + $0xe2] sm:$0xff] }
  0x2b   : > { %2810 = vmatmul.mubr.msk.f32.gmra.mrb[10].mxu1 %vm234_vm0, %v3399_v21  ;;  %2928 = vmatmul.mubr.msk.f32.gmra.mrb[2].mxu0 %vm234_vm0, %v3402_v22 }
  0x2c   : > { %2812 = vmatprep.mubr.msk.f32.mxu1 %vm234_vm0, %v3407_v23  ;;  %2930 = vmatprep.mubr.msk.f32.mxu0 %vm234_vm0, %v3410_v24 }
  0x2f   : > { %2813 = vmatmul.mubr.msk.f32.gmra.mrb[12].mxu1 %vm234_vm0, %v3422_v25  ;;  %2931 = vmatmul.mubr.msk.f32.gmra.mrb[4].mxu0 %vm234_vm0, %v3425_v26 }
  0x30   : > { %2815 = vmatprep.mubr.msk.f32.mxu1 %vm234_vm0, %v3428_v27  ;;  %2933 = vmatprep.mubr.msk.f32.mxu0 %vm234_vm0, %v3431_v28 }
  0x33   : > { %2816 = vmatmul.mubr.msk.f32.gmra.mrb[14].mxu1 %vm234_vm0, %v3442_v29  ;;  %2934 = vmatmul.mubr.msk.f32.gmra.mrb[6].mxu0 %vm234_vm0, %v3445_v30 }
  0x34   : > { %2820 = vmatprep.mubr.msk.f32.mxu1 %vm234_vm0, %v199_v31  ;;  %2936 = vmatprep.mubr.msk.f32.mxu0 %vm234_vm0, %v3449_v32 }
  0x37   : > { %2821 = vmatmul.mubr.msk.f32.vlgmr.msra.gmra.mrb[0].mxu1 %vm234_vm0, %v200_v33  ;;  %2937 = vmatmul.mubr.msk.f32.gmra.mrb[8].mxu0 %vm234_vm0, %v3460_v34 }
  0x38   : > { %2845 = vmatpush3.msra.mxu1 %v3331_v10  ;;  %2823 = vmatprep.mubr.msk.f32.mxu1 %vm234_vm0, %v3463_v35 }
  0x39   : > { %2939 = vmatprep.mubr.msk.f32.mxu0 %vm234_vm0, %v3466_v36  ;;  %2870 = vmatprep.subr.mxu1 %v2452_v37 }
  0x3b   : > { %2824 = vmatmul.mubr.msk.f32.gmra.mrb[2].mxu1 %vm234_vm0, %v3478_v38  ;;  %2940 = vmatmul.mubr.msk.f32.gmra.mrb[10].mxu0 %vm234_vm0, %v3481_v39 }
  0x3c   : > { %2826 = vmatprep.mubr.msk.f32.mxu1 %vm234_vm0, %v3486_v40  ;;  %2942 = vmatprep.mubr.msk.f32.mxu0 %vm234_vm0, %v3489_v41 }
  0x3f   : > { %2827 = vmatmul.mubr.msk.f32.gmra.mrb[4].mxu1 %vm234_vm0, %v3500_v42  ;;  %2943 = vmatmul.mubr.msk.f32.gmra.mrb[12].mxu0 %vm234_vm0, %v3503_v43 }
  0x40   : > { %2829 = vmatprep.mubr.msk.f32.mxu1 %vm234_vm0, %v3506_v44  ;;  %2945 = vmatprep.mubr.msk.f32.mxu0 %vm234_vm0, %v3509_v45 }
  0x43   : > { %2830 = vmatmul.mubr.msk.f32.gmra.mrb[6].mxu1 %vm234_vm0, %v3520_v46  ;;  %2946 = vmatmul.mubr.msk.f32.gmra.mrb[14].mxu0 %vm234_vm0, %v3523_v47 }
  0x44   : > { %2832 = vmatprep.mubr.msk.f32.mxu1 %vm234_vm0, %v3526_v48  ;;  %2950 = vmatprep.mubr.msk.f32.mxu0 %vm234_vm0, %v3486_v40 }
  0x47   : > { %2833 = vmatmul.mubr.msk.f32.gmra.mrb[8].mxu1 %vm234_vm0, %v3537_v49  ;;  %2951 = vmatmul.mubr.msk.f32.vlgmr.msra.gmra.mrb[0].mxu0 %vm234_vm0, %v3500_v42 }
  0x48   : > { %2975 = vmatpush3.msra.mxu0 %v3390_v20  ;;  %2835 = vmatprep.mubr.msk.f32.mxu1 %vm234_vm0, %v3540_v50 }
  0x49   : > { %2953 = vmatprep.mubr.msk.f32.mxu0 %vm234_vm0, %v3506_v44  ;;  %3000 = vmatprep.subr.mxu0 %v2619_v51 }
  0x4b   : > { %2836 = vmatmul.mubr.msk.f32.gmra.mrb[10].mxu1 %vm234_vm0, %v3553_v52  ;;  %2954 = vmatmul.mubr.msk.f32.gmra.mrb[2].mxu0 %vm234_vm0, %v3520_v46 }
  0x4c   : > { %2838 = vmatprep.mubr.msk.f32.mxu1 %vm234_vm0, %v3558_v53  ;;  %2956 = vmatprep.mubr.msk.f32.mxu0 %vm234_vm0, %v3526_v48 }
  0x4f   : > { %2839 = vmatmul.mubr.msk.f32.gmra.mrb[12].mxu1 %vm234_vm0, %v3569_v54  ;;  %2957 = vmatmul.mubr.msk.f32.gmra.mrb[4].mxu0 %vm234_vm0, %v3537_v49 }
  0x50   : > { %2841 = vmatprep.mubr.msk.f32.mxu1 %vm234_vm0, %v3572_v55  ;;  %2959 = vmatprep.mubr.msk.f32.mxu0 %vm234_vm0, %v3540_v50 }
  0x53   : > { %2842 = vmatmul.mubr.msk.f32.gmra.mrb[14].mxu1 %vm234_vm0, %v3583_v56  ;;  %2960 = vmatmul.mubr.msk.f32.gmra.mrb[6].mxu0 %vm234_vm0, %v3553_v52 }
  0x54   : > { %2846 = vmatprep.mubr.msk.f32.mxu1 %vm234_vm0, %v621_v57  ;;  %2962 = vmatprep.mubr.msk.f32.mxu0 %vm234_vm0, %v3558_v53 }
  0x57   : > { %2847 = vmatmul.mubr.msk.f32.vlgmr.msra.gmra.mrb[0].mxu1 %vm234_vm0, %v622_v58  ;;  %2963 = vmatmul.mubr.msk.f32.gmra.mrb[8].mxu0 %vm234_vm0, %v3569_v54 }
  0x58   : > { %2871 = vmatpush3.msra.mxu1 %v2452_v37  ;;  %2849 = vmatprep.mubr.msk.f32.mxu1 %vm234_vm0, %v3368_v16 }
  0x59   : > { %2965 = vmatprep.mubr.msk.f32.mxu0 %vm234_vm0, %v3572_v55  ;;  %3026 = vmatprep.subr.mxu1 %v3295_v1 }
  0x5b   : > { %2850 = vmatmul.mubr.msk.f32.gmra.mrb[2].mxu1 %vm234_vm0, %v3379_v17  ;;  %2966 = vmatmul.mubr.msk.f32.gmra.mrb[10].mxu0 %vm234_vm0, %v3583_v56 }
  0x5c   : > { %2852 = vmatprep.mubr.msk.f32.mxu1 %vm234_vm0, %v3385_v19  ;;  %2968 = vmatprep.mubr.msk.f32.mxu0 %vm234_vm0, %v3602_v59 }
  0x5f   : > { %2853 = vmatmul.mubr.msk.f32.gmra.mrb[4].mxu1 %vm234_vm0, %v3402_v22  ;;  %2969 = vmatmul.mubr.msk.f32.gmra.mrb[12].mxu0 %vm234_vm0, %v2550_v60 }
  0x60   : > { %2855 = vmatprep.mubr.msk.f32.mxu1 %vm234_vm0, %v3410_v24  ;;  %2971 = vmatprep.mubr.msk.f32.mxu0 %vm234_vm0, %v2551_v61 }
  0x63   : > { %2856 = vmatmul.mubr.msk.f32.gmra.mrb[6].mxu1 %vm234_vm0, %v3425_v26  ;;  %2972 = vmatmul.mubr.msk.f32.gmra.mrb[14].mxu0 %vm234_vm0, %v2552_v62 }
  0x64   : > { %2858 = vmatprep.mubr.msk.f32.mxu1 %vm234_vm0, %v3431_v28  ;;  %2976 = vmatprep.mubr.msk.f32.mxu0 %vm234_vm0, %v3321_v8 }
  0x67   : > { %2859 = vmatmul.mubr.msk.f32.gmra.mrb[8].mxu1 %vm234_vm0, %v3445_v30  ;;  %2977 = vmatmul.mubr.msk.f32.vlgmr.msra.gmra.mrb[0].mxu0 %vm234_vm0, %v3334_v11 }
  0x68   : > { %3001 = vmatpush3.msra.mxu0 %v2619_v51  ;;  %2861 = vmatprep.mubr.msk.f32.mxu1 %vm234_vm0, %v3449_v32 }
  0x69   : > { %2979 = vmatprep.mubr.msk.f32.mxu0 %vm234_vm0, %v3340_v12 }
  0x6b   : > { %2862 = vmatmul.mubr.msk.f32.gmra.mrb[10].mxu1 %vm234_vm0, %v3460_v34  ;;  %2980 = vmatmul.mubr.msk.f32.gmra.mrb[2].mxu0 %vm234_vm0, %v3351_v13 }
  0x6c   : > { %2864 = vmatprep.mubr.msk.f32.mxu1 %vm234_vm0, %v3466_v36  ;;  %2982 = vmatprep.mubr.msk.f32.mxu0 %vm234_vm0, %v3354_v14  ;;  %v3756_v14 = vld [vmem:[%s3828_s2] ss:$0 sm:$0xff] }
  0x6f   : > { %2865 = vmatmul.mubr.msk.f32.gmra.mrb[12].mxu1 %vm234_vm0, %v3481_v39  ;;  %2983 = vmatmul.mubr.msk.f32.gmra.mrb[4].mxu0 %vm234_vm0, %v3365_v15 }
  0x70   : > { %2867 = vmatprep.mubr.msk.f32.mxu1 %vm234_vm0, %v3489_v41  ;;  %2985 = vmatprep.mubr.msk.f32.mxu0 %vm234_vm0, %v3382_v18 }
  0x73   : > { %2868 = vmatmul.mubr.msk.f32.gmra.mrb[14].mxu1 %vm234_vm0, %v3503_v43  ;;  %2986 = vmatmul.mubr.msk.f32.gmra.mrb[6].mxu0 %vm234_vm0, %v3399_v21 }
  0x74   : > { %2872 = vmatprep.mubr.msk.f32.mxu1 %vm234_vm0, %v3463_v35  ;;  %2988 = vmatprep.mubr.msk.f32.mxu0 %vm234_vm0, %v3407_v23 }
  0x77   : > { %2873 = vmatmul.mubr.msk.f32.vlgmr.msra.gmra.mrb[0].mxu1 %vm234_vm0, %v3478_v38  ;;  %2989 = vmatmul.mubr.msk.f32.gmra.mrb[8].mxu0 %vm234_vm0, %v3422_v25 }
  0x78   : > { %3027 = vmatpush3.msra.mxu1 %v3295_v1  ;;  %2875 = vmatprep.mubr.msk.f32.mxu1 %vm234_vm0, %v3486_v40  ;;  %v2584_v1 = vld [vmem:[%s3312_s5 + $0xd9] sm:$0xff] }
  0x79   : > { %2991 = vmatprep.mubr.msk.f32.mxu0 %vm234_vm0, %v3428_v27 }
  0x7b   : > { %2876 = vmatmul.mubr.msk.f32.gmra.mrb[2].mxu1 %vm234_vm0, %v3500_v42  ;;  %2992 = vmatmul.mubr.msk.f32.gmra.mrb[10].mxu0 %vm234_vm0, %v3442_v29 }
  0x7c   : > { %2878 = vmatprep.mubr.msk.f32.mxu1 %vm234_vm0, %v3506_v44  ;;  %2994 = vmatprep.mubr.msk.f32.mxu0 %vm234_vm0, %v2582_v63 }
  0x7f   : > { %2879 = vmatmul.mubr.msk.f32.gmra.mrb[4].mxu1 %vm234_vm0, %v3520_v46  ;;  %2995 = vmatmul.mubr.msk.f32.gmra.mrb[12].mxu0 %vm234_vm0, %v2583_v0 }
  0x80   : > { %2881 = vmatprep.mubr.msk.f32.mxu1 %vm234_vm0, %v3526_v48  ;;  %2997 = vmatprep.mubr.msk.f32.mxu0 %vm234_vm0, %v2584_v1 }
  0x83   : > { %2882 = vmatmul.mubr.msk.f32.gmra.mrb[6].mxu1 %vm234_vm0, %v3537_v49  ;;  %2998 = vmatmul.mubr.msk.f32.gmra.mrb[14].mxu0 %vm234_vm0, %v2585_v2 }
  0x84   : > { %2884 = vmatprep.mubr.msk.f32.mxu1 %vm234_vm0, %v3540_v50  ;;  %3002 = vmatprep.mubr.msk.f32.mxu0 %vm234_vm0, %v3385_v19 }
  0x87   : > { %2885 = vmatmul.mubr.msk.f32.gmra.mrb[8].mxu1 %vm234_vm0, %v3553_v52  ;;  %3003 = vmatmul.mubr.msk.f32.vlgmr.msra.gmra.mrb[0].mxu0 %vm234_vm0, %v3402_v22 }
  0x88   : > { %2887 = vmatprep.mubr.msk.f32.mxu1 %vm234_vm0, %v3558_v53  ;;  %3005 = vmatprep.mubr.msk.f32.mxu0 %vm234_vm0, %v3410_v24 }
  0x8b   : > { %2888 = vmatmul.mubr.msk.f32.gmra.mrb[10].mxu1 %vm234_vm0, %v3569_v54  ;;  %3006 = vmatmul.mubr.msk.f32.gmra.mrb[2].mxu0 %vm234_vm0, %v3425_v26 }
  0x8c   : > { %2890 = vmatprep.mubr.msk.f32.mxu1 %vm234_vm0, %v3572_v55  ;;  %3008 = vmatprep.mubr.msk.f32.mxu0 %vm234_vm0, %v3431_v28 }
  0x8f   : > { %2891 = vmatmul.mubr.msk.f32.gmra.mrb[12].mxu1 %vm234_vm0, %v3583_v56  ;;  %3009 = vmatmul.mubr.msk.f32.gmra.mrb[4].mxu0 %vm234_vm0, %v3445_v30 }
  0x90   : > { %2893 = vmatprep.mubr.msk.f32.mxu1 %vm234_vm0, %v3602_v59  ;;  %3011 = vmatprep.mubr.msk.f32.mxu0 %vm234_vm0, %v3449_v32 }
  0x93   : > { %2894 = vmatmul.mubr.msk.f32.gmra.mrb[14].mxu1 %vm234_vm0, %v2550_v60  ;;  %3012 = vmatmul.mubr.msk.f32.gmra.mrb[6].mxu0 %vm234_vm0, %v3460_v34 }
  0x94   : > { %2910 = vmatprep.mubr.msk.f32.mxu1 %vm234_vm0, %v3382_v18  ;;  %3014 = vmatprep.mubr.msk.f32.mxu0 %vm234_vm0, %v3466_v36 }
  0x97   : > { %2911 = vmatmul.mubr.msk.f32.vlgmr.msra.gmra.mrb[8].mxu1 %vm234_vm0, %v3399_v21  ;;  %3015 = vmatmul.mubr.msk.f32.gmra.mrb[8].mxu0 %vm234_vm0, %v3481_v39 }
  0x98   : > { %2913 = vmatprep.mubr.msk.f32.mxu1 %vm234_vm0, %v3407_v23  ;;  %3017 = vmatprep.mubr.msk.f32.mxu0 %vm234_vm0, %v3489_v41 }
  0x9b   : > { %2914 = vmatmul.mubr.msk.f32.gmra.mrb[10].mxu1 %vm234_vm0, %v3422_v25  ;;  %3018 = vmatmul.mubr.msk.f32.gmra.mrb[10].mxu0 %vm234_vm0, %v3503_v43 }
  0x9c   : > { %2916 = vmatprep.mubr.msk.f32.mxu1 %vm234_vm0, %v3428_v27  ;;  %3020 = vmatprep.mubr.msk.f32.mxu0 %vm234_vm0, %v3509_v45 }
  0x9f   : > { %2917 = vmatmul.mubr.msk.f32.gmra.mrb[12].mxu1 %vm234_vm0, %v3442_v29  ;;  %3021 = vmatmul.mubr.msk.f32.gmra.mrb[12].mxu0 %vm234_vm0, %v3523_v47 }
  0xa0   : > { %2919 = vmatprep.mubr.msk.f32.mxu1 %vm234_vm0, %v2582_v63  ;;  %3023 = vmatprep.mubr.msk.f32.mxu0 %vm234_vm0, %v2617_v3 }
  0xa3   : > { %2920 = vmatmul.mubr.msk.f32.gmra.mrb[14].mxu1 %vm234_vm0, %v2583_v0  ;;  %3024 = vmatmul.mubr.msk.f32.gmra.mrb[14].mxu0 %vm234_vm0, %v2618_v4 }
 0x14a   : > { %v2874_v5 = vpop.f32.mrb[0].mxu1 }
 0x14b   : > { %v983_v6 = vpop.f32.mrb[1].mxu1 }
 0x14e   : > { %v2877_v7 = vpop.f32.mrb[2].mxu1 }
 0x14f   : > { %v993_v8 = vpop.f32.mrb[3].mxu1 }
 0x152   : > { %v2880_v9 = vpop.f32.mrb[4].mxu1 }
 0x153   : > { %v1003_v10 = vpop.f32.mrb[5].mxu1 }
 0x156   : > { %v2883_v11 = vpop.f32.mrb[6].mxu1 }
 0x157   : > { %v1013_v12 = vpop.f32.mrb[7].mxu1 }
 0x15a   : > { %v3004_v13 = vpop.f32.mrb[0].mxu0 }
 0x15b   : > { %v3028_v15 = vadd.f32 %v3004_v13, %v2874_v5  ;;  %v2121_v16 = vpop.f32.mrb[1].mxu0 }
 0x15c   : > { %v3029_v17 = vadd.f32 %v2121_v16, %v983_v6 }
 0x15d   : > { %v2224_v18 = vadd.f32 %v3028_v15, %v3756_v14 }
 0x15e   : > { %v2223_v19 = vadd.f32 %v3029_v17, %v3756_v14  ;;  %v3007_v20 = vpop.f32.mrb[2].mxu0 }
 0x15f   : > { %v2240_v21 = vmax.f32 %v2224_v18, 0.0  ;;  %v3030_v22 = vadd.f32 %v3007_v20, %v2877_v7  ;;  %v2131_v23 = vpop.f32.mrb[3].mxu0 }
 0x160   : > { %v2239_v24 = vmax.f32 %v2223_v19, 0.0  ;;  %v3031_v25 = vadd.f32 %v2131_v23, %v993_v8 }
 0x161   : > { %2257 = vst.msk [vmem:[%s3762_s4 + $0x8] sm:$0xff] %vm2255_vm1, %v2240_v21  ;;  %v2226_v26 = vadd.f32 %v3030_v22, %v3756_v14 }
 0x162   : > { %2256 = vst.msk [vmem:[%s3762_s4] sm:$0xff] %vm2255_vm1, %v2239_v24  ;;  %v2225_v27 = vadd.f32 %v3031_v25, %v3756_v14  ;;  %v3010_v28 = vpop.f32.mrb[4].mxu0 }
 0x163   : > { %v2242_v29 = vmax.f32 %v2226_v26, 0.0  ;;  %v3032_v30 = vadd.f32 %v3010_v28, %v2880_v9  ;;  %v2141_v31 = vpop.f32.mrb[5].mxu0 }
 0x164   : > { %v2241_v32 = vmax.f32 %v2225_v27, 0.0  ;;  %v3033_v33 = vadd.f32 %v2141_v31, %v1003_v10 }
 0x165   : > { %2259 = vst.msk [vmem:[%s3762_s4 + $0x18] sm:$0xff] %vm2255_vm1, %v2242_v29  ;;  %v2228_v34 = vadd.f32 %v3032_v30, %v3756_v14 }
 0x166   : > { %2258 = vst.msk [vmem:[%s3762_s4 + $0x10] sm:$0xff] %vm2255_vm1, %v2241_v32  ;;  %v2227_v35 = vadd.f32 %v3033_v33, %v3756_v14  ;;  %v3013_v36 = vpop.f32.mrb[6].mxu0 }
 0x167   : > { %v2244_v37 = vmax.f32 %v2228_v34, 0.0  ;;  %v3034_v38 = vadd.f32 %v3013_v36, %v2883_v11  ;;  %v2151_v39 = vpop.f32.mrb[7].mxu0 }
 0x168   : > { %v2243_v40 = vmax.f32 %v2227_v35, 0.0  ;;  %v3035_v41 = vadd.f32 %v2151_v39, %v1013_v12 }
 0x169   : > { %2261 = vst.msk [vmem:[%s3762_s4 + $0x28] sm:$0xff] %vm2255_vm1, %v2244_v37  ;;  %v2230_v42 = vadd.f32 %v3034_v38, %v3756_v14 }
 0x16a   : > { %2260 = vst.msk [vmem:[%s3762_s4 + $0x20] sm:$0xff] %vm2255_vm1, %v2243_v40  ;;  %v2229_v43 = vadd.f32 %v3035_v41, %v3756_v14  ;;  %v2912_v44 = vpop.f32.mrb[8].mxu1  ;;  %v3016_v45 = vpop.f32.mrb[8].mxu0 }
 0x16b   : > { %v2246_v46 = vmax.f32 %v2230_v42, 0.0  ;;  %v3036_v47 = vadd.f32 %v3016_v45, %v2912_v44  ;;  %v1250_v48 = vpop.f32.mrb[9].mxu1  ;;  %v2161_v49 = vpop.f32.mrb[9].mxu0 }
 0x16c   : > { %v2245_v50 = vmax.f32 %v2229_v43, 0.0  ;;  %v3037_v51 = vadd.f32 %v2161_v49, %v1250_v48 }
 0x16d   : > { %2263 = vst.msk [vmem:[%s3762_s4 + $0x38] sm:$0xff] %vm2255_vm1, %v2246_v46  ;;  %v2232_v52 = vadd.f32 %v3036_v47, %v3756_v14 }
 0x16e   : > { %2262 = vst.msk [vmem:[%s3762_s4 + $0x30] sm:$0xff] %vm2255_vm1, %v2245_v50  ;;  %v2231_v53 = vadd.f32 %v3037_v51, %v3756_v14  ;;  %v2915_v54 = vpop.f32.mrb[10].mxu1  ;;  %v3019_v55 = vpop.f32.mrb[10].mxu0 }
 0x16f   : > { %v2248_v56 = vmax.f32 %v2232_v52, 0.0  ;;  %v3038_v57 = vadd.f32 %v3019_v55, %v2915_v54  ;;  %v1260_v58 = vpop.f32.mrb[11].mxu1  ;;  %v2171_v59 = vpop.f32.mrb[11].mxu0 }
 0x170   : > { %v2247_v60 = vmax.f32 %v2231_v53, 0.0  ;;  %v3039_v61 = vadd.f32 %v2171_v59, %v1260_v58 }
 0x171   : > { %2265 = vst.msk [vmem:[%s3762_s4 + $0x48] sm:$0xff] %vm2255_vm1, %v2248_v56  ;;  %v2234_v62 = vadd.f32 %v3038_v57, %v3756_v14 }
 0x172   : > { %2264 = vst.msk [vmem:[%s3762_s4 + $0x40] sm:$0xff] %vm2255_vm1, %v2247_v60  ;;  %v2233_v63 = vadd.f32 %v3039_v61, %v3756_v14  ;;  %v2918_v0 = vpop.f32.mrb[12].mxu1  ;;  %v3022_v1 = vpop.f32.mrb[12].mxu0 }
 0x173   : > { %v2250_v2 = vmax.f32 %v2234_v62, 0.0  ;;  %v3040_v3 = vadd.f32 %v3022_v1, %v2918_v0  ;;  %v1270_v4 = vpop.f32.mrb[13].mxu1  ;;  %v2181_v5 = vpop.f32.mrb[13].mxu0 }
 0x174   : > { %v2249_v6 = vmax.f32 %v2233_v63, 0.0  ;;  %v3041_v7 = vadd.f32 %v2181_v5, %v1270_v4 }
 0x175   : > { %2267 = vst.msk [vmem:[%s3762_s4 + $0x58] sm:$0xff] %vm2255_vm1, %v2250_v2  ;;  %v2236_v8 = vadd.f32 %v3040_v3, %v3756_v14 }
 0x176   : > { %2266 = vst.msk [vmem:[%s3762_s4 + $0x50] sm:$0xff] %vm2255_vm1, %v2249_v6  ;;  %v2235_v9 = vadd.f32 %v3041_v7, %v3756_v14  ;;  %v2921_v10 = vpop.f32.mrb[14].mxu1  ;;  %v3025_v11 = vpop.f32.mrb[14].mxu0 }
 0x177   : > { %v2252_v12 = vmax.f32 %v2236_v8, 0.0  ;;  %v3042_v13 = vadd.f32 %v3025_v11, %v2921_v10  ;;  %v1280_v15 = vpop.f32.mrb[15].mxu1  ;;  %v2191_v16 = vpop.f32.mrb[15].mxu0 }
 0x178   : > { %v2251_v17 = vmax.f32 %v2235_v9, 0.0  ;;  %v3043_v18 = vadd.f32 %v2191_v16, %v1280_v15 }
 0x179   : > { %2269 = vst.msk [vmem:[%s3762_s4 + $0x68] sm:$0xff] %vm2255_vm1, %v2252_v12  ;;  %v2238_v19 = vadd.f32 %v3042_v13, %v3756_v14 }
 0x17a   : > { %2268 = vst.msk [vmem:[%s3762_s4 + $0x60] sm:$0xff] %vm2255_vm1, %v2251_v17  ;;  %v2237_v20 = vadd.f32 %v3043_v18, %v3756_v14 }
 0x17b   : > { %v2254_v21 = vmax.f32 %v2238_v19, 0.0 }
 0x17c   : > { %v2253_v22 = vmax.f32 %v2237_v20, 0.0 }
 0x17d   : > { %2271 = vst.msk [vmem:[%s3762_s4 + $0x78] sm:$0xff] %vm2255_vm1, %v2254_v21 }
 0x17e   : > { %2270 = vst.msk [vmem:[%s3762_s4 + $0x70] sm:$0xff] %vm2255_vm1, %v2253_v22 }
 0x17f PF: > { %s13_s16 = sadd.s32 1, %s3235_s16   ;;  %s3830_s12 = smov %s3227_s14 }
 0x180   : > { %p10_p7 = scmp.ge.s32.totalorder %s13_s16, 6   ;;  %s3831_s13 = smov %s3231_s15 }
 0x181   : > { %s3832_s14 = smov %s3835_s17  ;;  %s3833_s15 = smov %s3839_s18 }
 0x182   :  { %12 = sbr.rel (!%p10_p7) target bundleno = 3 (0x3), region = 73 }

// kernel: autoencoder_forward.12
= control target key start
LH: loop header
LB: loop body
LE: loop exit
PB: predicated region body
PF: predicated region fallthrough
CT: control target
= control target key end

     0   :  { %s2321_s12 = smov 0   ;;  %s2323_s13 = smov 0   ;;  %s2700_s0 = inlined_call_operand.vmem [shape: f32[2,10,10,32], index: 0, kind: input, shape index: {}]   ;;  %s2701_s1 = inlined_call_operand.vmem [shape: f32[3,3,32,64], index: 1, kind: input, shape index: {}]   ;;  %s2702_s2 = inlined_call_operand.vmem [shape: f32[1,64], index: 2, kind: input, shape index: {}]   ;;  %s2703_s3 = inlined_call_operand.vmem [shape: f32[2,8,8,64], index: 3, kind: output, shape index: {}]  }
   0x1   :  { %s2325_s14 = smov 0  }
   0x2 LB: > { %s25_s15 = sadd.s32 1, %s2295_s13  ;;  %p1664_p0 = scmp.ge.s32.totalorder %s2299_s14, 1  ;;  %s2299_s14 = sphi %s2325_s14, %s13_s14   ;;  %s2295_s13 = sphi %s2323_s13, %s2705_s13   ;;  %s2291_s12 = sphi %s2321_s12, %s2704_s12  }
   0x3   : > { %p27_p1 = scmp.ge.s32.totalorder %s25_s15, 2  ;;  %p151_p2 = scmp.lt.s32.totalorder %s2299_s14, 3 }
   0x5   : > { %s2707_s15 = smov (%p27_p1, %s25_s15), 0  ;;  %p152_p3 = pnand %p1664_p0, %p151_p2 }
   0x6   : > { %v1668_v0 = vld [vmem:[%s2701_s1 + $0x20] sm:$0xff] (!%p152_p3)  ;;  %v1669_v1 = vld [vmem:[%s2701_s1 + $0x28] sm:$0xff] (!%p152_p3)  ;;  %p179_p4 = scmp.lt.s32.totalorder (!%p152_p3), %s2291_s12, 1  ;;  %v1670_v5 = vld [vmem:[%s2701_s1 + $0x30] sm:$0xff] (!%p152_p3)  ;;  %vm222_vm0 = vcmask (!%p152_p3), 261120   ;;  %vm1560_vm1 = vcmask (!%p152_p3), 523264  }
   0x7   : > { %155 = sbr.rel (%p152_p3) target bundleno = 309 (0x135), region = 32  ;;  %v1728_v2 = vld [vmem:[%s2701_s1 + $0x80] sm:$0xff] (!%p152_p3)  ;;  %v2112_v3 = vpack.c.bf16 (!%p152_p3), %v1669_v1, %v1668_v0  ;;  %v1729_v4 = vld [vmem:[%s2701_s1 + $0x88] sm:$0xff] (!%p152_p3)  ;;  %v1671_v6 = vld [vmem:[%s2701_s1 + $0x38] sm:$0xff] (!%p152_p3) }
   0x8   : > { %v2357_v7 = vpack.c.bf16 (!%p152_p3), %v1729_v4, %v1728_v2  ;;  %v2116_v8 = vpack.c.bf16 (!%p152_p3), %v1671_v6, %v1670_v5  ;;  %v1730_v9 = vld [vmem:[%s2701_s1 + $0x90] sm:$0xff] (!%p152_p3)  ;;  %v1731_v10 = vld [vmem:[%s2701_s1 + $0x98] sm:$0xff] (!%p152_p3)  ;;  %v205_v11 = vld [vmem:[%s2701_s1] sm:$0xff] (!%p152_p3) }
   0x9   : > { %2113 = vmatprep.subr.bf16.mxu1 (!%p152_p3), %v2112_v3  ;;  %v2370_v12 = vpack.c.bf16 (!%p152_p3), %v1731_v10, %v1730_v9  ;;  %v206_v13 = vld [vmem:[%s2701_s1 + $0x8] sm:$0xff] (!%p152_p3)  ;;  %v1748_v14 = vld [vmem:[%s2701_s1 + $0xa0] sm:$0xff] (!%p152_p3)  ;;  %v1750_v18 = vld [vmem:[%s2701_s1 + $0xb0] sm:$0xff] (!%p152_p3) }
   0xa   : > { %v1749_v15 = vld [vmem:[%s2701_s1 + $0xa8] sm:$0xff] (!%p152_p3)  ;;  %2145 = vmatprep.subr.bf16.mxu0 (!%p152_p3), %v2357_v7  ;;  %2115 = vmatpush3.bf16.msra.mxu1 (!%p152_p3), %v2112_v3  ;;  %v2120_v16 = vpack.c.bf16 (!%p152_p3), %v206_v13, %v205_v11  ;;  %v1751_v21 = vld [vmem:[%s2701_s1 + $0xb8] sm:$0xff] (!%p152_p3)  ;;  %v207_v22 = vld [vmem:[%s2701_s1 + $0x10] sm:$0xff] (!%p152_p3) }
   0xb   : > { %2147 = vmatpush3.bf16.msra.mxu0 (!%p152_p3), %v2357_v7  ;;  %2117 = vmatprep.subr.bf16.mxu1 (!%p152_p3), %v2116_v8  ;;  %v2152_v17 = vpack.c.bf16 (!%p152_p3), %v1749_v15, %v1748_v14  ;;  %v208_v23 = vld [vmem:[%s2701_s1 + $0x18] sm:$0xff] (!%p152_p3)  ;;  %v2156_v25 = vpack.c.bf16 (!%p152_p3), %v1751_v21, %v1750_v18  ;;  %v1768_v28 = vld [vmem:[%s2701_s1 + $0xc0] sm:$0xff] (!%p152_p3)  ;;  %v1769_v29 = vld [vmem:[%s2701_s1 + $0xc8] sm:$0xff] (!%p152_p3) }
   0xc   : > { %2149 = vmatprep.subr.bf16.mxu0 (!%p152_p3), %v2370_v12  ;;  %v2124_v27 = vpack.c.bf16 (!%p152_p3), %v208_v23, %v207_v22  ;;  %v1688_v30 = vld [vmem:[%s2701_s1 + $0x40] sm:$0xff] (!%p152_p3)  ;;  %v1689_v31 = vld [vmem:[%s2701_s1 + $0x48] sm:$0xff] (!%p152_p3)  ;;  %v2160_v34 = vpack.c.bf16 (!%p152_p3), %v1769_v29, %v1768_v28  ;;  %v1770_v36 = vld [vmem:[%s2701_s1 + $0xd0] sm:$0xff] (!%p152_p3) }
   0xd   : > { %v2128_v35 = vpack.c.bf16 (!%p152_p3), %v1689_v31, %v1688_v30  ;;  %v1771_v37 = vld [vmem:[%s2701_s1 + $0xd8] sm:$0xff] (!%p152_p3)  ;;  %v1788_v43 = vld [vmem:[%s2701_s1 + $0xe0] sm:$0xff] (!%p152_p3)  ;;  %v1789_v44 = vld [vmem:[%s2701_s1 + $0xe8] sm:$0xff] (!%p152_p3) }
   0xe   : > { %s2709_s12 = smov (!%p179_p4, %s2291_s12), 1  ;;  %2119 = vmatpush3.bf16.msra.mxu1 %v2116_v8  ;;  %v2164_v42 = vpack.c.bf16 %v1771_v37, %v1770_v36  ;;  %v2168_v49 = vpack.c.bf16 %v1789_v44, %v1788_v43  ;;  %v1690_v50 = vld [vmem:[%s2701_s1 + $0x50] sm:$0xff]  ;;  %v1691_v51 = vld [vmem:[%s2701_s1 + $0x58] sm:$0xff]  ;;  %v1708_v57 = vld [vmem:[%s2701_s1 + $0x60] sm:$0xff] }
   0xf   : > { %s2252_s17 = smul.u32 160, %s2709_s12  ;;  %2151 = vmatpush3.bf16.msra.mxu0 %v2370_v12  ;;  %2121 = vmatprep.subr.bf16.mxu1 %v2120_v16  ;;  %v2132_v56 = vpack.c.bf16 %v1691_v51, %v1690_v50  ;;  %v1709_v58 = vld [vmem:[%s2701_s1 + $0x68] sm:$0xff]  ;;  %v1790_v63 = vld [vmem:[%s2701_s1 + $0xf0] sm:$0xff]  ;;  %v1791_v0 = vld [vmem:[%s2701_s1 + $0xf8] sm:$0xff]  ;;  %s1823_s27 = sshll.u32 %s2709_s12, 6 }
  0x10   : > { %2153 = vmatprep.subr.bf16.mxu0 %v2152_v17  ;;  %v2136_v62 = vpack.c.bf16 %v1709_v58, %v1708_v57  ;;  %v2172_v3 = vpack.c.bf16 %v1791_v0, %v1790_v63  ;;  %v1808_v4 = vld [vmem:[%s2701_s1 + $0x100] sm:$0xff]  ;;  %v1809_v5 = vld [vmem:[%s2701_s1 + $0x108] sm:$0xff]  ;;  %v1710_v10 = vld [vmem:[%s2701_s1 + $0x70] sm:$0xff]  ;;  %s2673_s29 = scalar_lea.vmem %s2703_s3, %s1823_s27 }
  0x11   : > { %s2388_s20 = scalar_lea.vmem %s2700_s0, %s2252_s17  ;;  %v2176_v9 = vpack.c.bf16 %v1809_v5, %v1808_v4  ;;  %v1711_v11 = vld [vmem:[%s2701_s1 + $0x78] sm:$0xff] }
  0x12   : > { %v209_v19 = vld [vmem:[%s2388_s20 + $0x1] sm:$0xff]  ;;  %v1720_v20 = vld [vmem:[%s2388_s20 + $0x11] sm:$0xff]  ;;  %v2140_v14 = vpack.c.bf16 %v1711_v11, %v1710_v10 }
  0x13   : > { %1940 = vmatprep.mubr.msk.f32.mxu1 %vm222_vm0, %v209_v19  ;;  %2020 = vmatprep.mubr.msk.f32.mxu0 %vm222_vm0, %v1720_v20  ;;  %v2408_v24 = vld [vmem:[%s2388_s20 + $0x21] sm:$0xff]  ;;  %v2412_v26 = vld [vmem:[%s2388_s20 + $0x31] sm:$0xff] }
  0x14   : > { %1941 = vmatmul.mubr.msk.f32.vlgmr.msra.gmra.mrb[0].mxu1 %vm222_vm0, %v1720_v20  ;;  %2021 = vmatmul.mubr.msk.f32.vlgmr.msra.gmra.mrb[0].mxu0 %vm222_vm0, %v2408_v24  ;;  %v2431_v32 = vld [vmem:[%s2388_s20 + $0x41] sm:$0xff]  ;;  %v2436_v33 = vld [vmem:[%s2388_s20 + $0x12] sm:$0xff] }
  0x15   : > { %2123 = vmatpush3.bf16.msra.mxu1 %v2120_v16  ;;  %2155 = vmatpush3.bf16.msra.mxu0 %v2152_v17  ;;  %v2451_v38 = vld [vmem:[%s2388_s20 + $0x51] sm:$0xff]  ;;  %v2456_v39 = vld [vmem:[%s2388_s20 + $0x22] sm:$0xff] }
  0x16   : > { %1943 = vmatprep.mubr.msk.f32.mxu1 %vm222_vm0, %v2408_v24  ;;  %2023 = vmatprep.mubr.msk.f32.mxu0 %vm222_vm0, %v2412_v26  ;;  %v2459_v40 = vld [vmem:[%s2388_s20 + $0x61] sm:$0xff]  ;;  %v2462_v41 = vld [vmem:[%s2388_s20 + $0x32] sm:$0xff] }
  0x17   : > { %2157 = vmatprep.subr.bf16.mxu0 %v2156_v25  ;;  %2125 = vmatprep.subr.bf16.mxu1 %v2124_v27  ;;  %v2477_v45 = vld [vmem:[%s2388_s20 + $0x71] sm:$0xff]  ;;  %v2482_v46 = vld [vmem:[%s2388_s20 + $0x42] sm:$0xff] }
  0x18   : > { %1944 = vmatmul.mubr.msk.f32.gmra.mrb[2].mxu1 %vm222_vm0, %v2412_v26  ;;  %2024 = vmatmul.mubr.msk.f32.gmra.mrb[2].mxu0 %vm222_vm0, %v2431_v32  ;;  %v197_v47 = vld [vmem:[%s2388_s20] sm:$0xff]  ;;  %v2486_v48 = vld [vmem:[%s2388_s20 + $0x52] sm:$0xff] }
  0x19   : > { %1946 = vmatprep.mubr.msk.f32.mxu1 %vm222_vm0, %v2431_v32  ;;  %2159 = vmatpush3.bf16.msra.mxu0 %v2156_v25  ;;  %v2500_v52 = vld [vmem:[%s2388_s20 + $0x10] sm:$0xff]  ;;  %v2505_v53 = vld [vmem:[%s2388_s20 + $0x62] sm:$0xff]  ;;  %v1811_v17 = vld [vmem:[%s2701_s1 + $0x118] sm:$0xff] }
  0x1a   : > { %2040 = vmatprep.mubr.msk.f32.mxu0 %vm222_vm0, %v2436_v33  ;;  %2161 = vmatprep.subr.bf16.mxu0 %v2160_v34  ;;  %v2508_v54 = vld [vmem:[%s2388_s20 + $0x20] sm:$0xff]  ;;  %v2511_v55 = vld [vmem:[%s2388_s20 + $0x72] sm:$0xff] }
  0x1b   : > { %2127 = vmatpush3.bf16.msra.mxu1 %v2124_v27  ;;  %v2524_v59 = vld [vmem:[%s2388_s20 + $0x30] sm:$0xff]  ;;  %v2531_v60 = vld [vmem:[%s2388_s20 + $0x82] sm:$0xff]  ;;  %v1820_v25 = vld [vmem:[%s2702_s2] ss:$0 sm:$0xff] }
  0x1c   : > { %1947 = vmatmul.mubr.msk.f32.gmra.mrb[4].mxu1 %vm222_vm0, %v2451_v38  ;;  %2129 = vmatprep.subr.bf16.mxu1 %v2128_v35  ;;  %v2534_v61 = vld [vmem:[%s2388_s20 + $0x40] sm:$0xff]  ;;  %v2549_v1 = vld [vmem:[%s2388_s20 + $0x50] sm:$0xff] }
  0x1d   : > { %2041 = vmatmul.mubr.msk.f32.vlgmr.msra.gmra.mrb[0].mxu0 %vm222_vm0, %v2456_v39  ;;  %1949 = vmatprep.mubr.msk.f32.mxu1 %vm222_vm0, %v2459_v40  ;;  %v2554_v2 = vld [vmem:[%s2388_s20 + $0x60] sm:$0xff]  ;;  %v204_v6 = vld [vmem:[%s2388_s20 + $0x70] sm:$0xff] }
  0x1e   : > { %2163 = vmatpush3.bf16.msra.mxu0 %v2160_v34  ;;  %2043 = vmatprep.mubr.msk.f32.mxu0 %vm222_vm0, %v2462_v41  ;;  %v481_v8 = vld [vmem:[%s2388_s20 + $0x2] sm:$0xff]  ;;  %v1767_v15 = vld [vmem:[%s2388_s20 + $0x90] sm:$0xff] }
  0x1f   : > { %2165 = vmatprep.subr.bf16.mxu0 %v2164_v42  ;;  %v1766_v13 = vld [vmem:[%s2388_s20 + $0x80] sm:$0xff]  ;;  %v1810_v16 = vld [vmem:[%s2701_s1 + $0x110] sm:$0xff] }
  0x20   : > { %1950 = vmatmul.mubr.msk.f32.gmra.mrb[6].mxu1 %vm222_vm0, %v2477_v45  ;;  %v2180_v18 = vpack.c.bf16 %v1811_v17, %v1810_v16  ;;  %v1786_v19 = vld [vmem:[%s2388_s20 + $0x81] sm:$0xff]  ;;  %v1787_v20 = vld [vmem:[%s2388_s20 + $0x91] sm:$0xff] }
  0x21   : > { %2044 = vmatmul.mubr.msk.f32.gmra.mrb[2].mxu0 %vm222_vm0, %v2482_v46  ;;  %1960 = vmatprep.mubr.msk.f32.mxu1 %vm222_vm0, %v197_v47 }
  0x22   : > { %2046 = vmatprep.mubr.msk.f32.mxu0 %vm222_vm0, %v2486_v48  ;;  %2167 = vmatpush3.bf16.msra.mxu0 %v2164_v42 }
  0x23   : > { %2169 = vmatprep.subr.bf16.mxu0 %v2168_v49 }
  0x24   : > { %1961 = vmatmul.mubr.msk.f32.vlgmr.msra.gmra.mrb[0].mxu1 %vm222_vm0, %v2500_v52 }
  0x25   : > { %2047 = vmatmul.mubr.msk.f32.gmra.mrb[4].mxu0 %vm222_vm0, %v2505_v53  ;;  %2131 = vmatpush3.bf16.msra.mxu1 %v2128_v35 }
  0x26   : > { %1963 = vmatprep.mubr.msk.f32.mxu1 %vm222_vm0, %v2508_v54  ;;  %2049 = vmatprep.mubr.msk.f32.mxu0 %vm222_vm0, %v2511_v55 }
  0x27   : > { %2133 = vmatprep.subr.bf16.mxu1 %v2132_v56 }
  0x28   : > { %1964 = vmatmul.mubr.msk.f32.gmra.mrb[2].mxu1 %vm222_vm0, %v2524_v59 }
  0x29   : > { %2050 = vmatmul.mubr.msk.f32.gmra.mrb[6].mxu0 %vm222_vm0, %v2531_v60  ;;  %1966 = vmatprep.mubr.msk.f32.mxu1 %vm222_vm0, %v2534_v61 }
  0x2a   : > { %2060 = vmatprep.mubr.msk.f32.mxu0 %vm222_vm0, %v2508_v54  ;;  %2135 = vmatpush3.bf16.msra.mxu1 %v2132_v56 }
  0x2b   : > { %2137 = vmatprep.subr.bf16.mxu1 %v2136_v62 }
  0x2c   : > { %1967 = vmatmul.mubr.msk.f32.gmra.mrb[4].mxu1 %vm222_vm0, %v2549_v1 }
  0x2d   : > { %2061 = vmatmul.mubr.msk.f32.vlgmr.msra.gmra.mrb[0].mxu0 %vm222_vm0, %v2524_v59  ;;  %1969 = vmatprep.mubr.msk.f32.mxu1 %vm222_vm0, %v2554_v2 }
  0x2e   : > { %2171 = vmatpush3.bf16.msra.mxu0 %v2168_v49  ;;  %2063 = vmatprep.mubr.msk.f32.mxu0 %vm222_vm0, %v2534_v61 }
  0x2f   : > { %2173 = vmatprep.subr.bf16.mxu0 %v2172_v3 }
  0x30   : > { %1970 = vmatmul.mubr.msk.f32.gmra.mrb[6].mxu1 %vm222_vm0, %v204_v6 }
  0x31   : > { %2064 = vmatmul.mubr.msk.f32.gmra.mrb[2].mxu0 %vm222_vm0, %v2549_v1  ;;  %1980 = vmatprep.mubr.msk.f32.mxu1 %vm222_vm0, %v481_v8 }
  0x32   : > { %2066 = vmatprep.mubr.msk.f32.mxu0 %vm222_vm0, %v2554_v2  ;;  %2175 = vmatpush3.bf16.msra.mxu0 %v2172_v3 }
  0x33   : > { %2177 = vmatprep.subr.bf16.mxu0 %v2176_v9 }
  0x34   : > { %1981 = vmatmul.mubr.msk.f32.vlgmr.msra.gmra.mrb[0].mxu1 %vm222_vm0, %v2436_v33 }
  0x35   : > { %2067 = vmatmul.mubr.msk.f32.gmra.mrb[4].mxu0 %vm222_vm0, %v204_v6  ;;  %2139 = vmatpush3.bf16.msra.mxu1 %v2136_v62 }
  0x36   : > { %1983 = vmatprep.mubr.msk.f32.mxu1 %vm222_vm0, %v2456_v39  ;;  %2069 = vmatprep.mubr.msk.f32.mxu0 %vm222_vm0, %v1766_v13 }
  0x37   : > { %2141 = vmatprep.subr.bf16.mxu1 %v2140_v14 }
  0x38   : > { %1984 = vmatmul.mubr.msk.f32.gmra.mrb[2].mxu1 %vm222_vm0, %v2462_v41 }
  0x39   : > { %2070 = vmatmul.mubr.msk.f32.gmra.mrb[6].mxu0 %vm222_vm0, %v1767_v15  ;;  %1986 = vmatprep.mubr.msk.f32.mxu1 %vm222_vm0, %v2482_v46 }
  0x3a   : > { %2080 = vmatprep.mubr.msk.f32.mxu0 %vm222_vm0, %v2408_v24  ;;  %2143 = vmatpush3.bf16.msra.mxu1 %v2140_v14 }
  0x3b   : > { %2184 = vmatprep.subr.bf16.mxu1 %v2357_v7 }
  0x3c   : > { %1987 = vmatmul.mubr.msk.f32.gmra.mrb[4].mxu1 %vm222_vm0, %v2486_v48 }
  0x3d   : > { %2081 = vmatmul.mubr.msk.f32.vlgmr.msra.gmra.mrb[0].mxu0 %vm222_vm0, %v2412_v26  ;;  %1989 = vmatprep.mubr.msk.f32.mxu1 %vm222_vm0, %v2505_v53 }
  0x3e   : > { %2179 = vmatpush3.bf16.msra.mxu0 %v2176_v9  ;;  %2083 = vmatprep.mubr.msk.f32.mxu0 %vm222_vm0, %v2431_v32 }
  0x3f   : > { %2181 = vmatprep.subr.bf16.mxu0 %v2180_v18 }
  0x40   : > { %1990 = vmatmul.mubr.msk.f32.gmra.mrb[6].mxu1 %vm222_vm0, %v2511_v55 }
  0x41   : > { %2084 = vmatmul.mubr.msk.f32.gmra.mrb[2].mxu0 %vm222_vm0, %v2451_v38  ;;  %2000 = vmatprep.mubr.msk.f32.mxu1 %vm222_vm0, %v2500_v52 }
  0x42   : > { %2086 = vmatprep.mubr.msk.f32.mxu0 %vm222_vm0, %v2459_v40  ;;  %2183 = vmatpush3.bf16.msra.mxu0 %v2180_v18 }
  0x44   : > { %2001 = vmatmul.mubr.msk.f32.vlgmr.msra.gmra.mrb[0].mxu1 %vm222_vm0, %v2508_v54 }
  0x45   : > { %2087 = vmatmul.mubr.msk.f32.gmra.mrb[4].mxu0 %vm222_vm0, %v2477_v45  ;;  %2186 = vmatpush3.bf16.msra.mxu1 %v2357_v7  ;;  %v1807_v7 = vld [vmem:[%s2388_s20 + $0x92] sm:$0xff] }
  0x46   : > { %2003 = vmatprep.mubr.msk.f32.mxu1 %vm222_vm0, %v2524_v59  ;;  %2089 = vmatprep.mubr.msk.f32.mxu0 %vm222_vm0, %v1786_v19 }
  0x47   : > { %2185 = vmatprep.subr.bf16.mxu1 %v2370_v12 }
  0x48   : > { %2004 = vmatmul.mubr.msk.f32.gmra.mrb[2].mxu1 %vm222_vm0, %v2534_v61 }
  0x49   : > { %2090 = vmatmul.mubr.msk.f32.gmra.mrb[6].mxu0 %vm222_vm0, %v1787_v20  ;;  %2006 = vmatprep.mubr.msk.f32.mxu1 %vm222_vm0, %v2549_v1 }
  0x4a   : > { %2100 = vmatprep.mubr.msk.f32.mxu0 %vm222_vm0, %v2456_v39  ;;  %2187 = vmatpush3.bf16.msra.mxu1 %v2370_v12 }
  0x4c   : > { %2007 = vmatmul.mubr.msk.f32.gmra.mrb[4].mxu1 %vm222_vm0, %v2554_v2 }
  0x4d   : > { %2101 = vmatmul.mubr.msk.f32.vlgmr.msra.gmra.mrb[0].mxu0 %vm222_vm0, %v2462_v41  ;;  %2009 = vmatprep.mubr.msk.f32.mxu1 %vm222_vm0, %v204_v6 }
  0x4e   : > { %2103 = vmatprep.mubr.msk.f32.mxu0 %vm222_vm0, %v2482_v46 }
  0x50   : > { %2010 = vmatmul.mubr.msk.f32.gmra.mrb[6].mxu1 %vm222_vm0, %v1766_v13 }
  0x51   : > { %2104 = vmatmul.mubr.msk.f32.gmra.mrb[2].mxu0 %vm222_vm0, %v2486_v48  ;;  %2026 = vmatprep.mubr.msk.f32.mxu1 %vm222_vm0, %v2451_v38 }
  0x52   : > { %2106 = vmatprep.mubr.msk.f32.mxu0 %vm222_vm0, %v2505_v53 }
  0x54   : > { %2027 = vmatmul.mubr.msk.f32.vlgmr.msra.gmra.mrb[4].mxu1 %vm222_vm0, %v2459_v40 }
  0x55   : > { %2107 = vmatmul.mubr.msk.f32.gmra.mrb[4].mxu0 %vm222_vm0, %v2511_v55  ;;  %2029 = vmatprep.mubr.msk.f32.mxu1 %vm222_vm0, %v2477_v45 }
  0x56   : > { %2109 = vmatprep.mubr.msk.f32.mxu0 %vm222_vm0, %v2531_v60 }
  0x58   : > { %2030 = vmatmul.mubr.msk.f32.gmra.mrb[6].mxu1 %vm222_vm0, %v1786_v19 }
  0x59   : > { %2110 = vmatmul.mubr.msk.f32.gmra.mrb[6].mxu0 %vm222_vm0, %v1807_v7 }
 0x117   : > { %v2002_v12 = vpop.f32.mrb[0].mxu1 }
 0x118   : > { %v737_v21 = vpop.f32.mrb[1].mxu1 }
 0x11b   : > { %v2005_v22 = vpop.f32.mrb[2].mxu1 }
 0x11c   : > { %v747_v23 = vpop.f32.mrb[3].mxu1 }
 0x120   : > { %v2102_v24 = vpop.f32.mrb[0].mxu0 }
 0x121   : > { %v2188_v26 = vadd.f32 %v2102_v24, %v2002_v12  ;;  %v1490_v27 = vpop.f32.mrb[1].mxu0 }
 0x122   : > { %v2189_v28 = vadd.f32 %v1490_v27, %v737_v21 }
 0x123   : > { %v1545_v29 = vadd.f32 %v2188_v26, %v1820_v25 }
 0x124   : > { %v1544_v30 = vadd.f32 %v2189_v28, %v1820_v25  ;;  %v2105_v31 = vpop.f32.mrb[2].mxu0 }
 0x125   : > { %v1553_v32 = vmax.f32 %v1545_v29, 0.0  ;;  %v2190_v33 = vadd.f32 %v2105_v31, %v2005_v22  ;;  %v1500_v34 = vpop.f32.mrb[3].mxu0 }
 0x126   : > { %v1552_v35 = vmax.f32 %v1544_v30, 0.0  ;;  %v2191_v36 = vadd.f32 %v1500_v34, %v747_v23 }
 0x127   : > { %1562 = vst.msk [vmem:[%s2673_s29 + $0x8] sm:$0xff] %vm1560_vm1, %v1553_v32  ;;  %v1547_v37 = vadd.f32 %v2190_v33, %v1820_v25  ;;  %v2028_v38 = vpop.f32.mrb[4].mxu1 }
 0x128   : > { %1561 = vst.msk [vmem:[%s2673_s29] sm:$0xff] %vm1560_vm1, %v1552_v35  ;;  %v1546_v39 = vadd.f32 %v2191_v36, %v1820_v25  ;;  %v2108_v40 = vpop.f32.mrb[4].mxu0  ;;  %v907_v41 = vpop.f32.mrb[5].mxu1 }
 0x129   : > { %v1555_v42 = vmax.f32 %v1547_v37, 0.0  ;;  %v2192_v43 = vadd.f32 %v2108_v40, %v2028_v38  ;;  %v1510_v44 = vpop.f32.mrb[5].mxu0 }
 0x12a   : > { %v1554_v45 = vmax.f32 %v1546_v39, 0.0  ;;  %v2193_v46 = vadd.f32 %v1510_v44, %v907_v41 }
 0x12b   : > { %1564 = vst.msk [vmem:[%s2673_s29 + $0x18] sm:$0xff] %vm1560_vm1, %v1555_v42  ;;  %v1549_v47 = vadd.f32 %v2192_v43, %v1820_v25  ;;  %v2031_v48 = vpop.f32.mrb[6].mxu1 }
 0x12c   : > { %1563 = vst.msk [vmem:[%s2673_s29 + $0x10] sm:$0xff] %vm1560_vm1, %v1554_v45  ;;  %v1548_v49 = vadd.f32 %v2193_v46, %v1820_v25  ;;  %v2111_v50 = vpop.f32.mrb[6].mxu0  ;;  %v917_v51 = vpop.f32.mrb[7].mxu1 }
 0x12d   : > { %v1557_v52 = vmax.f32 %v1549_v47, 0.0  ;;  %v2194_v53 = vadd.f32 %v2111_v50, %v2031_v48  ;;  %v1520_v54 = vpop.f32.mrb[7].mxu0 }
 0x12e   : > { %v1556_v55 = vmax.f32 %v1548_v49, 0.0  ;;  %v2195_v56 = vadd.f32 %v1520_v54, %v917_v51 }
 0x12f   : > { %1566 = vst.msk [vmem:[%s2673_s29 + $0x28] sm:$0xff] %vm1560_vm1, %v1557_v52  ;;  %v1551_v57 = vadd.f32 %v2194_v53, %v1820_v25 }
 0x130   : > { %1565 = vst.msk [vmem:[%s2673_s29 + $0x20] sm:$0xff] %vm1560_vm1, %v1556_v55  ;;  %v1550_v58 = vadd.f32 %v2195_v56, %v1820_v25 }
 0x131   : > { %v1559_v59 = vmax.f32 %v1551_v57, 0.0 }
 0x132   : > { %v1558_v60 = vmax.f32 %v1550_v58, 0.0 }
 0x133   : > { %1568 = vst.msk [vmem:[%s2673_s29 + $0x38] sm:$0xff] %vm1560_vm1, %v1559_v59 }
 0x134   : > { %1567 = vst.msk [vmem:[%s2673_s29 + $0x30] sm:$0xff] %vm1560_vm1, %v1558_v60 }
 0x135 PF: > { %s13_s14 = sadd.s32 1, %s2299_s14   ;;  %s2704_s12 = smov %s2295_s13 }
 0x136   : > { %p10_p5 = scmp.ge.s32.totalorder %s13_s14, 4   ;;  %s2705_s13 = smov %s2707_s15 }
 0x138   :  { %12 = sbr.rel (!%p10_p5) target bundleno = 2 (0x2), region = 73 }

// kernel: autoencoder_forward.14
= control target key start
LH: loop header
LB: loop body
LE: loop exit
PB: predicated region body
PF: predicated region fallthrough
CT: control target
= control target key end

     0   :  { %s1837_s12 = smov 0   ;;  %s1839_s13 = smov 0   ;;  %s2131_s0 = inlined_call_operand.vmem [shape: f32[2,6,6,64], index: 0, kind: input, shape index: {}]   ;;  %s2132_s1 = inlined_call_operand.vmem [shape: f32[3,3,64,128], index: 1, kind: input, shape index: {}]   ;;  %s2133_s2 = inlined_call_operand.vmem [shape: f32[1,128], index: 2, kind: input, shape index: {}]   ;;  %s2134_s3 = inlined_call_operand.vmem [shape: f32[2,4,4,128], index: 3, kind: output, shape index: {}]  }
   0x1   :  { %s1841_s14 = smov 0  }
   0x2 LB: > { %s25_s15 = sadd.s32 1, %s1811_s13  ;;  %p1215_p0 = scmp.ge.s32.totalorder %s1815_s14, 1  ;;  %s1815_s14 = sphi %s1841_s14, %s13_s14   ;;  %s1811_s13 = sphi %s1839_s13, %s2136_s13   ;;  %s1807_s12 = sphi %s1837_s12, %s2135_s12  }
   0x3   : > { %p27_p1 = scmp.ge.s32.totalorder %s25_s15, 2  ;;  %p151_p2 = scmp.lt.s32.totalorder %s1815_s14, 3 }
   0x5   : > { %s2138_s15 = smov (%p27_p1, %s25_s15), 0  ;;  %p152_p3 = pnand %p1215_p0, %p151_p2 }
   0x6   : > { %v1219_v0 = vld [vmem:[%s2132_s1 + $0x40] sm:$0xff] (!%p152_p3)  ;;  %v1220_v1 = vld [vmem:[%s2132_s1 + $0x48] sm:$0xff] (!%p152_p3)  ;;  %p179_p4 = scmp.lt.s32.totalorder (!%p152_p3), %s1807_s12, 1  ;;  %v1221_v5 = vld [vmem:[%s2132_s1 + $0x50] sm:$0xff] (!%p152_p3)  ;;  %vm228_vm0 = vcmask (!%p152_p3), 523264  }
   0x7   : > { %155 = sbr.rel (%p152_p3) target bundleno = 312 (0x138), region = 32  ;;  %v1259_v2 = vld [vmem:[%s2132_s1 + $0x100] sm:$0xff] (!%p152_p3)  ;;  %v1590_v3 = vpack.c.bf16 (!%p152_p3), %v1220_v1, %v1219_v0  ;;  %v1260_v4 = vld [vmem:[%s2132_s1 + $0x108] sm:$0xff] (!%p152_p3)  ;;  %v1222_v6 = vld [vmem:[%s2132_s1 + $0x58] sm:$0xff] (!%p152_p3) }
   0x8   : > { %v1654_v7 = vpack.c.bf16 (!%p152_p3), %v1260_v4, %v1259_v2  ;;  %v1594_v8 = vpack.c.bf16 (!%p152_p3), %v1222_v6, %v1221_v5  ;;  %v1261_v9 = vld [vmem:[%s2132_s1 + $0x110] sm:$0xff] (!%p152_p3)  ;;  %v1262_v10 = vld [vmem:[%s2132_s1 + $0x118] sm:$0xff] (!%p152_p3)  ;;  %v1223_v11 = vld [vmem:[%s2132_s1 + $0x60] sm:$0xff] (!%p152_p3) }
   0x9   : > { %1591 = vmatprep.subr.bf16.mxu1 (!%p152_p3), %v1590_v3  ;;  %v1658_v12 = vpack.c.bf16 (!%p152_p3), %v1262_v10, %v1261_v9  ;;  %v1224_v13 = vld [vmem:[%s2132_s1 + $0x68] sm:$0xff] (!%p152_p3)  ;;  %v1263_v14 = vld [vmem:[%s2132_s1 + $0x120] sm:$0xff] (!%p152_p3)  ;;  %v1225_v17 = vld [vmem:[%s2132_s1 + $0x70] sm:$0xff] (!%p152_p3) }
   0xa   : > { %v1264_v15 = vld [vmem:[%s2132_s1 + $0x128] sm:$0xff] (!%p152_p3)  ;;  %1655 = vmatprep.subr.bf16.mxu0 (!%p152_p3), %v1654_v7  ;;  %1593 = vmatpush3.bf16.msra.mxu1 (!%p152_p3), %v1590_v3  ;;  %v1598_v16 = vpack.c.bf16 (!%p152_p3), %v1224_v13, %v1223_v11  ;;  %v1226_v19 = vld [vmem:[%s2132_s1 + $0x78] sm:$0xff] (!%p152_p3)  ;;  %v1265_v20 = vld [vmem:[%s2132_s1 + $0x130] sm:$0xff] (!%p152_p3) }
   0xb   : > { %1657 = vmatpush3.bf16.msra.mxu0 (!%p152_p3), %v1654_v7  ;;  %1595 = vmatprep.subr.bf16.mxu1 (!%p152_p3), %v1594_v8  ;;  %v1662_v18 = vpack.c.bf16 (!%p152_p3), %v1264_v15, %v1263_v14  ;;  %v1266_v21 = vld [vmem:[%s2132_s1 + $0x138] sm:$0xff] (!%p152_p3)  ;;  %v1602_v24 = vpack.c.bf16 (!%p152_p3), %v1226_v19, %v1225_v17  ;;  %v201_v25 = vld [vmem:[%s2132_s1] sm:$0xff] (!%p152_p3)  ;;  %v202_v27 = vld [vmem:[%s2132_s1 + $0x8] sm:$0xff] (!%p152_p3) }
   0xc   : > { %1659 = vmatprep.subr.bf16.mxu0 (!%p152_p3), %v1658_v12  ;;  %v1666_v26 = vpack.c.bf16 (!%p152_p3), %v1266_v21, %v1265_v20  ;;  %v1273_v28 = vld [vmem:[%s2132_s1 + $0x140] sm:$0xff] (!%p152_p3)  ;;  %v1274_v29 = vld [vmem:[%s2132_s1 + $0x148] sm:$0xff] (!%p152_p3)  ;;  %v1606_v30 = vpack.c.bf16 (!%p152_p3), %v202_v27, %v201_v25  ;;  %v203_v32 = vld [vmem:[%s2132_s1 + $0x10] sm:$0xff] (!%p152_p3) }
   0xd   : > { %v1670_v33 = vpack.c.bf16 (!%p152_p3), %v1274_v29, %v1273_v28  ;;  %v204_v35 = vld [vmem:[%s2132_s1 + $0x18] sm:$0xff] (!%p152_p3)  ;;  %v1275_v36 = vld [vmem:[%s2132_s1 + $0x150] sm:$0xff] (!%p152_p3)  ;;  %v205_v38 = vld [vmem:[%s2132_s1 + $0x20] sm:$0xff] (!%p152_p3) }
   0xe   : > { %s2140_s12 = smov (!%p179_p4, %s1807_s12), 1  ;;  %1597 = vmatpush3.bf16.msra.mxu1 %v1594_v8  ;;  %v1276_v37 = vld [vmem:[%s2132_s1 + $0x158] sm:$0xff]  ;;  %v1610_v39 = vpack.c.bf16 %v204_v35, %v203_v32  ;;  %v206_v40 = vld [vmem:[%s2132_s1 + $0x28] sm:$0xff]  ;;  %v1277_v41 = vld [vmem:[%s2132_s1 + $0x160] sm:$0xff] }
   0xf   : > { %s1750_s17 = smul.u32 48, %s2140_s12  ;;  %1661 = vmatpush3.bf16.msra.mxu0 %v1658_v12  ;;  %1599 = vmatprep.subr.bf16.mxu1 %v1598_v16  ;;  %v1278_v42 = vld [vmem:[%s2132_s1 + $0x168] sm:$0xff]  ;;  %v1674_v43 = vpack.c.bf16 %v1276_v37, %v1275_v36  ;;  %v1614_v46 = vpack.c.bf16 %v206_v40, %v205_v38  ;;  %v207_v48 = vld [vmem:[%s2132_s1 + $0x30] sm:$0xff]  ;;  %v208_v49 = vld [vmem:[%s2132_s1 + $0x38] sm:$0xff]  ;;  %s1328_s6 = sshll.u32 %s2140_s12, 4 }
  0x10   : > { %1663 = vmatprep.subr.bf16.mxu0 %v1662_v18  ;;  %v1678_v47 = vpack.c.bf16 %v1278_v42, %v1277_v41  ;;  %v1279_v50 = vld [vmem:[%s2132_s1 + $0x170] sm:$0xff]  ;;  %v1280_v51 = vld [vmem:[%s2132_s1 + $0x178] sm:$0xff]  ;;  %v1618_v52 = vpack.c.bf16 %v208_v49, %v207_v48  ;;  %v1231_v53 = vld [vmem:[%s2132_s1 + $0x80] sm:$0xff]  ;;  %s192_s9 = scalar_lea.vmem %s2134_s3, %s1328_s6 }
  0x11   : > { %s1909_s28 = scalar_lea.vmem %s2131_s0, %s1750_s17  ;;  %v1682_v54 = vpack.c.bf16 %v1280_v51, %v1279_v50  ;;  %v1232_v55 = vld [vmem:[%s2132_s1 + $0x88] sm:$0xff]  ;;  %v1287_v56 = vld [vmem:[%s2132_s1 + $0x180] sm:$0xff]  ;;  %v1233_v60 = vld [vmem:[%s2132_s1 + $0x90] sm:$0xff] }
  0x12   : > { %v1775_v22 = vld [vmem:[%s1909_s28 + $0x1] ss:$8 sps:$4 sm:$0xff]   ;;  %1601 = vmatpush3.bf16.msra.mxu1 %v1598_v16  ;;  %v1777_v31 = vld [vmem:[%s1909_s28 + $0x11] ss:$8 sps:$4 sm:$0xff]   ;;  %v1622_v58 = vpack.c.bf16 %v1232_v55, %v1231_v53 }
  0x13   : > { %v1776_v23 = vld [vmem:[%s1909_s28 + $0x9] ss:$8 sps:$4 sm:$0xff]   ;;  %1435 = vmatprep.mubr.msk.f32.mxu1 %vm228_vm0, %v1775_v22  ;;  %1665 = vmatpush3.bf16.msra.mxu0 %v1662_v18  ;;  %v1778_v34 = vld [vmem:[%s1909_s28 + $0x19] ss:$8 sps:$4 sm:$0xff]  }
  0x14   : > { %1511 = vmatprep.mubr.msk.f32.mxu0 %vm228_vm0, %v1776_v23  ;;  %1603 = vmatprep.subr.bf16.mxu1 %v1602_v24  ;;  %v1779_v44 = vld [vmem:[%s1909_s28] ss:$8 sps:$4 sm:$0xff]   ;;  %v1234_v61 = vld [vmem:[%s2132_s1 + $0x98] sm:$0xff]  ;;  %v1289_v63 = vld [vmem:[%s2132_s1 + $0x190] sm:$0xff] }
  0x15   : > { %1667 = vmatprep.subr.bf16.mxu0 %v1666_v26  ;;  %v1780_v45 = vld [vmem:[%s1909_s28 + $0xa] ss:$8 sps:$4 sm:$0xff]   ;;  %v1290_v0 = vld [vmem:[%s2132_s1 + $0x198] sm:$0xff]  ;;  %v1235_v2 = vld [vmem:[%s2132_s1 + $0xa0] sm:$0xff]  ;;  %v1626_v4 = vpack.c.bf16 %v1234_v61, %v1233_v60 }
  0x16   : > { %1605 = vmatpush3.bf16.msra.mxu1 %v1602_v24  ;;  %v1288_v57 = vld [vmem:[%s2132_s1 + $0x188] sm:$0xff]  ;;  %v1781_v62 = vld [vmem:[%s1909_s28 + $0x10] ss:$8 sps:$4 sm:$0xff]   ;;  %v1291_v5 = vld [vmem:[%s2132_s1 + $0x1a0] sm:$0xff]  ;;  %v1690_v7 = vpack.c.bf16 %v1290_v0, %v1289_v63 }
  0x17   : > { %1669 = vmatpush3.bf16.msra.mxu0 %v1666_v26  ;;  %1607 = vmatprep.subr.bf16.mxu1 %v1606_v30  ;;  %v1686_v59 = vpack.c.bf16 %v1288_v57, %v1287_v56  ;;  %v1782_v1 = vld [vmem:[%s1909_s28 + $0x1a] ss:$8 sps:$4 sm:$0xff]   ;;  %v1236_v3 = vld [vmem:[%s2132_s1 + $0xa8] sm:$0xff]  ;;  %v1237_v12 = vld [vmem:[%s2132_s1 + $0xb0] sm:$0xff] }
  0x18   : > { %1671 = vmatprep.subr.bf16.mxu0 %v1670_v33  ;;  %v1292_v6 = vld [vmem:[%s2132_s1 + $0x1a8] sm:$0xff]  ;;  %v1784_v9 = vld [vmem:[%s1909_s28 + $0x10] ss:$8 sps:$4 sm:$0xff]   ;;  %v1630_v10 = vpack.c.bf16 %v1236_v3, %v1235_v2  ;;  %v1245_v18 = vld [vmem:[%s2132_s1 + $0xc0] sm:$0xff] }
  0x19   : > { %1436 = vmatmul.mubr.msk.f32.vlgmr.msra.gmra.mrb[0].mxu1 %vm228_vm0, %v1777_v31  ;;  %v1783_v8 = vld [vmem:[%s1909_s28 + $0x2] ss:$8 sps:$4 sm:$0xff]   ;;  %v1694_v11 = vpack.c.bf16 %v1292_v6, %v1291_v5  ;;  %v1238_v13 = vld [vmem:[%s2132_s1 + $0xb8] sm:$0xff]  ;;  %v1293_v14 = vld [vmem:[%s2132_s1 + $0x1b0] sm:$0xff] }
  0x1a   : > { %1609 = vmatpush3.bf16.msra.mxu1 %v1606_v30  ;;  %1512 = vmatmul.mubr.msk.f32.vlgmr.msra.gmra.mrb[0].mxu0 %vm228_vm0, %v1778_v34  ;;  %v1294_v15 = vld [vmem:[%s2132_s1 + $0x1b8] sm:$0xff]  ;;  %v1634_v16 = vpack.c.bf16 %v1238_v13, %v1237_v12  ;;  %v1246_v19 = vld [vmem:[%s2132_s1 + $0xc8] sm:$0xff]  ;;  %v1301_v20 = vld [vmem:[%s2132_s1 + $0x1c0] sm:$0xff] }
  0x1b   : > { %1673 = vmatpush3.bf16.msra.mxu0 %v1670_v33  ;;  %1611 = vmatprep.subr.bf16.mxu1 %v1610_v39  ;;  %v1698_v17 = vpack.c.bf16 %v1294_v15, %v1293_v14  ;;  %v1302_v21 = vld [vmem:[%s2132_s1 + $0x1c8] sm:$0xff]  ;;  %v1638_v22 = vpack.c.bf16 %v1246_v19, %v1245_v18  ;;  %v1247_v24 = vld [vmem:[%s2132_s1 + $0xd0] sm:$0xff]  ;;  %v1248_v25 = vld [vmem:[%s2132_s1 + $0xd8] sm:$0xff] }
  0x1c   : > { %1675 = vmatprep.subr.bf16.mxu0 %v1674_v43  ;;  %1454 = vmatprep.mubr.msk.f32.mxu1 %vm228_vm0, %v1779_v44  ;;  %v1702_v23 = vpack.c.bf16 %v1302_v21, %v1301_v20  ;;  %v1785_v26 = vld [vmem:[%s1909_s28 + $0x12] ss:$8 sps:$4 sm:$0xff]   ;;  %v1786_v29 = vld [vmem:[%s1909_s28 + $0x20] ss:$8 sps:$4 sm:$0xff]   ;;  %v1642_v30 = vpack.c.bf16 %v1248_v25, %v1247_v24 }
  0x1d   : > { %1530 = vmatprep.mubr.msk.f32.mxu0 %vm228_vm0, %v1780_v45  ;;  %v1303_v27 = vld [vmem:[%s2132_s1 + $0x1d0] sm:$0xff]  ;;  %v1304_v28 = vld [vmem:[%s2132_s1 + $0x1d8] sm:$0xff]  ;;  %v1249_v32 = vld [vmem:[%s2132_s1 + $0xe0] sm:$0xff] }
  0x1e   : > { %1613 = vmatpush3.bf16.msra.mxu1 %v1610_v39  ;;  %v1706_v31 = vpack.c.bf16 %v1304_v28, %v1303_v27  ;;  %v1250_v33 = vld [vmem:[%s2132_s1 + $0xe8] sm:$0xff]  ;;  %v1305_v35 = vld [vmem:[%s2132_s1 + $0x1e0] sm:$0xff]  ;;  %v1789_v37 = vld [vmem:[%s1909_s28 + $0x11] ss:$8 sps:$4 sm:$0xff]  }
  0x1f   : > { %1677 = vmatpush3.bf16.msra.mxu0 %v1674_v43  ;;  %1615 = vmatprep.subr.bf16.mxu1 %v1614_v46  ;;  %v1787_v34 = vld [vmem:[%s1909_s28 + $0x8] ss:$8 sps:$4 sm:$0xff]   ;;  %v1646_v38 = vpack.c.bf16 %v1250_v33, %v1249_v32  ;;  %v1252_v41 = vld [vmem:[%s2132_s1 + $0xf8] sm:$0xff]  ;;  %v1319_v55 = vld [vmem:[%s2132_s1 + $0x220] sm:$0xff] }
  0x20   : > { %1679 = vmatprep.subr.bf16.mxu0 %v1678_v47  ;;  %v1306_v36 = vld [vmem:[%s2132_s1 + $0x1e8] sm:$0xff]  ;;  %v1251_v40 = vld [vmem:[%s2132_s1 + $0xf0] sm:$0xff]  ;;  %v1308_v43 = vld [vmem:[%s2132_s1 + $0x1f8] sm:$0xff] }
  0x21   : > { %v1710_v39 = vpack.c.bf16 %v1306_v36, %v1305_v35  ;;  %v1307_v42 = vld [vmem:[%s2132_s1 + $0x1f0] sm:$0xff]  ;;  %v1650_v44 = vpack.c.bf16 %v1252_v41, %v1251_v40  ;;  %v1788_v49 = vld [vmem:[%s1909_s28 + $0x18] ss:$8 sps:$4 sm:$0xff]   ;;  %v1320_v56 = vld [vmem:[%s2132_s1 + $0x228] sm:$0xff] }
  0x22   : > { %1617 = vmatpush3.bf16.msra.mxu1 %v1614_v46  ;;  %v1714_v45 = vpack.c.bf16 %v1308_v43, %v1307_v42  ;;  %v1315_v46 = vld [vmem:[%s2132_s1 + $0x200] sm:$0xff]  ;;  %v1317_v50 = vld [vmem:[%s2132_s1 + $0x210] sm:$0xff]  ;;  %v1318_v51 = vld [vmem:[%s2132_s1 + $0x218] sm:$0xff]  ;;  %v1726_v57 = vpack.c.bf16 %v1320_v56, %v1319_v55 }
  0x23   : > { %1681 = vmatpush3.bf16.msra.mxu0 %v1678_v47  ;;  %1619 = vmatprep.subr.bf16.mxu1 %v1618_v52  ;;  %v1316_v47 = vld [vmem:[%s2132_s1 + $0x208] sm:$0xff]  ;;  %v1791_v53 = vld [vmem:[%s1909_s28 + $0x12] ss:$8 sps:$4 sm:$0xff]  }
  0x24   : > { %1683 = vmatprep.subr.bf16.mxu0 %v1682_v54  ;;  %v1718_v48 = vpack.c.bf16 %v1316_v47, %v1315_v46  ;;  %v1792_v61 = vld [vmem:[%s1909_s28 + $0x22] ss:$8 sps:$4 sm:$0xff]  }
  0x26   : > { %1621 = vmatpush3.bf16.msra.mxu1 %v1618_v52  ;;  %v1790_v52 = vld [vmem:[%s1909_s28 + $0x21] ss:$8 sps:$4 sm:$0xff]  }
  0x27   : > { %1685 = vmatpush3.bf16.msra.mxu0 %v1682_v54  ;;  %1623 = vmatprep.subr.bf16.mxu1 %v1622_v58  ;;  %v1722_v54 = vpack.c.bf16 %v1318_v51, %v1317_v50 }
  0x28   : > { %1687 = vmatprep.subr.bf16.mxu0 %v1686_v59 }
  0x29   : > { %1455 = vmatmul.mubr.msk.f32.vlgmr.msra.gmra.mrb[0].mxu1 %vm228_vm0, %v1781_v62 }
  0x2a   : > { %1625 = vmatpush3.bf16.msra.mxu1 %v1622_v58  ;;  %1531 = vmatmul.mubr.msk.f32.vlgmr.msra.gmra.mrb[0].mxu0 %vm228_vm0, %v1782_v1  ;;  %v1321_v58 = vld [vmem:[%s2132_s1 + $0x230] sm:$0xff]  ;;  %v1325_v1 = vld [vmem:[%s2133_s2] ss:$0 sm:$0xff] }
  0x2b   : > { %1689 = vmatpush3.bf16.msra.mxu0 %v1686_v59  ;;  %1627 = vmatprep.subr.bf16.mxu1 %v1626_v4  ;;  %v1322_v59 = vld [vmem:[%s2132_s1 + $0x238] sm:$0xff] }
  0x2c   : > { %1691 = vmatprep.subr.bf16.mxu0 %v1690_v7  ;;  %1473 = vmatprep.mubr.msk.f32.mxu1 %vm228_vm0, %v1783_v8  ;;  %v1730_v60 = vpack.c.bf16 %v1322_v59, %v1321_v58 }
  0x2d   : > { %1549 = vmatprep.mubr.msk.f32.mxu0 %vm228_vm0, %v1784_v9 }
  0x2e   : > { %1629 = vmatpush3.bf16.msra.mxu1 %v1626_v4 }
  0x2f   : > { %1693 = vmatpush3.bf16.msra.mxu0 %v1690_v7  ;;  %1631 = vmatprep.subr.bf16.mxu1 %v1630_v10 }
  0x30   : > { %1695 = vmatprep.subr.bf16.mxu0 %v1694_v11 }
  0x32   : > { %1633 = vmatpush3.bf16.msra.mxu1 %v1630_v10 }
  0x33   : > { %1697 = vmatpush3.bf16.msra.mxu0 %v1694_v11  ;;  %1635 = vmatprep.subr.bf16.mxu1 %v1634_v16 }
  0x34   : > { %1699 = vmatprep.subr.bf16.mxu0 %v1698_v17 }
  0x36   : > { %1637 = vmatpush3.bf16.msra.mxu1 %v1634_v16 }
  0x37   : > { %1701 = vmatpush3.bf16.msra.mxu0 %v1698_v17  ;;  %1639 = vmatprep.subr.bf16.mxu1 %v1638_v22 }
  0x38   : > { %1703 = vmatprep.subr.bf16.mxu0 %v1702_v23 }
  0x39   : > { %1474 = vmatmul.mubr.msk.f32.vlgmr.msra.gmra.mrb[0].mxu1 %vm228_vm0, %v1785_v26 }
  0x3a   : > { %1641 = vmatpush3.bf16.msra.mxu1 %v1638_v22  ;;  %1550 = vmatmul.mubr.msk.f32.vlgmr.msra.gmra.mrb[0].mxu0 %vm228_vm0, %v1786_v29 }
  0x3b   : > { %1705 = vmatpush3.bf16.msra.mxu0 %v1702_v23  ;;  %1643 = vmatprep.subr.bf16.mxu1 %v1642_v30 }
  0x3c   : > { %1707 = vmatprep.subr.bf16.mxu0 %v1706_v31  ;;  %1492 = vmatprep.mubr.msk.f32.mxu1 %vm228_vm0, %v1787_v34 }
  0x3d   : > { %1568 = vmatprep.mubr.msk.f32.mxu0 %vm228_vm0, %v1789_v37 }
  0x3e   : > { %1645 = vmatpush3.bf16.msra.mxu1 %v1642_v30 }
  0x3f   : > { %1709 = vmatpush3.bf16.msra.mxu0 %v1706_v31  ;;  %1647 = vmatprep.subr.bf16.mxu1 %v1646_v38 }
  0x40   : > { %1711 = vmatprep.subr.bf16.mxu0 %v1710_v39 }
  0x42   : > { %1649 = vmatpush3.bf16.msra.mxu1 %v1646_v38 }
  0x43   : > { %1713 = vmatpush3.bf16.msra.mxu0 %v1710_v39  ;;  %1651 = vmatprep.subr.bf16.mxu1 %v1650_v44 }
  0x44   : > { %1715 = vmatprep.subr.bf16.mxu0 %v1714_v45 }
  0x46   : > { %1653 = vmatpush3.bf16.msra.mxu1 %v1650_v44 }
  0x47   : > { %1717 = vmatpush3.bf16.msra.mxu0 %v1714_v45 }
  0x48   : > { %1719 = vmatprep.subr.bf16.mxu0 %v1718_v48 }
  0x49   : > { %1493 = vmatmul.mubr.msk.f32.vlgmr.msra.gmra.mrb[0].mxu1 %vm228_vm0, %v1788_v49 }
  0x4a   : > { %1569 = vmatmul.mubr.msk.f32.vlgmr.msra.gmra.mrb[0].mxu0 %vm228_vm0, %v1790_v52 }
  0x4b   : > { %1721 = vmatpush3.bf16.msra.mxu0 %v1718_v48  ;;  %1587 = vmatprep.mubr.msk.f32.mxu0 %vm228_vm0, %v1791_v53 }
  0x4c   : > { %1723 = vmatprep.subr.bf16.mxu0 %v1722_v54 }
  0x4f   : > { %1725 = vmatpush3.bf16.msra.mxu0 %v1722_v54 }
  0x50   : > { %1727 = vmatprep.subr.bf16.mxu0 %v1726_v57 }
  0x53   : > { %1729 = vmatpush3.bf16.msra.mxu0 %v1726_v57 }
  0x54   : > { %1731 = vmatprep.subr.bf16.mxu0 %v1730_v60 }
  0x57   : > { %1733 = vmatpush3.bf16.msra.mxu0 %v1730_v60 }
  0x5a   : > { %1588 = vmatmul.mubr.msk.f32.vlgmr.msra.gmra.mrb[0].mxu0 %vm228_vm0, %v1792_v61 }
 0x11c   : > { %v1494_v62 = vpop.f32.mrb[0].mxu1 }
 0x11d   : > { %v585_v63 = vpop.f32.mrb[1].mxu1 }
 0x12d   : > { %v1589_v0 = vpop.f32.mrb[0].mxu0 }
 0x12e   : > { %v1734_v2 = vadd.f32 %v1589_v0, %v1494_v62  ;;  %v1088_v3 = vpop.f32.mrb[1].mxu0 }
 0x12f   : > { %v1735_v4 = vadd.f32 %v1088_v3, %v585_v63 }
 0x130   : > { %v1107_v5 = vadd.f32 %v1734_v2, %v1325_v1 }
 0x131   : > { %v1106_v6 = vadd.f32 %v1735_v4, %v1325_v1 }
 0x132   : > { %v1109_v7 = vmax.f32 %v1107_v5, 0.0 }
 0x133   : > { %v1108_v8 = vmax.f32 %v1106_v6, 0.0 }
 0x134   : > { %v1113_v9 = vcombine.high %v1109_v7, %v1109_v7  ;;  %1118 = vst [vmem:[%s192_s9 + $0x8] sm:$0xf] %v1109_v7 }
 0x135   : > { %v1112_v10 = vcombine.high %v1108_v8, %v1108_v8  ;;  %1116 = vst [vmem:[%s192_s9] sm:$0xf] %v1108_v8 }
 0x136   : > { %1119 = vst [vmem:[%s192_s9 + $0xc] sm:$0xf] %v1113_v9 }
 0x137   : > { %1117 = vst [vmem:[%s192_s9 + $0x4] sm:$0xf] %v1112_v10 }
 0x138 PF: > { %s13_s14 = sadd.s32 1, %s1815_s14   ;;  %s2135_s12 = smov %s1811_s13 }
 0x139   : > { %p10_p5 = scmp.ge.s32.totalorder %s13_s14, 4   ;;  %s2136_s13 = smov %s2138_s15 }
 0x13b   :  { %12 = sbr.rel (!%p10_p5) target bundleno = 2 (0x2), region = 73 }

// kernel: autoencoder_forward.16
= control target key start
LH: loop header
LB: loop body
LE: loop exit
PB: predicated region body
PF: predicated region fallthrough
CT: control target
= control target key end

     0   :  { %v1384_v38 = vmov 1966171168   ;;  %v161_v40 = vlaneseq  ;;  %s1813_s1 = inlined_call_operand.vmem [shape: bf16[512,512], index: 1, kind: input, shape index: {}]   ;;  %s1814_s0 = inlined_call_operand.vmem [shape: bf16[2,512], index: 0, kind: input, shape index: {}]   ;;  %s1815_s2 = inlined_call_operand.vmem [shape: f32[1,512], index: 2, kind: input, shape index: {}]   ;;  %s1816_s3 = inlined_call_operand.vmem [shape: f32[2,512], index: 3, kind: output, shape index: {}]  }
   0x1   :  { %v1192_v0 = vld [vmem:[%s1813_s1 + $0x4] ss:$16 sps:$4 sm:$0xff]   ;;  %v1194_v1 = vld [vmem:[%s1813_s1 + $0xc] ss:$16 sps:$4 sm:$0xff]   ;;  %v1196_v2 = vld [vmem:[%s1813_s1] ss:$16 sps:$4 sm:$0xff]   ;;  %v159_v39 = vunpack.c.l.s4 %v1384_v38 }
   0x2   :  { %818 = vmatprep.subr.bf16.mxu0 %v1192_v0  ;;  %v1197_v3 = vld [vmem:[%s1813_s1 + $0x8] ss:$16 sps:$4 sm:$0xff]   ;;  %900 = vmatprep.subr.bf16.mxu1 %v1194_v1  ;;  %v1198_v4 = vld [vmem:[%s1813_s1 + $0x24] ss:$16 sps:$4 sm:$0xff]   ;;  %v1200_v5 = vld [vmem:[%s1813_s1 + $0x2c] ss:$16 sps:$4 sm:$0xff]  }
   0x3   :  { %819 = vmatpush1.bf16.msra.mxu0 %v1196_v2  ;;  %901 = vmatpush1.bf16.msra.mxu1 %v1197_v3  ;;  %v1202_v6 = vld [vmem:[%s1813_s1 + $0x20] ss:$16 sps:$4 sm:$0xff]   ;;  %v1203_v7 = vld [vmem:[%s1813_s1 + $0x28] ss:$16 sps:$4 sm:$0xff]   ;;  %v1204_v8 = vld [vmem:[%s1813_s1 + $0x44] ss:$16 sps:$4 sm:$0xff]   ;;  %v160_v45 = vunpack.c.0.s8 %v159_v39 }
   0x4   :  { %820 = vmatprep.subr.bf16.mxu0 %v1198_v4  ;;  %902 = vmatprep.subr.bf16.mxu1 %v1200_v5  ;;  %v1206_v9 = vld [vmem:[%s1813_s1 + $0x4c] ss:$16 sps:$4 sm:$0xff]   ;;  %v1208_v10 = vld [vmem:[%s1813_s1 + $0x40] ss:$16 sps:$4 sm:$0xff]   ;;  %v1209_v11 = vld [vmem:[%s1813_s1 + $0x48] ss:$16 sps:$4 sm:$0xff]  }
   0x5   :  { %v1210_v12 = vld [vmem:[%s1813_s1 + $0x64] ss:$16 sps:$4 sm:$0xff]   ;;  %v1212_v13 = vld [vmem:[%s1813_s1 + $0x6c] ss:$16 sps:$4 sm:$0xff]   ;;  %v1214_v14 = vld [vmem:[%s1813_s1 + $0x60] ss:$16 sps:$4 sm:$0xff]  }
   0x6   :  { %v1215_v15 = vld [vmem:[%s1813_s1 + $0x68] ss:$16 sps:$4 sm:$0xff]   ;;  %v1216_v16 = vld [vmem:[%s1813_s1 + $0x84] ss:$16 sps:$4 sm:$0xff]   ;;  %v1218_v17 = vld [vmem:[%s1813_s1 + $0x8c] ss:$16 sps:$4 sm:$0xff]  }
   0x7   :  { %821 = vmatpush1.bf16.msra.mxu0 %v1202_v6  ;;  %903 = vmatpush1.bf16.msra.mxu1 %v1203_v7  ;;  %v1220_v18 = vld [vmem:[%s1813_s1 + $0x80] ss:$16 sps:$4 sm:$0xff]   ;;  %v1221_v19 = vld [vmem:[%s1813_s1 + $0x88] ss:$16 sps:$4 sm:$0xff]   ;;  %v1222_v20 = vld [vmem:[%s1813_s1 + $0xa4] ss:$16 sps:$4 sm:$0xff]  }
   0x8   :  { %822 = vmatprep.subr.bf16.mxu0 %v1204_v8  ;;  %904 = vmatprep.subr.bf16.mxu1 %v1206_v9  ;;  %v1224_v21 = vld [vmem:[%s1813_s1 + $0xac] ss:$16 sps:$4 sm:$0xff]   ;;  %v1226_v22 = vld [vmem:[%s1813_s1 + $0xa0] ss:$16 sps:$4 sm:$0xff]   ;;  %v1227_v23 = vld [vmem:[%s1813_s1 + $0xa8] ss:$16 sps:$4 sm:$0xff]  }
   0x9   :  { %v1228_v24 = vld [vmem:[%s1813_s1 + $0xc4] ss:$16 sps:$4 sm:$0xff]   ;;  %v1230_v25 = vld [vmem:[%s1813_s1 + $0xcc] ss:$16 sps:$4 sm:$0xff]   ;;  %v1232_v26 = vld [vmem:[%s1813_s1 + $0xc0] ss:$16 sps:$4 sm:$0xff]  }
   0xa   :  { %v1233_v27 = vld [vmem:[%s1813_s1 + $0xc8] ss:$16 sps:$4 sm:$0xff]   ;;  %v1234_v28 = vld [vmem:[%s1813_s1 + $0xe4] ss:$16 sps:$4 sm:$0xff]   ;;  %v1236_v29 = vld [vmem:[%s1813_s1 + $0xec] ss:$16 sps:$4 sm:$0xff]  }
   0xb   :  { %823 = vmatpush1.bf16.msra.mxu0 %v1208_v10  ;;  %905 = vmatpush1.bf16.msra.mxu1 %v1209_v11  ;;  %v1238_v30 = vld [vmem:[%s1813_s1 + $0xe0] ss:$16 sps:$4 sm:$0xff]   ;;  %v1239_v31 = vld [vmem:[%s1813_s1 + $0xe8] ss:$16 sps:$4 sm:$0xff]   ;;  %v1240_v32 = vld [vmem:[%s1813_s1 + $0x104] ss:$16 sps:$4 sm:$0xff]  }
   0xc   :  { %824 = vmatprep.subr.bf16.mxu0 %v1210_v12  ;;  %906 = vmatprep.subr.bf16.mxu1 %v1212_v13  ;;  %v1242_v33 = vld [vmem:[%s1813_s1 + $0x10c] ss:$16 sps:$4 sm:$0xff]   ;;  %v1244_v34 = vld [vmem:[%s1813_s1 + $0x100] ss:$16 sps:$4 sm:$0xff]   ;;  %v1245_v35 = vld [vmem:[%s1813_s1 + $0x108] ss:$16 sps:$4 sm:$0xff]  }
   0xd   :  { %v1246_v36 = vld [vmem:[%s1813_s1 + $0x124] ss:$16 sps:$4 sm:$0xff]   ;;  %v1248_v37 = vld [vmem:[%s1813_s1 + $0x12c] ss:$16 sps:$4 sm:$0xff]   ;;  %v1250_v41 = vld [vmem:[%s1813_s1 + $0x120] ss:$16 sps:$4 sm:$0xff]  }
   0xe   :  { %v1251_v42 = vld [vmem:[%s1813_s1 + $0x128] ss:$16 sps:$4 sm:$0xff]   ;;  %v1252_v43 = vld [vmem:[%s1813_s1 + $0x144] ss:$16 sps:$4 sm:$0xff]   ;;  %v1254_v44 = vld [vmem:[%s1813_s1 + $0x14c] ss:$16 sps:$4 sm:$0xff]  }
   0xf   :  { %825 = vmatpush1.bf16.msra.mxu0 %v1214_v14  ;;  %907 = vmatpush1.bf16.msra.mxu1 %v1215_v15  ;;  %v1532_v46 = vshrl.u32 %v161_v40, 7  ;;  %v1256_v47 = vld [vmem:[%s1813_s1 + $0x140] ss:$16 sps:$4 sm:$0xff]   ;;  %v1257_v48 = vld [vmem:[%s1813_s1 + $0x148] ss:$16 sps:$4 sm:$0xff]  }
  0x10   :  { %826 = vmatprep.subr.bf16.mxu0 %v1216_v16  ;;  %908 = vmatprep.subr.bf16.mxu1 %v1218_v17  ;;  %v1258_v49 = vld [vmem:[%s1813_s1 + $0x164] ss:$16 sps:$4 sm:$0xff]   ;;  %v1260_v50 = vld [vmem:[%s1813_s1 + $0x16c] ss:$16 sps:$4 sm:$0xff]   ;;  %v1262_v53 = vld [vmem:[%s1813_s1 + $0x160] ss:$16 sps:$4 sm:$0xff]  }
  0x11   :  { %v163_v51 = vsub.s32 %v160_v45, %v1532_v46  ;;  %v1053_v52 = vld.sshfl [vmem:[%s1814_s0] sm:$0x33 pattern:$0x75316420]  ;;  %v1263_v54 = vld [vmem:[%s1813_s1 + $0x168] ss:$16 sps:$4 sm:$0xff]  }
  0x12   :  { %v157_v55 = vcombine.high %v1053_v52, %v1053_v52  ;;  %v1264_v56 = vld [vmem:[%s1813_s1 + $0x184] ss:$16 sps:$4 sm:$0xff]   ;;  %v1266_v57 = vld [vmem:[%s1813_s1 + $0x18c] ss:$16 sps:$4 sm:$0xff]   ;;  %v1268_v59 = vld [vmem:[%s1813_s1 + $0x180] ss:$16 sps:$4 sm:$0xff]  }
  0x13   :  { %827 = vmatpush1.bf16.msra.mxu0 %v1220_v18  ;;  %909 = vmatpush1.bf16.msra.mxu1 %v1221_v19  ;;  %v1269_v60 = vld [vmem:[%s1813_s1 + $0x188] ss:$16 sps:$4 sm:$0xff]   ;;  %v1270_v61 = vld [vmem:[%s1813_s1 + $0x1a4] ss:$16 sps:$4 sm:$0xff]   ;;  %v1272_v62 = vld [vmem:[%s1813_s1 + $0x1ac] ss:$16 sps:$4 sm:$0xff]   ;;  %v1613_v12 = vrot.slane %v1053_v52, %v163_v51 }
  0x14   :  { %828 = vmatprep.subr.bf16.mxu0 %v1222_v20  ;;  %910 = vmatprep.subr.bf16.mxu1 %v1224_v21  ;;  %v171_v58 = vrot.slane %v157_v55, %v163_v51  ;;  %v1274_v63 = vld [vmem:[%s1813_s1 + $0x1a0] ss:$16 sps:$4 sm:$0xff]   ;;  %v1275_v0 = vld [vmem:[%s1813_s1 + $0x1a8] ss:$16 sps:$4 sm:$0xff]   ;;  %v1276_v1 = vld [vmem:[%s1813_s1 + $0x1c4] ss:$16 sps:$4 sm:$0xff]  }
  0x15   :  { %v1278_v2 = vld [vmem:[%s1813_s1 + $0x1cc] ss:$16 sps:$4 sm:$0xff]   ;;  %v1280_v3 = vld [vmem:[%s1813_s1 + $0x1c0] ss:$16 sps:$4 sm:$0xff]   ;;  %v1281_v4 = vld [vmem:[%s1813_s1 + $0x1c8] ss:$16 sps:$4 sm:$0xff]  }
  0x16   :  { %850 = vmatprep.mubr.bf16.mxu0 %v171_v58  ;;  %932 = vmatprep.mubr.bf16.mxu1 %v171_v58  ;;  %v1282_v5 = vld [vmem:[%s1813_s1 + $0x1e4] ss:$16 sps:$4 sm:$0xff]   ;;  %v1284_v6 = vld [vmem:[%s1813_s1 + $0x1ec] ss:$16 sps:$4 sm:$0xff]   ;;  %v1286_v7 = vld [vmem:[%s1813_s1 + $0x1e0] ss:$16 sps:$4 sm:$0xff]   ;;  %v173_v16 = vcombine.high %v171_v58, %v171_v58 }
  0x17   :  { %829 = vmatpush1.bf16.msra.mxu0 %v1226_v22  ;;  %911 = vmatpush1.bf16.msra.mxu1 %v1227_v23  ;;  %v1287_v8 = vld [vmem:[%s1813_s1 + $0x1e8] ss:$16 sps:$4 sm:$0xff]   ;;  %v1290_v9 = vld [vmem:[%s1813_s1 + $0x204] ss:$16 sps:$4 sm:$0xff]   ;;  %v1293_v10 = vld [vmem:[%s1813_s1 + $0x20c] ss:$16 sps:$4 sm:$0xff]  }
  0x18   :  { %830 = vmatprep.subr.bf16.mxu0 %v1228_v24  ;;  %912 = vmatprep.subr.bf16.mxu1 %v1230_v25  ;;  %v1288_v11 = vld [vmem:[%s1813_s1 + $0x200] ss:$16 sps:$4 sm:$0xff]   ;;  %v1291_v13 = vld [vmem:[%s1813_s1 + $0x208] ss:$16 sps:$4 sm:$0xff]   ;;  %v1296_v14 = vld [vmem:[%s1813_s1 + $0x224] ss:$16 sps:$4 sm:$0xff]  }
  0x19   :  { %v1299_v15 = vld [vmem:[%s1813_s1 + $0x22c] ss:$16 sps:$4 sm:$0xff]   ;;  %v1294_v17 = vld [vmem:[%s1813_s1 + $0x220] ss:$16 sps:$4 sm:$0xff]   ;;  %v1297_v18 = vld [vmem:[%s1813_s1 + $0x228] ss:$16 sps:$4 sm:$0xff]  }
  0x1a   :  { %v1302_v19 = vld [vmem:[%s1813_s1 + $0x244] ss:$16 sps:$4 sm:$0xff]   ;;  %v1305_v20 = vld [vmem:[%s1813_s1 + $0x24c] ss:$16 sps:$4 sm:$0xff]   ;;  %v1300_v21 = vld [vmem:[%s1813_s1 + $0x240] ss:$16 sps:$4 sm:$0xff]  }
  0x1b   :  { %831 = vmatpush1.bf16.msra.mxu0 %v1232_v26  ;;  %913 = vmatpush1.bf16.msra.mxu1 %v1233_v27  ;;  %v1303_v22 = vld [vmem:[%s1813_s1 + $0x248] ss:$16 sps:$4 sm:$0xff]   ;;  %v1308_v23 = vld [vmem:[%s1813_s1 + $0x264] ss:$16 sps:$4 sm:$0xff]   ;;  %v1311_v24 = vld [vmem:[%s1813_s1 + $0x26c] ss:$16 sps:$4 sm:$0xff]  }
  0x1c   :  { %832 = vmatprep.subr.bf16.mxu0 %v1234_v28  ;;  %914 = vmatprep.subr.bf16.mxu1 %v1236_v29  ;;  %v1306_v25 = vld [vmem:[%s1813_s1 + $0x260] ss:$16 sps:$4 sm:$0xff]   ;;  %v1309_v26 = vld [vmem:[%s1813_s1 + $0x268] ss:$16 sps:$4 sm:$0xff]   ;;  %v1314_v27 = vld [vmem:[%s1813_s1 + $0x284] ss:$16 sps:$4 sm:$0xff]  }
  0x1d   :  { %v1317_v28 = vld [vmem:[%s1813_s1 + $0x28c] ss:$16 sps:$4 sm:$0xff]   ;;  %v1312_v29 = vld [vmem:[%s1813_s1 + $0x280] ss:$16 sps:$4 sm:$0xff]   ;;  %v1327_v38 = vld [vmem:[%s1813_s1 + $0x2c8] ss:$16 sps:$4 sm:$0xff]  }
  0x1e   :  { %v1332_v39 = vld [vmem:[%s1813_s1 + $0x2e4] ss:$16 sps:$4 sm:$0xff]   ;;  %v1335_v40 = vld [vmem:[%s1813_s1 + $0x2ec] ss:$16 sps:$4 sm:$0xff]   ;;  %v1336_v45 = vld [vmem:[%s1813_s1 + $0x300] ss:$16 sps:$4 sm:$0xff]  }
  0x1f   :  { %833 = vmatpush1.bf16.msra.mxu0 %v1238_v30  ;;  %915 = vmatpush1.bf16.msra.mxu1 %v1239_v31  ;;  %v1315_v30 = vld [vmem:[%s1813_s1 + $0x288] ss:$16 sps:$4 sm:$0xff]   ;;  %v1320_v31 = vld [vmem:[%s1813_s1 + $0x2a4] ss:$16 sps:$4 sm:$0xff]   ;;  %v1354_v58 = vld [vmem:[%s1813_s1 + $0x360] ss:$16 sps:$4 sm:$0xff]  }
  0x20   :  { %834 = vmatprep.subr.bf16.mxu0 %v1240_v32  ;;  %916 = vmatprep.subr.bf16.mxu1 %v1242_v33  ;;  %v1323_v32 = vld [vmem:[%s1813_s1 + $0x2ac] ss:$16 sps:$4 sm:$0xff]   ;;  %v1318_v33 = vld [vmem:[%s1813_s1 + $0x2a0] ss:$16 sps:$4 sm:$0xff]   ;;  %v1345_v51 = vld [vmem:[%s1813_s1 + $0x328] ss:$16 sps:$4 sm:$0xff]  }
  0x21   :  { %v1350_v52 = vld [vmem:[%s1813_s1 + $0x344] ss:$16 sps:$4 sm:$0xff]   ;;  %v1351_v55 = vld [vmem:[%s1813_s1 + $0x348] ss:$16 sps:$4 sm:$0xff]  }
  0x23   :  { %835 = vmatpush1.bf16.msra.mxu0 %v1244_v34  ;;  %917 = vmatpush1.bf16.msra.mxu1 %v1245_v35  ;;  %v1321_v34 = vld [vmem:[%s1813_s1 + $0x2a8] ss:$16 sps:$4 sm:$0xff]   ;;  %v1326_v35 = vld [vmem:[%s1813_s1 + $0x2c4] ss:$16 sps:$4 sm:$0xff]  }
  0x24   :  { %836 = vmatprep.subr.bf16.mxu0 %v1246_v36  ;;  %918 = vmatprep.subr.bf16.mxu1 %v1248_v37  ;;  %v1329_v36 = vld [vmem:[%s1813_s1 + $0x2cc] ss:$16 sps:$4 sm:$0xff]   ;;  %v1324_v37 = vld [vmem:[%s1813_s1 + $0x2c0] ss:$16 sps:$4 sm:$0xff]  }
  0x27   :  { %837 = vmatpush1.bf16.msra.mxu0 %v1250_v41  ;;  %919 = vmatpush1.bf16.msra.mxu1 %v1251_v42  ;;  %v1330_v41 = vld [vmem:[%s1813_s1 + $0x2e0] ss:$16 sps:$4 sm:$0xff]   ;;  %v1333_v42 = vld [vmem:[%s1813_s1 + $0x2e8] ss:$16 sps:$4 sm:$0xff]  }
  0x28   :  { %838 = vmatprep.subr.bf16.mxu0 %v1252_v43  ;;  %920 = vmatprep.subr.bf16.mxu1 %v1254_v44  ;;  %v1338_v43 = vld [vmem:[%s1813_s1 + $0x304] ss:$16 sps:$4 sm:$0xff]   ;;  %v1341_v44 = vld [vmem:[%s1813_s1 + $0x30c] ss:$16 sps:$4 sm:$0xff]  }
  0x2b   :  { %839 = vmatpush1.bf16.msra.mxu0 %v1256_v47  ;;  %921 = vmatpush1.bf16.msra.mxu1 %v1257_v48  ;;  %v1339_v47 = vld [vmem:[%s1813_s1 + $0x308] ss:$16 sps:$4 sm:$0xff]   ;;  %v1344_v48 = vld [vmem:[%s1813_s1 + $0x324] ss:$16 sps:$4 sm:$0xff]  }
  0x2c   :  { %840 = vmatprep.subr.bf16.mxu0 %v1258_v49  ;;  %922 = vmatprep.subr.bf16.mxu1 %v1260_v50  ;;  %v1347_v49 = vld [vmem:[%s1813_s1 + $0x32c] ss:$16 sps:$4 sm:$0xff]   ;;  %v1342_v50 = vld [vmem:[%s1813_s1 + $0x320] ss:$16 sps:$4 sm:$0xff]  }
  0x2f   :  { %841 = vmatpush1.bf16.msra.mxu0 %v1262_v53  ;;  %923 = vmatpush1.bf16.msra.mxu1 %v1263_v54  ;;  %v1353_v53 = vld [vmem:[%s1813_s1 + $0x34c] ss:$16 sps:$4 sm:$0xff]   ;;  %v1348_v54 = vld [vmem:[%s1813_s1 + $0x340] ss:$16 sps:$4 sm:$0xff]  }
  0x30   :  { %842 = vmatprep.subr.bf16.mxu0 %v1264_v56  ;;  %924 = vmatprep.subr.bf16.mxu1 %v1266_v57  ;;  %v1356_v56 = vld [vmem:[%s1813_s1 + $0x364] ss:$16 sps:$4 sm:$0xff]   ;;  %v1359_v57 = vld [vmem:[%s1813_s1 + $0x36c] ss:$16 sps:$4 sm:$0xff]  }
  0x33   :  { %843 = vmatpush1.bf16.msra.mxu0 %v1268_v59  ;;  %925 = vmatpush1.bf16.msra.mxu1 %v1269_v60  ;;  %v1357_v59 = vld [vmem:[%s1813_s1 + $0x368] ss:$16 sps:$4 sm:$0xff]   ;;  %v1362_v60 = vld [vmem:[%s1813_s1 + $0x384] ss:$16 sps:$4 sm:$0xff]  }
  0x34   :  { %844 = vmatprep.subr.bf16.mxu0 %v1270_v61  ;;  %926 = vmatprep.subr.bf16.mxu1 %v1272_v62  ;;  %v1365_v61 = vld [vmem:[%s1813_s1 + $0x38c] ss:$16 sps:$4 sm:$0xff]   ;;  %v1360_v62 = vld [vmem:[%s1813_s1 + $0x380] ss:$16 sps:$4 sm:$0xff]  }
  0x37   :  { %845 = vmatpush1.bf16.msra.mxu0 %v1274_v63  ;;  %927 = vmatpush1.bf16.msra.mxu1 %v1275_v0  ;;  %v1363_v63 = vld [vmem:[%s1813_s1 + $0x388] ss:$16 sps:$4 sm:$0xff]   ;;  %v1368_v0 = vld [vmem:[%s1813_s1 + $0x3a4] ss:$16 sps:$4 sm:$0xff]  }
  0x38   :  { %846 = vmatprep.subr.bf16.mxu0 %v1276_v1  ;;  %928 = vmatprep.subr.bf16.mxu1 %v1278_v2  ;;  %v1371_v1 = vld [vmem:[%s1813_s1 + $0x3ac] ss:$16 sps:$4 sm:$0xff]   ;;  %v1366_v2 = vld [vmem:[%s1813_s1 + $0x3a0] ss:$16 sps:$4 sm:$0xff]  }
  0x3b   :  { %847 = vmatpush1.bf16.msra.mxu0 %v1280_v3  ;;  %929 = vmatpush1.bf16.msra.mxu1 %v1281_v4  ;;  %v1369_v3 = vld [vmem:[%s1813_s1 + $0x3a8] ss:$16 sps:$4 sm:$0xff]   ;;  %v1374_v4 = vld [vmem:[%s1813_s1 + $0x3c4] ss:$16 sps:$4 sm:$0xff]  }
  0x3c   :  { %848 = vmatprep.subr.bf16.mxu0 %v1282_v5  ;;  %930 = vmatprep.subr.bf16.mxu1 %v1284_v6  ;;  %v1377_v5 = vld [vmem:[%s1813_s1 + $0x3cc] ss:$16 sps:$4 sm:$0xff]   ;;  %v1372_v6 = vld [vmem:[%s1813_s1 + $0x3c0] ss:$16 sps:$4 sm:$0xff]  }
  0x3f   :  { %849 = vmatpush1.bf16.msra.mxu0 %v1286_v7  ;;  %931 = vmatpush1.bf16.msra.mxu1 %v1287_v8  ;;  %v1375_v7 = vld [vmem:[%s1813_s1 + $0x3c8] ss:$16 sps:$4 sm:$0xff]   ;;  %v1380_v8 = vld [vmem:[%s1813_s1 + $0x3e4] ss:$16 sps:$4 sm:$0xff]  }
  0x40   :  { %859 = vmatprep.subr.bf16.mxu0 %v1290_v9  ;;  %941 = vmatprep.subr.bf16.mxu1 %v1293_v10  ;;  %v1383_v9 = vld [vmem:[%s1813_s1 + $0x3ec] ss:$16 sps:$4 sm:$0xff]   ;;  %v1378_v10 = vld [vmem:[%s1813_s1 + $0x3e0] ss:$16 sps:$4 sm:$0xff]  }
  0x42   :  { %851 = vmatmul.mubr.bf16.vlgmr.msra.gmra.mrb[0].mxu0 %v1613_v12  ;;  %933 = vmatmul.mubr.bf16.vlgmr.msra.gmra.mrb[0].mxu1 %v1613_v12 }
  0x43   :  { %860 = vmatpush1.bf16.msra.mxu0 %v1288_v11  ;;  %942 = vmatpush1.bf16.msra.mxu1 %v1291_v13  ;;  %v1381_v11 = vld [vmem:[%s1813_s1 + $0x3e8] ss:$16 sps:$4 sm:$0xff]   ;;  %v172_v13 = vcombine.high %v1613_v12, %v1613_v12 }
  0x44   :  { %861 = vmatprep.subr.bf16.mxu0 %v1296_v14  ;;  %943 = vmatprep.subr.bf16.mxu1 %v1299_v15  ;;  %v1385_v14 = vmov 1983009808  }
  0x45   :  { %891 = vmatprep.mubr.bf16.mxu0 %v173_v16  ;;  %973 = vmatprep.mubr.bf16.mxu1 %v173_v16  ;;  %v989_v15 = vunpack.c.l.s4 %v1385_v14  ;;  %v1014_v16 = vsub.s32 0, %v1532_v46 }
  0x47   :  { %862 = vmatpush1.bf16.msra.mxu0 %v1294_v17  ;;  %944 = vmatpush1.bf16.msra.mxu1 %v1297_v18  ;;  %v1018_v17 = vsub.s32 1, %v1532_v46  ;;  %v1022_v18 = vsub.s32 2, %v1532_v46 }
  0x48   :  { %863 = vmatprep.subr.bf16.mxu0 %v1302_v19  ;;  %945 = vmatprep.subr.bf16.mxu1 %v1305_v20  ;;  %v1026_v19 = vsub.s32 3, %v1532_v46  ;;  %v1010_v20 = vld [vmem:[%s1815_s2] sm:$0xf] }
  0x49   :  { %v1015_v12 = vrot.slane %v1010_v20, %v1014_v16 }
  0x4b   :  { %864 = vmatpush1.bf16.msra.mxu0 %v1300_v21  ;;  %946 = vmatpush1.bf16.msra.mxu1 %v1303_v22  ;;  %v990_v21 = vunpack.c.0.s8 %v989_v15  ;;  %v1019_v22 = vrot.slane %v1010_v20, %v1018_v17 }
  0x4c   :  { %865 = vmatprep.subr.bf16.mxu0 %v1308_v23  ;;  %947 = vmatprep.subr.bf16.mxu1 %v1311_v24  ;;  %v1023_v23 = vrot.slane %v1010_v20, %v1022_v18  ;;  %v1027_v24 = vrot.slane %v1010_v20, %v1026_v19 }
  0x4f   :  { %866 = vmatpush1.bf16.msra.mxu0 %v1306_v25  ;;  %948 = vmatpush1.bf16.msra.mxu1 %v1309_v26  ;;  %v993_v25 = vsub.s32 %v990_v21, %v1532_v46  ;;  %v1028_v26 = vcombine.low %v1015_v12, %v1019_v22 }
  0x50   :  { %867 = vmatprep.subr.bf16.mxu0 %v1314_v27  ;;  %949 = vmatprep.subr.bf16.mxu1 %v1317_v28  ;;  %v1029_v27 = vcombine.low %v1023_v23, %v1027_v24 }
  0x53   :  { %868 = vmatpush1.bf16.msra.mxu0 %v1312_v29  ;;  %950 = vmatpush1.bf16.msra.mxu1 %v1315_v30  ;;  %v1036_v30 = vrot.slane %v1028_v26, %v993_v25 }
  0x54   :  { %869 = vmatprep.subr.bf16.mxu0 %v1320_v31  ;;  %951 = vmatprep.subr.bf16.mxu1 %v1323_v32  ;;  %v1043_v31 = vrot.slane %v1029_v27, %v993_v25 }
  0x57   :  { %870 = vmatpush1.bf16.msra.mxu0 %v1318_v33  ;;  %952 = vmatpush1.bf16.msra.mxu1 %v1321_v34 }
  0x58   :  { %871 = vmatprep.subr.bf16.mxu0 %v1326_v35  ;;  %953 = vmatprep.subr.bf16.mxu1 %v1329_v36 }
  0x5b   :  { %872 = vmatpush1.bf16.msra.mxu0 %v1324_v37  ;;  %954 = vmatpush1.bf16.msra.mxu1 %v1327_v38 }
  0x5c   :  { %873 = vmatprep.subr.bf16.mxu0 %v1332_v39  ;;  %955 = vmatprep.subr.bf16.mxu1 %v1335_v40 }
  0x5f   :  { %874 = vmatpush1.bf16.msra.mxu0 %v1330_v41  ;;  %956 = vmatpush1.bf16.msra.mxu1 %v1333_v42  ;;  %v1044_v42 = vcombine.low %v1036_v30, %v1043_v31 }
  0x60   :  { %875 = vmatprep.subr.bf16.mxu0 %v1338_v43  ;;  %957 = vmatprep.subr.bf16.mxu1 %v1341_v44 }
  0x63   :  { %876 = vmatpush1.bf16.msra.mxu0 %v1336_v45  ;;  %958 = vmatpush1.bf16.msra.mxu1 %v1339_v47 }
  0x64   :  { %877 = vmatprep.subr.bf16.mxu0 %v1344_v48  ;;  %959 = vmatprep.subr.bf16.mxu1 %v1347_v49 }
  0x67   :  { %878 = vmatpush1.bf16.msra.mxu0 %v1342_v50  ;;  %960 = vmatpush1.bf16.msra.mxu1 %v1345_v51 }
  0x68   :  { %879 = vmatprep.subr.bf16.mxu0 %v1350_v52  ;;  %961 = vmatprep.subr.bf16.mxu1 %v1353_v53 }
  0x6b   :  { %880 = vmatpush1.bf16.msra.mxu0 %v1348_v54  ;;  %962 = vmatpush1.bf16.msra.mxu1 %v1351_v55 }
  0x6c   :  { %881 = vmatprep.subr.bf16.mxu0 %v1356_v56  ;;  %963 = vmatprep.subr.bf16.mxu1 %v1359_v57 }
  0x6f   :  { %882 = vmatpush1.bf16.msra.mxu0 %v1354_v58  ;;  %964 = vmatpush1.bf16.msra.mxu1 %v1357_v59 }
  0x70   :  { %883 = vmatprep.subr.bf16.mxu0 %v1362_v60  ;;  %965 = vmatprep.subr.bf16.mxu1 %v1365_v61 }
  0x73   :  { %884 = vmatpush1.bf16.msra.mxu0 %v1360_v62  ;;  %966 = vmatpush1.bf16.msra.mxu1 %v1363_v63 }
  0x74   :  { %885 = vmatprep.subr.bf16.mxu0 %v1368_v0  ;;  %967 = vmatprep.subr.bf16.mxu1 %v1371_v1 }
  0x77   :  { %886 = vmatpush1.bf16.msra.mxu0 %v1366_v2  ;;  %968 = vmatpush1.bf16.msra.mxu1 %v1369_v3 }
  0x78   :  { %887 = vmatprep.subr.bf16.mxu0 %v1374_v4  ;;  %969 = vmatprep.subr.bf16.mxu1 %v1377_v5 }
  0x7b   :  { %888 = vmatpush1.bf16.msra.mxu0 %v1372_v6  ;;  %970 = vmatpush1.bf16.msra.mxu1 %v1375_v7 }
  0x7c   :  { %889 = vmatprep.subr.bf16.mxu0 %v1380_v8  ;;  %971 = vmatprep.subr.bf16.mxu1 %v1383_v9 }
  0x7f   :  { %890 = vmatpush1.bf16.msra.mxu0 %v1378_v10  ;;  %972 = vmatpush1.bf16.msra.mxu1 %v1381_v11 }
  0x82   :  { %892 = vmatmul.mubr.bf16.vlgmr.msra.gmra.mrb[0].mxu0 %v172_v13  ;;  %974 = vmatmul.mubr.bf16.vlgmr.msra.gmra.mrb[0].mxu1 %v172_v13 }
 0x155   :  { %v893_v28 = vpop.f32.mrb[0].mxu0  ;;  %v975_v29 = vpop.f32.mrb[0].mxu1 }
 0x156   :  { %v895_v32 = vpop.f32.mrb[1].mxu0  ;;  %v977_v33 = vpop.f32.mrb[1].mxu1 }
 0x157   :  { %v986_v34 = vcombine.low %v893_v28, %v895_v32  ;;  %v987_v35 = vcombine.low %v975_v29, %v977_v33  ;;  %v897_v36 = vpop.f32.mrb[2].mxu0  ;;  %v979_v37 = vpop.f32.mrb[2].mxu1 }
 0x158   :  { %v898_v38 = vpop.f32.mrb[3].mxu0  ;;  %v980_v39 = vpop.f32.mrb[3].mxu1 }
 0x159   :  { %v994_v40 = vrot.slane %v986_v34, %v993_v25  ;;  %v1001_v41 = vrot.slane %v987_v35, %v993_v25 }
 0x15b   :  { %v1002_v43 = vcombine.low %v994_v40, %v1001_v41 }
 0x15d   :  { %v1046_v44 = vadd.f32 %v1044_v42, %v1002_v43 }
 0x15f   :  { %v1047_v46 = vmax.f32 %v1046_v44, 0.0 }
 0x161   :  { %1048 = vst [vmem:[%s1816_s3] sm:$0xff] %v1047_v46 }

// kernel: tile.18
= control target key start
LH: loop header
LB: loop body
LE: loop exit
PB: predicated region body
PF: predicated region fallthrough
CT: control target
= control target key end

     0   :  { %s22_s0 = inlined_call_operand.vmem [shape: f32[64], index: 0, kind: input, shape index: {}]   ;;  %s23_s1 = inlined_call_operand.vmem [shape: f32[4,64], index: 1, kind: output, shape index: {}]  }
   0x1   :  { %v4_v0 = vld [vmem:[%s22_s0] ss:$0 sm:$0xff] }
   0x2   :  { %5 = vst [vmem:[%s23_s1] sm:$0xf] %v4_v0 }

// kernel: tile.19
= control target key start
LH: loop header
LB: loop body
LE: loop exit
PB: predicated region body
PF: predicated region fallthrough
CT: control target
= control target key end

     0   :  { %s6_s8 = smov 3  ;;  %vm8_vm0 = vcmask 523264   ;;  %s30_s9 = smov 64   ;;  %vm15_vm1 = vcmask 1048064   ;;  %s50_s0 = inlined_call_operand.vmem [shape: f32[4,64], index: 0, kind: input, shape index: {}]   ;;  %s51_s1 = inlined_call_operand.vmem [shape: f32[1,256], index: 1, kind: output, shape index: {}]  }
   0x1   :  { %v4_v0 = vld [vmem:[%s50_s0] sm:$0xf]  ;;  %s11_s0 = smov 3 }
   0x2   :  { %5 = vst [vmem:[#allocation1] sm:$0xf] %v4_v0 }
   0x9   :  { %v12_v1 = vld [vmem:[#allocation1 + $0x1] ss:$2 sm:%s11_s0]   ;;  %v7_v2 = vld [vmem:[#allocation1] ss:$2 sm:%s6_s8]  }
   0xa   :  { %13 = vrot.lane.b32.xlu0 %v12_v1, %s30_s9  ;;  %9 = vst.msk [vmem:[#allocation0] ss:$8 sm:$0x3] %vm8_vm0, %v7_v2  }
  0x7c   :  { %v14_v3 = vpop.permute.xlu0 %13  }
  0x7d   :  { %16 = vst.msk [vmem:[#allocation0] ss:$8 sm:$0x3] %vm15_vm1, %v14_v3  }
  0x84   :  { %v20_v4 = vld [vmem:[#allocation0] sm:$0x1]  ;;  %v24_v5 = vld [vmem:[#allocation0 + $0x8] sm:$0x1] }
  0x85   :  { %22 = vst [vmem:[%s51_s1] sm:$0x1] %v20_v4  ;;  %28 = vst [vmem:[%s51_s1 + $0x1] sm:$0x1] %v24_v5 }

// kernel: tile.23
= control target key start
LH: loop header
LB: loop body
LE: loop exit
PB: predicated region body
PF: predicated region fallthrough
CT: control target
= control target key end

     0   :  { %s22_s0 = inlined_call_operand.vmem [shape: f32[32], index: 0, kind: input, shape index: {}]   ;;  %s23_s1 = inlined_call_operand.vmem [shape: f32[4,32], index: 1, kind: output, shape index: {}]  }
   0x1   :  { %v4_v0 = vld [vmem:[%s22_s0] ss:$0 sm:$0xff] }
   0x2   :  { %5 = vst [vmem:[%s23_s1] sm:$0xf] %v4_v0 }

// kernel: tile.24
= control target key start
LH: loop header
LB: loop body
LE: loop exit
PB: predicated region body
PF: predicated region fallthrough
CT: control target
= control target key end

     0   :  { %vm7_vm0 = vcmask 261120   ;;  %s37_s8 = smov 32   ;;  %s38_s9 = smov 64   ;;  %vm13_vm1 = vcmask 1048320   ;;  %vm19_vm2 = vcmask 785920   ;;  %vm25_vm3 = vcmask 523520   ;;  %s55_s0 = inlined_call_operand.vmem [shape: f32[4,32], index: 0, kind: input, shape index: {}]   ;;  %s56_s1 = inlined_call_operand.vmem [shape: f32[1,128], index: 1, kind: output, shape index: {}]  }
   0x1   :  { %v4_v0 = vld [vmem:[%s55_s0] sm:$0xf]  ;;  %s36_s0 = smov 96  }
   0x2   :  { %5 = vst [vmem:[#allocation1] sm:$0xf] %v4_v0 }
   0x9   :  { %v10_v1 = vld [vmem:[#allocation1 + $0x3] sm:$0x1]   ;;  %v22_v2 = vld [vmem:[#allocation1 + $0x1] sm:$0x1]   ;;  %v6_v3 = vld [vmem:[#allocation1] sm:$0x1]  }
   0xa   :  { %11 = vrot.lane.b32.xlu0 %v10_v1, %s36_s0  ;;  %23 = vrot.lane.b32.xlu1 %v22_v2, %s37_s8  ;;  %v16_v4 = vld [vmem:[#allocation1 + $0x2] sm:$0x1]   ;;  %8 = vst.msk [vmem:[#allocation0] sm:$0x1] %vm7_vm0, %v6_v3  }
   0xe   :  { %17 = vrot.lane.b32.xlu0 %v16_v4, %s38_s9 }
  0x7c   :  { %v12_v5 = vpop.permute.xlu0 %11   ;;  %v24_v6 = vpop.permute.xlu1 %23  }
  0x7d   :  { %14 = vst.msk [vmem:[#allocation0] sm:$0x1] %vm13_vm1, %v12_v5  }
  0x80   :  { %v18_v7 = vpop.permute.xlu0 %17  }
  0x81   :  { %20 = vst.msk [vmem:[#allocation0] sm:$0x1] %vm19_vm2, %v18_v7  }
  0x82   :  { %26 = vst.msk [vmem:[#allocation0] sm:$0x1] %vm25_vm3, %v24_v6  }
  0x89   :  { %v30_v8 = vld [vmem:[#allocation0] sm:$0x1] }
  0x8a   :  { %32 = vst [vmem:[%s56_s1] sm:$0x1] %v30_v8 }

// kernel: autoencoder_forward.17
= control target key start
LH: loop header
LB: loop body
LE: loop exit
PB: predicated region body
PF: predicated region fallthrough
CT: control target
= control target key end

     0   :  { %s457_s12 = smov 0   ;;  %s581_s0 = inlined_call_operand.vmem [shape: f32[2,2,2,128], index: 0, kind: input, shape index: {}]   ;;  %s582_s1 = inlined_call_operand.vmem [shape: f32[128,256], index: 1, kind: input, shape index: {}]   ;;  %s583_s2 = inlined_call_operand.vmem [shape: f32[1,256], index: 2, kind: input, shape index: {}]   ;;  %s584_s3 = inlined_call_operand.vmem [shape: f32[2,2,2,256], index: 3, kind: output, shape index: {}]  }
   0x1 LB: > { %s371_s13 = sadd.s32 4294967295, %s433_s12   ;;  %p375_p0 = scmp.ge.s32.totalorder %s433_s12, 1  ;;  %s433_s12 = sphi %s457_s12, %s13_s12  }
   0x2   : > { %p137_p1 = scmp.lt.s32.totalorder %s433_s12, 3 }
   0x4   : > { %p138_p2 = pnand %p375_p0, %p137_p1 }
   0x5   : > { %v174_v0 = vld [vmem:[%s582_s1 + $0x8] sm:$0xff] (!%p138_p2)  ;;  %v176_v1 = vld [vmem:[%s582_s1 + $0x18] sm:$0xff] (!%p138_p2)  ;;  %v173_v2 = vld [vmem:[%s582_s1] sm:$0xff] (!%p138_p2)  ;;  %v435_v7 = vmov (!%p138_p2), 0.0   ;;  %p161_p3 = scmp.lt.s32.totalorder (!%p138_p2), %s371_s13, 1  ;;  %v207_v38 = vlaneseq (!%p138_p2) }
   0x6   : > { %141 = sbr.rel (%p138_p2) target bundleno = 264 (0x108), region = 32  ;;  %v385_v3 = vpack.c.bf16 (!%p138_p2), %v176_v1, %v174_v0  ;;  %v175_v4 = vld [vmem:[%s582_s1 + $0x10] sm:$0xff] (!%p138_p2)  ;;  %v178_v5 = vld [vmem:[%s582_s1 + $0x28] sm:$0xff] (!%p138_p2)  ;;  %v180_v6 = vld [vmem:[%s582_s1 + $0x38] sm:$0xff] (!%p138_p2)  ;;  %292 = vmatprep.mubr.f32.mxu0 (!%p138_p2), %v435_v7  ;;  %v436_v39 = vmov (!%p138_p2), 1983009808  }
   0x7   : > { %v387_v8 = vpack.c.bf16 (!%p138_p2), %v175_v4, %v173_v2  ;;  %v389_v9 = vpack.c.bf16 (!%p138_p2), %v180_v6, %v178_v5  ;;  %v177_v10 = vld [vmem:[%s582_s1 + $0x20] sm:$0xff] (!%p138_p2)  ;;  %v179_v11 = vld [vmem:[%s582_s1 + $0x30] sm:$0xff] (!%p138_p2)  ;;  %v182_v12 = vld [vmem:[%s582_s1 + $0x48] sm:$0xff] (!%p138_p2)  ;;  %v221_v40 = vunpack.c.l.s4 (!%p138_p2), %v436_v39  ;;  %v208_v47 = vshrl.u32 (!%p138_p2), %v207_v38, 7 }
   0x8   : > { %386 = vmatprep.subr.bf16.mxu0 (!%p138_p2), %v385_v3  ;;  %v184_v13 = vld [vmem:[%s582_s1 + $0x58] sm:$0xff] (!%p138_p2)  ;;  %v391_v14 = vpack.c.bf16 (!%p138_p2), %v179_v11, %v177_v10  ;;  %v181_v16 = vld [vmem:[%s582_s1 + $0x40] sm:$0xff] (!%p138_p2)  ;;  %v183_v17 = vld [vmem:[%s582_s1 + $0x50] sm:$0xff] (!%p138_p2) }
   0x9   : > { %388 = vmatpush1.bf16.msra.mxu0 (!%p138_p2), %v387_v8  ;;  %v393_v15 = vpack.c.bf16 (!%p138_p2), %v184_v13, %v182_v12  ;;  %v186_v18 = vld [vmem:[%s582_s1 + $0x68] sm:$0xff] (!%p138_p2)  ;;  %v188_v19 = vld [vmem:[%s582_s1 + $0x78] sm:$0xff] (!%p138_p2)  ;;  %v395_v20 = vpack.c.bf16 (!%p138_p2), %v183_v17, %v181_v16  ;;  %v185_v22 = vld [vmem:[%s582_s1 + $0x60] sm:$0xff] (!%p138_p2)  ;;  %v222_v48 = vunpack.c.0.s8 (!%p138_p2), %v221_v40  ;;  %v209_v59 = vsub.s32 (!%p138_p2), 0, %v208_v47 }
   0xa   : > { %390 = vmatprep.subr.bf16.mxu0 (!%p138_p2), %v389_v9  ;;  %v397_v21 = vpack.c.bf16 (!%p138_p2), %v188_v19, %v186_v18  ;;  %v187_v23 = vld [vmem:[%s582_s1 + $0x70] sm:$0xff] (!%p138_p2)  ;;  %v190_v24 = vld [vmem:[%s582_s1 + $0x88] sm:$0xff] (!%p138_p2)  ;;  %v192_v25 = vld [vmem:[%s582_s1 + $0x98] sm:$0xff] (!%p138_p2)  ;;  %v213_v61 = vsub.s32 (!%p138_p2), 1, %v208_v47 }
   0xb   : > { %v399_v26 = vpack.c.bf16 (!%p138_p2), %v187_v23, %v185_v22  ;;  %v401_v27 = vpack.c.bf16 (!%p138_p2), %v192_v25, %v190_v24  ;;  %v189_v28 = vld [vmem:[%s582_s1 + $0x80] sm:$0xff] (!%p138_p2)  ;;  %v191_v29 = vld [vmem:[%s582_s1 + $0x90] sm:$0xff] (!%p138_p2)  ;;  %v194_v30 = vld [vmem:[%s582_s1 + $0xa8] sm:$0xff] (!%p138_p2)  ;;  %v225_v56 = vsub.s32 (!%p138_p2), %v222_v48, %v208_v47 }
   0xc   : > { %v196_v31 = vld [vmem:[%s582_s1 + $0xb8] sm:$0xff] (!%p138_p2)  ;;  %v403_v32 = vpack.c.bf16 (!%p138_p2), %v191_v29, %v189_v28  ;;  %v193_v34 = vld [vmem:[%s582_s1 + $0xa0] sm:$0xff] (!%p138_p2)  ;;  %v195_v35 = vld [vmem:[%s582_s1 + $0xb0] sm:$0xff] (!%p138_p2) }
   0xd   : > { %392 = vmatpush1.bf16.msra.mxu0 %v391_v14  ;;  %s586_s13 = smov (!%p161_p3, %s371_s13), 1  ;;  %v405_v33 = vpack.c.bf16 %v196_v31, %v194_v30  ;;  %v198_v36 = vld [vmem:[%s582_s1 + $0xc8] sm:$0xff]  ;;  %v200_v37 = vld [vmem:[%s582_s1 + $0xd8] sm:$0xff]  ;;  %v407_v41 = vpack.c.bf16 %v195_v35, %v193_v34  ;;  %v197_v43 = vld [vmem:[%s582_s1 + $0xc0] sm:$0xff] }
   0xe   : > { %394 = vmatprep.subr.bf16.mxu0 %v393_v15  ;;  %s383_s16 = sshll.u32 %s586_s13, 2  ;;  %v409_v42 = vpack.c.bf16 %v200_v37, %v198_v36  ;;  %v199_v44 = vld [vmem:[%s582_s1 + $0xd0] sm:$0xff]  ;;  %v202_v45 = vld [vmem:[%s582_s1 + $0xe8] sm:$0xff]  ;;  %v204_v46 = vld [vmem:[%s582_s1 + $0xf8] sm:$0xff]  ;;  %s384_s7 = sshll.u32 %s586_s13, 3 }
   0xf   : > { %s165_s23 = scalar_lea.vmem %s581_s0, %s383_s16  ;;  %v411_v49 = vpack.c.bf16 %v199_v44, %v197_v43  ;;  %v413_v52 = vpack.c.bf16 %v204_v46, %v202_v45  ;;  %v201_v53 = vld [vmem:[%s582_s1 + $0xe0] sm:$0xff]  ;;  %v203_v54 = vld [vmem:[%s582_s1 + $0xf0] sm:$0xff]  ;;  %s170_s10 = scalar_lea.vmem %s584_s3, %s384_s7 }
  0x10   : > { %v171_v50 = vld [vmem:[%s165_s23] sm:$0x3]  ;;  %v172_v51 = vld [vmem:[%s165_s23 + $0x2] sm:$0x3]  ;;  %v415_v57 = vpack.c.bf16 %v203_v54, %v201_v53 }
  0x11   : > { %396 = vmatpush1.bf16.msra.mxu0 %v395_v20  ;;  %v219_v55 = vcombine.low %v171_v50, %v172_v51  ;;  %v205_v60 = vld [vmem:[%s583_s2] sm:$0x3] }
  0x12   : > { %398 = vmatprep.subr.bf16.mxu0 %v397_v21  ;;  %v210_v62 = vrot.slane %v205_v60, %v209_v59  ;;  %v214_v63 = vrot.slane %v205_v60, %v213_v61 }
  0x13   : > { %v226_v58 = vrot.slane %v219_v55, %v225_v56 }
  0x15   : > { %400 = vmatpush1.bf16.msra.mxu0 %v399_v26 }
  0x16   : > { %402 = vmatprep.subr.bf16.mxu0 %v401_v27 }
  0x19   : > { %404 = vmatpush1.bf16.msra.mxu0 %v403_v32 }
  0x1a   : > { %406 = vmatprep.subr.bf16.mxu0 %v405_v33 }
  0x1d   : > { %408 = vmatpush1.bf16.msra.mxu0 %v407_v41 }
  0x1e   : > { %410 = vmatprep.subr.bf16.mxu0 %v409_v42 }
  0x21   : > { %412 = vmatpush1.bf16.msra.mxu0 %v411_v49 }
  0x22   : > { %414 = vmatprep.subr.bf16.mxu0 %v413_v52 }
  0x25   : > { %416 = vmatpush1.bf16.msra.mxu0 %v415_v57 }
  0x28   : > { %293 = vmatmul.mubr.f32.vlgmr.msra.gmra.mrb[0].mxu0 %v226_v58 }
  0xfb   : > { %v294_v0 = vpop.f32.mrb[0].mxu0 }
  0xfc   : > { %v295_v1 = vadd.f32 %v294_v0, %v210_v62  ;;  %v296_v2 = vpop.f32.mrb[1].mxu0 }
  0xfd   : > { %v297_v3 = vadd.f32 %v296_v2, %v214_v63 }
  0xfe   : > { %v299_v4 = vmax.f32 %v295_v1, 0.0 }
  0xff   : > { %v300_v5 = vmax.f32 %v297_v3, 0.0 }
 0x101   : > { %v303_v6 = vcombine.low %v299_v4, %v300_v5 }
 0x103   : > { %v310_v7 = vrot.slane %v303_v6, %v225_v56  ;;  %380 = vst.sshfl [vmem:[%s170_s10] sm:$0x33 pattern:$0x76325410] %v303_v6 }
 0x105   : > { %v311_v8 = vcombine.high %v310_v7, %v310_v7 }
 0x107   : > { %315 = vst [vmem:[%s170_s10 + $0x4] sm:$0xf] %v311_v8 }
 0x108 PF: > { %s13_s12 = sadd.s32 1, %s433_s12  }
 0x109   : > { %p10_p4 = scmp.ge.s32.totalorder %s13_s12, 4  }
 0x10b   :  { %12 = sbr.rel (!%p10_p4) target bundleno = 1 (0x1), region = 62 }

// kernel: tile.28
= control target key start
LH: loop header
LB: loop body
LE: loop exit
PB: predicated region body
PF: predicated region fallthrough
CT: control target
= control target key end

     0   :  { %s22_s0 = inlined_call_operand.vmem [shape: f32[3], index: 0, kind: input, shape index: {}]   ;;  %s23_s1 = inlined_call_operand.vmem [shape: f32[4,3], index: 1, kind: output, shape index: {}]  }
   0x1   :  { %v4_v0 = vld [vmem:[%s22_s0] ss:$0 sm:$0xff] }
   0x2   :  { %5 = vst [vmem:[%s23_s1] sm:$0xf] %v4_v0 }

// kernel: tile.29
= control target key start
LH: loop header
LB: loop body
LE: loop exit
PB: predicated region body
PF: predicated region fallthrough
CT: control target
= control target key end

     0   :  { %vm7_vm0 = vcmask 23552   ;;  %s37_s8 = smov 3   ;;  %s38_s9 = smov 6   ;;  %vm13_vm1 = vcmask 97352   ;;  %vm19_vm2 = vcmask 72752   ;;  %vm25_vm3 = vcmask 48152   ;;  %s55_s0 = inlined_call_operand.vmem [shape: f32[4,3], index: 0, kind: input, shape index: {}]   ;;  %s56_s1 = inlined_call_operand.vmem [shape: f32[1,12], index: 1, kind: output, shape index: {}]  }
   0x1   :  { %v4_v0 = vld [vmem:[%s55_s0] sm:$0xf]  ;;  %s36_s0 = smov 9  }
   0x2   :  { %5 = vst [vmem:[#allocation1] sm:$0xf] %v4_v0 }
   0x9   :  { %v10_v1 = vld [vmem:[#allocation1 + $0x3] sm:$0x1]   ;;  %v22_v2 = vld [vmem:[#allocation1 + $0x1] sm:$0x1]   ;;  %v6_v3 = vld [vmem:[#allocation1] sm:$0x1]  }
   0xa   :  { %11 = vrot.lane.b32.xlu0 %v10_v1, %s36_s0  ;;  %23 = vrot.lane.b32.xlu1 %v22_v2, %s37_s8  ;;  %v16_v4 = vld [vmem:[#allocation1 + $0x2] sm:$0x1]   ;;  %8 = vst.msk [vmem:[#allocation0] sm:$0x1] %vm7_vm0, %v6_v3  }
   0xe   :  { %17 = vrot.lane.b32.xlu0 %v16_v4, %s38_s9 }
  0x7c   :  { %v12_v5 = vpop.permute.xlu0 %11   ;;  %v24_v6 = vpop.permute.xlu1 %23  }
  0x7d   :  { %14 = vst.msk [vmem:[#allocation0] sm:$0x1] %vm13_vm1, %v12_v5  }
  0x80   :  { %v18_v7 = vpop.permute.xlu0 %17  }
  0x81   :  { %20 = vst.msk [vmem:[#allocation0] sm:$0x1] %vm19_vm2, %v18_v7  }
  0x82   :  { %26 = vst.msk [vmem:[#allocation0] sm:$0x1] %vm25_vm3, %v24_v6  }
  0x89   :  { %v30_v8 = vld [vmem:[#allocation0] sm:$0x1] }
  0x8a   :  { %32 = vst [vmem:[%s56_s1] sm:$0x1] %v30_v8 }

// kernel: autoencoder_forward.18
= control target key start
LH: loop header
LB: loop body
LE: loop exit
PB: predicated region body
PF: predicated region fallthrough
CT: control target
= control target key end

     0   :  { %s442_s12 = smov 0   ;;  %s486_s0 = inlined_call_operand.vmem [shape: f32[2,4,4,64], index: 0, kind: input, shape index: {}]   ;;  %s487_s1 = inlined_call_operand.vmem [shape: f32[64,128], index: 1, kind: input, shape index: {}]   ;;  %s488_s2 = inlined_call_operand.vmem [shape: f32[1,128], index: 2, kind: input, shape index: {}]   ;;  %s489_s3 = inlined_call_operand.vmem [shape: f32[2,4,4,128], index: 3, kind: output, shape index: {}]  }
   0x1 LB: > { %s343_s13 = sadd.s32 4294967295, %s420_s12   ;;  %p347_p0 = scmp.ge.s32.totalorder %s420_s12, 1  ;;  %s420_s12 = sphi %s442_s12, %s13_s12  }
   0x2   : > { %p137_p1 = scmp.lt.s32.totalorder %s420_s12, 3 }
   0x4   : > { %p138_p2 = pnand %p347_p0, %p137_p1 }
   0x5   : > { %v175_v0 = vld [vmem:[%s487_s1] sm:$0xff] (!%p138_p2)  ;;  %v176_v1 = vld [vmem:[%s487_s1 + $0x8] sm:$0xff] (!%p138_p2)  ;;  %v177_v2 = vld [vmem:[%s487_s1 + $0x10] sm:$0xff] (!%p138_p2)  ;;  %p161_p3 = scmp.lt.s32.totalorder (!%p138_p2), %s343_s13, 1  ;;  %vm196_vm0 = vcmask (!%p138_p2), 523264  }
   0x6   : > { %141 = sbr.rel (%p138_p2) target bundleno = 244 (0xf4), region = 32  ;;  %v388_v3 = vpack.c.bf16 (!%p138_p2), %v176_v1, %v175_v0  ;;  %v178_v4 = vld [vmem:[%s487_s1 + $0x18] sm:$0xff] (!%p138_p2)  ;;  %v179_v6 = vld [vmem:[%s487_s1 + $0x20] sm:$0xff] (!%p138_p2)  ;;  %v180_v7 = vld [vmem:[%s487_s1 + $0x28] sm:$0xff] (!%p138_p2) }
   0x7   : > { %v392_v5 = vpack.c.bf16 (!%p138_p2), %v178_v4, %v177_v2  ;;  %v396_v8 = vpack.c.bf16 (!%p138_p2), %v180_v7, %v179_v6  ;;  %v181_v9 = vld [vmem:[%s487_s1 + $0x30] sm:$0xff] (!%p138_p2)  ;;  %v182_v10 = vld [vmem:[%s487_s1 + $0x38] sm:$0xff] (!%p138_p2)  ;;  %v352_v14 = vld [vmem:[%s488_s2] ss:$0 sm:$0xff] (!%p138_p2) }
   0x8   : > { %389 = vmatprep.subr.bf16.mxu0 (!%p138_p2), %v388_v3  ;;  %v400_v12 = vpack.c.bf16 (!%p138_p2), %v182_v10, %v181_v9 }
   0x9   : > { %391 = vmatpush3.bf16.msra.mxu0 (!%p138_p2), %v388_v3 }
   0xa   : > { %393 = vmatprep.subr.bf16.mxu0 (!%p138_p2), %v392_v5 }
   0xd   : > { %s491_s13 = smov (!%p161_p3, %s343_s13), 1  ;;  %395 = vmatpush3.bf16.msra.mxu0 %v392_v5 }
   0xe   : > { %s357_s26 = sshll.u32 %s491_s13, 4  ;;  %397 = vmatprep.subr.bf16.mxu0 %v396_v8 }
   0xf   : > { %s165_s6 = scalar_lea.vmem %s486_s0, %s357_s26  ;;  %s170_s11 = scalar_lea.vmem %s489_s3, %s357_s26 }
  0x10   : > { %v412_v11 = vld [vmem:[%s165_s6] sm:$0xff]   ;;  %v413_v13 = vld [vmem:[%s165_s6 + $0x8] sm:$0xff]  }
  0x11   : > { %385 = vmatprep.mubr.msk.f32.mxu0 %vm196_vm0, %v412_v11  ;;  %399 = vmatpush3.bf16.msra.mxu0 %v396_v8 }
  0x12   : > { %401 = vmatprep.subr.bf16.mxu0 %v400_v12 }
  0x15   : > { %403 = vmatpush3.bf16.msra.mxu0 %v400_v12 }
  0x18   : > { %386 = vmatmul.mubr.msk.f32.vlgmr.msra.gmra.mrb[0].mxu0 %vm196_vm0, %v413_v13 }
  0xeb   : > { %v387_v15 = vpop.f32.mrb[0].mxu0 }
  0xec   : > { %v273_v16 = vadd.f32 %v387_v15, %v352_v14  ;;  %v267_v17 = vpop.f32.mrb[1].mxu0 }
  0xed   : > { %v268_v18 = vadd.f32 %v352_v14, %v267_v17 }
  0xee   : > { %v277_v19 = vmax.f32 %v273_v16, 0.0 }
  0xef   : > { %v276_v20 = vmax.f32 %v268_v18, 0.0 }
  0xf0   : > { %v281_v21 = vcombine.high %v277_v19, %v277_v19  ;;  %286 = vst [vmem:[%s170_s11 + $0x8] sm:$0xf] %v277_v19 }
  0xf1   : > { %v280_v22 = vcombine.high %v276_v20, %v276_v20  ;;  %284 = vst [vmem:[%s170_s11] sm:$0xf] %v276_v20 }
  0xf2   : > { %287 = vst [vmem:[%s170_s11 + $0xc] sm:$0xf] %v281_v21 }
  0xf3   : > { %285 = vst [vmem:[%s170_s11 + $0x4] sm:$0xf] %v280_v22 }
  0xf4 PF: > { %s13_s12 = sadd.s32 1, %s420_s12  }
  0xf5   : > { %p10_p4 = scmp.ge.s32.totalorder %s13_s12, 4  }
  0xf7   :  { %12 = sbr.rel (!%p10_p4) target bundleno = 1 (0x1), region = 62 }

// kernel: autoencoder_forward.19
= control target key start
LH: loop header
LB: loop body
LE: loop exit
PB: predicated region body
PF: predicated region fallthrough
CT: control target
= control target key end

     0   :  { %s566_s12 = smov 0   ;;  %s621_s0 = inlined_call_operand.vmem [shape: f32[2,8,8,32], index: 0, kind: input, shape index: {}]   ;;  %s622_s1 = inlined_call_operand.vmem [shape: f32[32,12], index: 1, kind: input, shape index: {}]   ;;  %s623_s2 = inlined_call_operand.vmem [shape: f32[1,12], index: 2, kind: input, shape index: {}]   ;;  %s624_s3 = inlined_call_operand.vmem [shape: f32[2,8,8,12], index: 3, kind: output, shape index: {}]  }
   0x1 LB: > { %s432_s13 = sadd.s32 4294967295, %s544_s12   ;;  %p436_p0 = scmp.ge.s32.totalorder %s544_s12, 1  ;;  %s544_s12 = sphi %s566_s12, %s13_s12  }
   0x2   : > { %p137_p1 = scmp.lt.s32.totalorder %s544_s12, 3 }
   0x4   : > { %p138_p2 = pnand %p436_p0, %p137_p1 }
   0x5   : > { %v179_v0 = vld [vmem:[%s622_s1] sm:$0xff] (!%p138_p2)  ;;  %v180_v1 = vld [vmem:[%s622_s1 + $0x8] sm:$0xff] (!%p138_p2)  ;;  %v181_v2 = vld [vmem:[%s622_s1 + $0x10] sm:$0xff] (!%p138_p2)  ;;  %p161_p3 = scmp.lt.s32.totalorder (!%p138_p2), %s432_s13, 1  ;;  %vm190_vm0 = vcmask (!%p138_p2), 261120   ;;  %vm368_vm1 = vcmask (!%p138_p2), 97280  }
   0x6   : > { %141 = sbr.rel (%p138_p2) target bundleno = 268 (0x10c), region = 32  ;;  %v486_v3 = vpack.c.bf16 (!%p138_p2), %v180_v1, %v179_v0  ;;  %v182_v4 = vld [vmem:[%s622_s1 + $0x18] sm:$0xff] (!%p138_p2)  ;;  %v441_v14 = vld [vmem:[%s623_s2] ss:$0 sm:$0xff] (!%p138_p2) }
   0x7   : > { %v490_v5 = vpack.c.bf16 (!%p138_p2), %v182_v4, %v181_v2 }
   0x8   : > { %487 = vmatprep.subr.bf16.mxu0 (!%p138_p2), %v486_v3  ;;  %494 = vmatprep.subr.bf16.mxu1 (!%p138_p2), %v486_v3 }
   0x9   : > { %489 = vmatpush3.bf16.msra.mxu0 (!%p138_p2), %v486_v3  ;;  %496 = vmatpush3.bf16.msra.mxu1 (!%p138_p2), %v486_v3 }
   0xa   : > { %491 = vmatprep.subr.bf16.mxu0 (!%p138_p2), %v490_v5  ;;  %495 = vmatprep.subr.bf16.mxu1 (!%p138_p2), %v490_v5 }
   0xd   : > { %s626_s13 = smov (!%p161_p3, %s432_s13), 1  ;;  %493 = vmatpush3.bf16.msra.mxu0 %v490_v5  ;;  %497 = vmatpush3.bf16.msra.mxu1 %v490_v5 }
   0xe   : > { %s452_s22 = sshll.u32 %s626_s13, 6 }
   0xf   : > { %s165_s25 = scalar_lea.vmem %s621_s0, %s452_s22  ;;  %s170_s30 = scalar_lea.vmem %s624_s3, %s452_s22 }
  0x10   : > { %v171_v6 = vld [vmem:[%s165_s25] sm:$0xff]  ;;  %v172_v8 = vld [vmem:[%s165_s25 + $0x8] sm:$0xff]  ;;  %v173_v10 = vld [vmem:[%s165_s25 + $0x10] sm:$0xff] }
  0x11   : > { %v175_v7 = vld [vmem:[%s165_s25 + $0x20] sm:$0xff]  ;;  %474 = vmatprep.mubr.msk.f32.mxu0 %vm190_vm0, %v171_v6  ;;  %v176_v9 = vld [vmem:[%s165_s25 + $0x28] sm:$0xff]  ;;  %v177_v11 = vld [vmem:[%s165_s25 + $0x30] sm:$0xff] }
  0x12   : > { %480 = vmatprep.mubr.msk.f32.mxu1 %vm190_vm0, %v175_v7  ;;  %475 = vmatmul.mubr.msk.f32.vlgmr.msra.gmra.mrb[0].mxu0 %vm190_vm0, %v172_v8  ;;  %v174_v12 = vld [vmem:[%s165_s25 + $0x18] sm:$0xff] }
  0x13   : > { %481 = vmatmul.mubr.msk.f32.vlgmr.msra.gmra.mrb[0].mxu1 %vm190_vm0, %v176_v9  ;;  %477 = vmatprep.mubr.msk.f32.mxu0 %vm190_vm0, %v173_v10  ;;  %v178_v13 = vld [vmem:[%s165_s25 + $0x38] sm:$0xff] }
  0x14   : > { %483 = vmatprep.mubr.msk.f32.mxu1 %vm190_vm0, %v177_v11 }
  0x16   : > { %478 = vmatmul.mubr.msk.f32.gmra.mrb[2].mxu0 %vm190_vm0, %v174_v12 }
  0x17   : > { %484 = vmatmul.mubr.msk.f32.gmra.mrb[2].mxu1 %vm190_vm0, %v178_v13 }
  0xe5   : > { %v476_v15 = vpop.f32.mrb[0].mxu0 }
  0xe6   : > { %v482_v16 = vpop.f32.mrb[0].mxu1  ;;  %v287_v17 = vadd.f32 %v476_v15, %v441_v14  ;;  %v281_v19 = vpop.f32.mrb[1].mxu0 }
  0xe7   : > { %v307_v18 = vadd.f32 %v482_v16, %v441_v14  ;;  %v301_v20 = vpop.f32.mrb[1].mxu1  ;;  %v282_v21 = vadd.f32 %v441_v14, %v281_v19 }
  0xe8   : > { %v302_v22 = vadd.f32 %v441_v14, %v301_v20  ;;  %v321_v23 = vsub.f32 0.0, %v287_v17 }
  0xe9   : > { %v325_v24 = vsub.f32 0.0, %v307_v18  ;;  %v320_v25 = vsub.f32 0.0, %v282_v21  ;;  %v479_v27 = vpop.f32.mrb[2].mxu0 }
  0xea   : > { %v324_v26 = vsub.f32 0.0, %v302_v22  ;;  %v485_v28 = vpop.f32.mrb[2].mxu1  ;;  %v330_v29 = vmul.f32 1.442695, %v321_v23  ;;  %v297_v31 = vadd.f32 %v479_v27, %v441_v14  ;;  %v291_v33 = vpop.f32.mrb[3].mxu0 }
  0xeb   : > { %v338_v30 = vmul.f32 1.442695, %v325_v24  ;;  %v317_v32 = vadd.f32 %v485_v28, %v441_v14  ;;  %v311_v34 = vpop.f32.mrb[3].mxu1  ;;  %v328_v35 = vmul.f32 1.442695, %v320_v25  ;;  %v292_v37 = vadd.f32 %v441_v14, %v291_v33 }
  0xec   : > { %v336_v36 = vmul.f32 1.442695, %v324_v26  ;;  %v312_v38 = vadd.f32 %v441_v14, %v311_v34  ;;  %506 = vpow2.f32 %v330_v29  ;;  %v323_v39 = vsub.f32 0.0, %v297_v31 }
  0xed   : > { %v327_v40 = vsub.f32 0.0, %v317_v32  ;;  %508 = vpow2.f32 %v338_v30  ;;  %v322_v41 = vsub.f32 0.0, %v292_v37 }
  0xee   : > { %v326_v42 = vsub.f32 0.0, %v312_v38  ;;  %510 = vpow2.f32 %v328_v35  ;;  %v334_v43 = vmul.f32 1.442695, %v323_v39 }
  0xef   : > { %v342_v44 = vmul.f32 1.442695, %v327_v40  ;;  %512 = vpow2.f32 %v336_v36  ;;  %v332_v45 = vmul.f32 1.442695, %v322_v41 }
  0xf0   : > { %v340_v46 = vmul.f32 1.442695, %v326_v42  ;;  %514 = vpow2.f32 %v334_v43 }
  0xf1   : > { %516 = vpow2.f32 %v342_v44 }
  0xf2   : > { %518 = vpow2.f32 %v332_v45 }
  0xf3   : > { %520 = vpow2.f32 %v340_v46 }
  0xf6   : > { %v507_v47 = vpop.eup %506 }
  0xf7   : > { %v509_v48 = vpop.eup %508  ;;  %v345_v49 = vadd.f32 1.0, %v507_v47 }
  0xf8   : > { %v511_v50 = vpop.eup %510  ;;  %v349_v51 = vadd.f32 1.0, %v509_v48 }
  0xf9   : > { %v513_v52 = vpop.eup %512  ;;  %522 = vrcp.f32 %v345_v49  ;;  %v344_v53 = vadd.f32 1.0, %v511_v50 }
  0xfa   : > { %v515_v54 = vpop.eup %514  ;;  %524 = vrcp.f32 %v349_v51  ;;  %v348_v55 = vadd.f32 1.0, %v513_v52 }
  0xfb   : > { %v517_v56 = vpop.eup %516  ;;  %526 = vrcp.f32 %v344_v53  ;;  %v347_v57 = vadd.f32 1.0, %v515_v54 }
  0xfc   : > { %v519_v58 = vpop.eup %518  ;;  %528 = vrcp.f32 %v348_v55  ;;  %v351_v59 = vadd.f32 1.0, %v517_v56 }
  0xfd   : > { %v521_v60 = vpop.eup %520  ;;  %530 = vrcp.f32 %v347_v57  ;;  %v346_v61 = vadd.f32 1.0, %v519_v58 }
  0xfe   : > { %532 = vrcp.f32 %v351_v59  ;;  %v350_v62 = vadd.f32 1.0, %v521_v60 }
  0xff   : > { %534 = vrcp.f32 %v346_v61 }
 0x100   : > { %536 = vrcp.f32 %v350_v62 }
 0x103   : > { %v523_v63 = vpop.eup %522 }
 0x104   : > { %v525_v0 = vpop.eup %524  ;;  %370 = vst.msk [vmem:[%s170_s30 + $0x8] sm:$0xff] %vm368_vm1, %v523_v63 }
 0x105   : > { %v527_v1 = vpop.eup %526  ;;  %374 = vst.msk [vmem:[%s170_s30 + $0x28] sm:$0xff] %vm368_vm1, %v525_v0 }
 0x106   : > { %v529_v2 = vpop.eup %528  ;;  %369 = vst.msk [vmem:[%s170_s30] sm:$0xff] %vm368_vm1, %v527_v1 }
 0x107   : > { %v531_v3 = vpop.eup %530  ;;  %373 = vst.msk [vmem:[%s170_s30 + $0x20] sm:$0xff] %vm368_vm1, %v529_v2 }
 0x108   : > { %v533_v4 = vpop.eup %532  ;;  %372 = vst.msk [vmem:[%s170_s30 + $0x18] sm:$0xff] %vm368_vm1, %v531_v3 }
 0x109   : > { %v535_v5 = vpop.eup %534  ;;  %376 = vst.msk [vmem:[%s170_s30 + $0x38] sm:$0xff] %vm368_vm1, %v533_v4 }
 0x10a   : > { %v537_v6 = vpop.eup %536  ;;  %371 = vst.msk [vmem:[%s170_s30 + $0x10] sm:$0xff] %vm368_vm1, %v535_v5 }
 0x10b   : > { %375 = vst.msk [vmem:[%s170_s30 + $0x30] sm:$0xff] %vm368_vm1, %v537_v6 }
 0x10c PF: > { %s13_s12 = sadd.s32 1, %s544_s12  }
 0x10d   : > { %p10_p4 = scmp.ge.s32.totalorder %s13_s12, 4  }
 0x10f   :  { %12 = sbr.rel (!%p10_p4) target bundleno = 1 (0x1), region = 62 }

</bundles_post_ra>
